<compile_context>
chip_gen: v7x
topology: tpu7x:2x2x1
jax: 0.10.0
libtpu: 0.0.40
codegen_flags: <defaults>
</compile_context>

<pallas_src>
import functools

import jax
import jax.numpy as jnp
from jax.experimental import pallas as pl
from jax.experimental.pallas import tpu as pltpu

_NPAD = 128        # lane-dense padded column count for the conv matmul outputs
_BN_EPS = 1e-5


def _round_up(x, m):
    return (x + m - 1) // m * m


# ---------------------------------------------------------------------------
# Pallas kernels: full-block MXU matmul + fused epilogue
# ---------------------------------------------------------------------------
def _matmul_bn_relu_kernel(a_ref, b_ref, g_ref, beta_ref, o_ref):
    """(M,K)@(K,N) then per-column BatchNorm (batch stats, biased var) + ReLU."""
    x = jnp.dot(a_ref[...], b_ref[...], preferred_element_type=jnp.float32)
    mean = jnp.mean(x, axis=0, keepdims=True)
    var = jnp.mean(jnp.square(x - mean), axis=0, keepdims=True)
    y = (x - mean) * jax.lax.rsqrt(var + _BN_EPS) * g_ref[...] + beta_ref[...]
    o_ref[...] = jnp.maximum(y, 0.0)


def _matmul_bn_relu_pool_kernel(a_ref, b_ref, g_ref, beta_ref, p_ref, o_ref):
    """Matmul + BatchNorm whose statistics are pooled across column groups.

    p_ref is an (N,N) pooling/broadcast matrix: stat_row @ P gives, for every
    column, the average of the per-column stats over that column's group
    (here: the 4 sub-pixel phases of one conv output channel)."""
    x = jnp.dot(a_ref[...], b_ref[...], preferred_element_type=jnp.float32)
    m1 = jnp.mean(x, axis=0, keepdims=True)        # per-column E[x]
    m2 = jnp.mean(x * x, axis=0, keepdims=True)    # per-column E[x^2]
    mean = jnp.dot(m1, p_ref[...], preferred_element_type=jnp.float32)
    ex2 = jnp.dot(m2, p_ref[...], preferred_element_type=jnp.float32)
    var = jnp.maximum(ex2 - mean * mean, 0.0)
    y = (x - mean) * jax.lax.rsqrt(var + _BN_EPS) * g_ref[...] + beta_ref[...]
    o_ref[...] = jnp.maximum(y, 0.0)


def _matmul_bias_sigmoid_kernel(a_ref, b_ref, bias_ref, o_ref):
    z = jnp.dot(a_ref[...], b_ref[...], preferred_element_type=jnp.float32)
    z = z + bias_ref[...]
    ez = jnp.exp(-jnp.abs(z))                      # numerically stable sigmoid
    o_ref[...] = jnp.where(z >= 0.0, 1.0 / (1.0 + ez), ez / (1.0 + ez))


# ---------------------------------------------------------------------------
# Kernel wrappers
# ---------------------------------------------------------------------------
def matmul_bn_relu(a, b_bf16, g_row, beta_row):
    a = a.astype(jnp.bfloat16)
    M, N = a.shape[0], b_bf16.shape[1]
    return pl.pallas_call(
        _matmul_bn_relu_kernel,
        out_shape=jax.ShapeDtypeStruct((M, N), jnp.float32),
    )(a, b_bf16, g_row, beta_row)


def matmul_bn_relu_pooled(a, b_bf16, g_row, beta_row, pool):
    a = a.astype(jnp.bfloat16)
    M, N = a.shape[0], b_bf16.shape[1]
    return pl.pallas_call(
        _matmul_bn_relu_pool_kernel,
        out_shape=jax.ShapeDtypeStruct((M, N), jnp.float32),
    )(a, b_bf16, g_row, beta_row, pool)


def matmul_bias_sigmoid(a, b_bf16, bias_row, m_split=2):
    a = a.astype(jnp.bfloat16)
    M, K = a.shape
    N = b_bf16.shape[1]
    if m_split <= 1:
        return pl.pallas_call(
            _matmul_bias_sigmoid_kernel,
            out_shape=jax.ShapeDtypeStruct((M, N), jnp.float32),
        )(a, b_bf16, bias_row)
    # Row-axis split marked "parallel": on v7x the two blocks are sharded across
    # the two TensorCores; on v5e/v6e it is just one extra (cheap) grid step.
    blk = _round_up(-(-M // m_split), 16)     # multiple of 16 = bf16 sublane tile
    Mp = blk * m_split
    if Mp != M:
        a = jnp.zeros((Mp, K), a.dtype).at[:M, :].set(a)
    out = pl.pallas_call(
        _matmul_bias_sigmoid_kernel,
        out_shape=jax.ShapeDtypeStruct((Mp, N), jnp.float32),
        grid=(m_split,),
        in_specs=[
            pl.BlockSpec((blk, K), lambda i: (i, 0)),
            pl.BlockSpec((K, N), lambda i: (0, 0)),
            pl.BlockSpec((1, N), lambda i: (0, 0)),
        ],
        out_specs=pl.BlockSpec((blk, N), lambda i: (i, 0)),
        compiler_params=pltpu.CompilerParams(
            dimension_semantics=("parallel",)),
    )(a, b_bf16, bias_row)
    return out[:M]


# ---------------------------------------------------------------------------
# ConvTranspose2d(kernel=4, stride=2, padding=1): stride-phase decomposition
# ---------------------------------------------------------------------------
def phase_im2col(x_nchw):
    """Stride-1 im2col over a 3x3 window of the 1-padded input.

    Returns (B*H*W, Cin*9); row (b, m, n) holds every input tap needed by the
    four sub-pixel output phases of ConvTranspose2d(4, 2, 1) at base (m, n)."""
    B, Cin, H, W = x_nchw.shape
    xp = jnp.pad(x_nchw, ((0, 0), (0, 0), (1, 1), (1, 1)))
    patches = jnp.stack(
        [xp[:, :, a:a + H, b:b + W] for a in range(3) for b in range(3)],
        axis=-1)                                   # (B, Cin, H, W, 9)
    return patches.transpose(0, 2, 3, 1, 4).reshape(B * H * W, Cin * 9)


def phase_to_nchw(y, B, H, W, Cout):
    """(B*H*W, 4*Cout) phase-major matmul output -> (B, Cout, 2H, 2W) NCHW."""
    y = y.reshape(B, H, W, 2, 2, Cout)             # (b, m, n, rh, rw, co)
    y = y.transpose(0, 5, 1, 3, 2, 4)              # (b, co, m, rh, n, rw)
    return y.reshape(B, Cout, 2 * H, 2 * W)


def make_phase_weight(w_pt, n_pad=_NPAD):
    """PyTorch ConvTranspose2d weight (Cin, Cout, 4, 4), stride 2 / pad 1 ->
    phase-decomposed matrix (Cin*9, n_pad) in bf16.

    Columns are (rh, rw, co) (phase-major); rows match phase_im2col's
    (ci, a, b) order with a, b the 3x3 window offsets.  Output pixel
    (2m+rh, 2n+rw) only sees kernel taps of matching parity:
        phase 0: window offset 0 -> tap 3, offset 1 -> tap 1
        phase 1: window offset 1 -> tap 2, offset 2 -> tap 0
    """
    cin, cout = int(w_pt.shape[0]), int(w_pt.shape[1])
    taps = ({0: 3, 1: 1}, {1: 2, 2: 0})
    wp = jnp.zeros((cin, 3, 3, 2, 2, cout), jnp.float32)
    for rh in range(2):
        for rw in range(2):
            for a, kh in taps[rh].items():
                for b, kw in taps[rw].items():
                    wp = wp.at[:, a, b, rh, rw, :].set(
                        w_pt[:, :, kh, kw].astype(jnp.float32))
    wm = wp.reshape(cin * 9, 4 * cout)
    out = jnp.zeros((cin * 9, n_pad), jnp.float32).at[:, :4 * cout].set(wm)
    return out.astype(jnp.bfloat16)


def make_bn_pool_matrix(cout, n_pad=_NPAD):
    """(n_pad, n_pad) matrix averaging per-column BN stats over the 4 phases of
    each conv output channel (phase-major columns); zero on padded columns."""
    n = 4 * cout
    col = jnp.arange(n_pad)
    valid = col < n
    ch = col % cout
    same = valid[:, None] & valid[None, :] & (ch[:, None] == ch[None, :])
    return same.astype(jnp.float32) * 0.25


# ---------------------------------------------------------------------------
# Parameters
# ---------------------------------------------------------------------------
def make_params(key, z_size=20, channel_num=16):
    """Random parameters in PyTorch layouts (Linear weights stored transposed)."""
    ks = jax.random.split(key, 5)
    c = channel_num
    return {
        "channel_num": c,
        "fc1_w": 0.10 * jax.random.normal(ks[0], (z_size, 1000), jnp.float32),
        "bn1_g": jnp.ones((1000,), jnp.float32),
        "bn1_b": jnp.zeros((1000,), jnp.float32),
        "fc2_w": 0.05 * jax.random.normal(ks[1], (1000, 7 * 7 * c), jnp.float32),
        "bn2_g": jnp.ones((7 * 7 * c,), jnp.float32),
        "bn2_b": jnp.zeros((7 * 7 * c,), jnp.float32),
        "convt1_w": 0.10 * jax.random.normal(ks[2], (c, c // 2, 4, 4), jnp.float32),
        "bn3_g": jnp.ones((c // 2,), jnp.float32),
        "bn3_b": jnp.zeros((c // 2,), jnp.float32),
        "convt2_w": 0.10 * jax.random.normal(ks[3], (c // 2, 1, 4, 4), jnp.float32),
        "convt2_b": 0.10 * jax.random.normal(ks[4], (1,), jnp.float32),
    }


def prepare_decoder_params(p):
    """One-time conversion to kernel-ready layouts (hoisted out of the forward):
    bf16 weights, phase-decomposed conv matrices, BN pooling matrix, and the
    gamma/beta/bias rows broadcast to the padded column layout."""
    c = p["channel_num"]
    ch = c // 2
    f32 = jnp.float32
    return {
        "channel_num": c,
        "fc1_w": p["fc1_w"].astype(jnp.bfloat16),
        "bn1_g": p["bn1_g"].reshape(1, -1).astype(f32),
        "bn1_b": p["bn1_b"].reshape(1, -1).astype(f32),
        "fc2_w": p["fc2_w"].astype(jnp.bfloat16),
        "bn2_g": p["bn2_g"].reshape(1, -1).astype(f32),
        "bn2_b": p["bn2_b"].reshape(1, -1).astype(f32),
        "convt1_w": make_phase_weight(p["convt1_w"]),
        "bn3_g": jnp.zeros((1, _NPAD), f32).at[0, :4 * ch].set(jnp.tile(p["bn3_g"], 4)),
        "bn3_b": jnp.zeros((1, _NPAD), f32).at[0, :4 * ch].set(jnp.tile(p["bn3_b"], 4)),
        "bn3_pool": make_bn_pool_matrix(ch),
        "convt2_w": make_phase_weight(p["convt2_w"]),
        "convt2_b": jnp.zeros((1, _NPAD), f32).at[0, :4].set(jnp.tile(p["convt2_b"], 4)),
    }


# ---------------------------------------------------------------------------
# Decoder forward
# ---------------------------------------------------------------------------
def decoder_forward(z, prep):
    B = z.shape[0]
    c = prep["channel_num"]
    ch = c // 2

    # fc: Linear -> BN1d -> ReLU -> Linear -> BN1d -> ReLU   (one fused call each)
    h = matmul_bn_relu(z, prep["fc1_w"], prep["bn1_g"], prep["bn1_b"])     # (B, 1000)
    h = matmul_bn_relu(h, prep["fc2_w"], prep["bn2_g"], prep["bn2_b"])     # (B, 7*7*c)
    x = h.reshape(B, c, 7, 7)                                              # z.view(B,C,7,7)

    # DecoderBlock: ConvT(c -> c//2, 4/2/1) -> BN2d -> ReLU   (7x7 -> 14x14)
    cols = phase_im2col(x)                                                 # (B*49, c*9)
    y = matmul_bn_relu_pooled(cols, prep["convt1_w"],
                              prep["bn3_g"], prep["bn3_b"], prep["bn3_pool"])
    x = phase_to_nchw(y[:, :4 * ch], B, 7, 7, ch)                          # (B, c//2, 14, 14)

    # ConvT(c//2 -> 1, bias) -> Sigmoid                        (14x14 -> 28x28)
    cols2 = phase_im2col(x)                                                # (B*196, (c//2)*9)
    y2 = matmul_bias_sigmoid(cols2, prep["convt2_w"], prep["convt2_b"], m_split=2)
    out = phase_to_nchw(y2[:, :4], B, 14, 14, 1)                           # (B, 1, 28, 28)
    # TODO(synk): the whole decoder (<8 MiB working set) could be fused into a
    # single pallas_call with intermediates held in VMEM scratch to remove the
    # remaining 3 launches / HBM round trips.
    return out


if __name__ == "__main__":
    key = jax.random.PRNGKey(0)
    k_in, k_par = jax.random.split(key)

    batch, z_size, channel_num = 4, 20, 16
    params = make_params(k_par, z_size=z_size, channel_num=channel_num)
    prep = prepare_decoder_params(params)          # constant layouts, built once

    z = jax.random.normal(k_in, (batch, z_size), jnp.float32)
    fwd = jax.jit(functools.partial(decoder_forward, prep=prep))
    out = jax.block_until_ready(fwd(z))

    assert out.shape == (batch, 1, 28, 28), out.shape
    assert bool(jnp.all(jnp.isfinite(out)))
    assert bool(jnp.all((out >= 0.0) & (out <= 1.0)))
    print("KERNEL_OK")
</pallas_src>

<mosaic_0001>
module attributes {stable_mosaic.version = 11 : i64} {
  func.func @_matmul_bn_relu_kernel(%arg0: memref<4x20xbf16, #tpu.memory_space<vmem>>, %arg1: memref<20x1000xbf16, #tpu.memory_space<vmem>>, %arg2: memref<1x1000xf32, #tpu.memory_space<vmem>>, %arg3: memref<1x1000xf32, #tpu.memory_space<vmem>>, %arg4: memref<4x1000xf32, #tpu.memory_space<vmem>>) attributes {dimension_semantics = [], scalar_prefetch = 0 : i64, scratch_operands = 0 : i64, tpu.core_type = #tpu.core_type<tc>} {
    %c0 = arith.constant 0 : index
    %c0_0 = arith.constant 0 : index
    %0 = vector.load %arg0[%c0, %c0_0] : memref<4x20xbf16, #tpu.memory_space<vmem>>, vector<4x20xbf16>
    %c0_1 = arith.constant 0 : index
    %c0_2 = arith.constant 0 : index
    %1 = vector.load %arg1[%c0_1, %c0_2] : memref<20x1000xbf16, #tpu.memory_space<vmem>>, vector<20x1000xbf16>
    %cst = arith.constant dense<0.000000e+00> : vector<4x1000xf32>
    %2 = tpu.matmul %0, %1, %cst {dimension_numbers = #tpu.dot_dimension_numbers<[1], [0], [0], [1], [0, 0, 1, 1], [], []>} : vector<4x20xbf16>, vector<20x1000xbf16>, vector<4x1000xf32> -> vector<4x1000xf32>
    %cst_3 = arith.constant dense<0.000000e+00> : vector<1000xf32>
    %3 = vector.multi_reduction <add>, %2, %cst_3 [0] : vector<4x1000xf32> to vector<1000xf32>
    %4 = vector.shape_cast %3 : vector<1000xf32> to vector<1x1000xf32>
    %cst_4 = arith.constant 4.000000e+00 : f32
    %5 = vector.broadcast %cst_4 : f32 to vector<1x1000xf32>
    %6 = arith.divf %4, %5 : vector<1x1000xf32>
    %7 = vector.broadcast %6 : vector<1x1000xf32> to vector<4x1000xf32>
    %8 = arith.subf %2, %7 : vector<4x1000xf32>
    %9 = arith.mulf %8, %8 : vector<4x1000xf32>
    %cst_5 = arith.constant dense<0.000000e+00> : vector<1000xf32>
    %10 = vector.multi_reduction <add>, %9, %cst_5 [0] : vector<4x1000xf32> to vector<1000xf32>
    %11 = vector.shape_cast %10 : vector<1000xf32> to vector<1x1000xf32>
    %cst_6 = arith.constant 4.000000e+00 : f32
    %12 = vector.broadcast %cst_6 : f32 to vector<1x1000xf32>
    %13 = arith.divf %11, %12 : vector<1x1000xf32>
    %14 = vector.broadcast %6 : vector<1x1000xf32> to vector<4x1000xf32>
    %15 = arith.subf %2, %14 : vector<4x1000xf32>
    %cst_7 = arith.constant 9.99999974E-6 : f32
    %16 = vector.broadcast %cst_7 : f32 to vector<1x1000xf32>
    %17 = arith.addf %13, %16 : vector<1x1000xf32>
    %18 = math.rsqrt %17 : vector<1x1000xf32>
    %19 = vector.broadcast %18 : vector<1x1000xf32> to vector<4x1000xf32>
    %20 = arith.mulf %15, %19 : vector<4x1000xf32>
    %c0_8 = arith.constant 0 : index
    %c0_9 = arith.constant 0 : index
    %21 = vector.load %arg2[%c0_8, %c0_9] : memref<1x1000xf32, #tpu.memory_space<vmem>>, vector<1x1000xf32>
    %22 = vector.broadcast %21 : vector<1x1000xf32> to vector<4x1000xf32>
    %23 = arith.mulf %20, %22 : vector<4x1000xf32>
    %c0_10 = arith.constant 0 : index
    %c0_11 = arith.constant 0 : index
    %24 = vector.load %arg3[%c0_10, %c0_11] : memref<1x1000xf32, #tpu.memory_space<vmem>>, vector<1x1000xf32>
    %25 = vector.broadcast %24 : vector<1x1000xf32> to vector<4x1000xf32>
    %26 = arith.addf %23, %25 : vector<4x1000xf32>
    %cst_12 = arith.constant 0.000000e+00 : f32
    %27 = vector.broadcast %cst_12 : f32 to vector<4x1000xf32>
    %28 = arith.maximumf %26, %27 : vector<4x1000xf32>
    %c0_13 = arith.constant 0 : index
    %c0_14 = arith.constant 0 : index
    %29 = vector.load %arg4[%c0_13, %c0_14] : memref<4x1000xf32, #tpu.memory_space<vmem>>, vector<4x1000xf32>
    tpu.vector_store %arg4[%c0_13, %c0_14], %28 {strides = array<i32>} : memref<4x1000xf32, #tpu.memory_space<vmem>>, vector<4x1000xf32>,
    return
  }
}

module attributes {stable_mosaic.version = 11 : i64} {
  func.func @_matmul_bn_relu_kernel(%arg0: memref<4x1000xbf16, #tpu.memory_space<vmem>>, %arg1: memref<1000x784xbf16, #tpu.memory_space<vmem>>, %arg2: memref<1x784xf32, #tpu.memory_space<vmem>>, %arg3: memref<1x784xf32, #tpu.memory_space<vmem>>, %arg4: memref<4x784xf32, #tpu.memory_space<vmem>>) attributes {dimension_semantics = [], scalar_prefetch = 0 : i64, scratch_operands = 0 : i64, tpu.core_type = #tpu.core_type<tc>} {
    %c0 = arith.constant 0 : index
    %c0_0 = arith.constant 0 : index
    %0 = vector.load %arg0[%c0, %c0_0] : memref<4x1000xbf16, #tpu.memory_space<vmem>>, vector<4x1000xbf16>
    %c0_1 = arith.constant 0 : index
    %c0_2 = arith.constant 0 : index
    %1 = vector.load %arg1[%c0_1, %c0_2] : memref<1000x784xbf16, #tpu.memory_space<vmem>>, vector<1000x784xbf16>
    %cst = arith.constant dense<0.000000e+00> : vector<4x784xf32>
    %2 = tpu.matmul %0, %1, %cst {dimension_numbers = #tpu.dot_dimension_numbers<[1], [0], [0], [1], [0, 0, 1, 1], [], []>} : vector<4x1000xbf16>, vector<1000x784xbf16>, vector<4x784xf32> -> vector<4x784xf32>
    %cst_3 = arith.constant dense<0.000000e+00> : vector<784xf32>
    %3 = vector.multi_reduction <add>, %2, %cst_3 [0] : vector<4x784xf32> to vector<784xf32>
    %4 = vector.shape_cast %3 : vector<784xf32> to vector<1x784xf32>
    %cst_4 = arith.constant 4.000000e+00 : f32
    %5 = vector.broadcast %cst_4 : f32 to vector<1x784xf32>
    %6 = arith.divf %4, %5 : vector<1x784xf32>
    %7 = vector.broadcast %6 : vector<1x784xf32> to vector<4x784xf32>
    %8 = arith.subf %2, %7 : vector<4x784xf32>
    %9 = arith.mulf %8, %8 : vector<4x784xf32>
    %cst_5 = arith.constant dense<0.000000e+00> : vector<784xf32>
    %10 = vector.multi_reduction <add>, %9, %cst_5 [0] : vector<4x784xf32> to vector<784xf32>
    %11 = vector.shape_cast %10 : vector<784xf32> to vector<1x784xf32>
    %cst_6 = arith.constant 4.000000e+00 : f32
    %12 = vector.broadcast %cst_6 : f32 to vector<1x784xf32>
    %13 = arith.divf %11, %12 : vector<1x784xf32>
    %14 = vector.broadcast %6 : vector<1x784xf32> to vector<4x784xf32>
    %15 = arith.subf %2, %14 : vector<4x784xf32>
    %cst_7 = arith.constant 9.99999974E-6 : f32
    %16 = vector.broadcast %cst_7 : f32 to vector<1x784xf32>
    %17 = arith.addf %13, %16 : vector<1x784xf32>
    %18 = math.rsqrt %17 : vector<1x784xf32>
    %19 = vector.broadcast %18 : vector<1x784xf32> to vector<4x784xf32>
    %20 = arith.mulf %15, %19 : vector<4x784xf32>
    %c0_8 = arith.constant 0 : index
    %c0_9 = arith.constant 0 : index
    %21 = vector.load %arg2[%c0_8, %c0_9] : memref<1x784xf32, #tpu.memory_space<vmem>>, vector<1x784xf32>
    %22 = vector.broadcast %21 : vector<1x784xf32> to vector<4x784xf32>
    %23 = arith.mulf %20, %22 : vector<4x784xf32>
    %c0_10 = arith.constant 0 : index
    %c0_11 = arith.constant 0 : index
    %24 = vector.load %arg3[%c0_10, %c0_11] : memref<1x784xf32, #tpu.memory_space<vmem>>, vector<1x784xf32>
    %25 = vector.broadcast %24 : vector<1x784xf32> to vector<4x784xf32>
    %26 = arith.addf %23, %25 : vector<4x784xf32>
    %cst_12 = arith.constant 0.000000e+00 : f32
    %27 = vector.broadcast %cst_12 : f32 to vector<4x784xf32>
    %28 = arith.maximumf %26, %27 : vector<4x784xf32>
    %c0_13 = arith.constant 0 : index
    %c0_14 = arith.constant 0 : index
    %29 = vector.load %arg4[%c0_13, %c0_14] : memref<4x784xf32, #tpu.memory_space<vmem>>, vector<4x784xf32>
    tpu.vector_store %arg4[%c0_13, %c0_14], %28 {strides = array<i32>} : memref<4x784xf32, #tpu.memory_space<vmem>>, vector<4x784xf32>,
    return
  }
}

module attributes {stable_mosaic.version = 11 : i64} {
  func.func @_matmul_bn_relu_pool_kernel(%arg0: memref<196x144xbf16, #tpu.memory_space<vmem>>, %arg1: memref<144x128xbf16, #tpu.memory_space<vmem>>, %arg2: memref<1x128xf32, #tpu.memory_space<vmem>>, %arg3: memref<1x128xf32, #tpu.memory_space<vmem>>, %arg4: memref<128x128xf32, #tpu.memory_space<vmem>>, %arg5: memref<196x128xf32, #tpu.memory_space<vmem>>) attributes {dimension_semantics = [], scalar_prefetch = 0 : i64, scratch_operands = 0 : i64, tpu.core_type = #tpu.core_type<tc>} {
    %c0 = arith.constant 0 : index
    %c0_0 = arith.constant 0 : index
    %0 = vector.load %arg0[%c0, %c0_0] : memref<196x144xbf16, #tpu.memory_space<vmem>>, vector<196x144xbf16>
    %c0_1 = arith.constant 0 : index
    %c0_2 = arith.constant 0 : index
    %1 = vector.load %arg1[%c0_1, %c0_2] : memref<144x128xbf16, #tpu.memory_space<vmem>>, vector<144x128xbf16>
    %cst = arith.constant dense<0.000000e+00> : vector<196x128xf32>
    %2 = tpu.matmul %0, %1, %cst {dimension_numbers = #tpu.dot_dimension_numbers<[1], [0], [0], [1], [0, 0, 1, 1], [], []>} : vector<196x144xbf16>, vector<144x128xbf16>, vector<196x128xf32> -> vector<196x128xf32>
    %cst_3 = arith.constant dense<0.000000e+00> : vector<128xf32>
    %3 = vector.multi_reduction <add>, %2, %cst_3 [0] : vector<196x128xf32> to vector<128xf32>
    %4 = vector.shape_cast %3 : vector<128xf32> to vector<1x128xf32>
    %cst_4 = arith.constant 1.960000e+02 : f32
    %5 = vector.broadcast %cst_4 : f32 to vector<1x128xf32>
    %6 = arith.divf %4, %5 : vector<1x128xf32>
    %7 = arith.mulf %2, %2 : vector<196x128xf32>
    %cst_5 = arith.constant dense<0.000000e+00> : vector<128xf32>
    %8 = vector.multi_reduction <add>, %7, %cst_5 [0] : vector<196x128xf32> to vector<128xf32>
    %9 = vector.shape_cast %8 : vector<128xf32> to vector<1x128xf32>
    %cst_6 = arith.constant 1.960000e+02 : f32
    %10 = vector.broadcast %cst_6 : f32 to vector<1x128xf32>
    %11 = arith.divf %9, %10 : vector<1x128xf32>
    %c0_7 = arith.constant 0 : index
    %c0_8 = arith.constant 0 : index
    %12 = vector.load %arg4[%c0_7, %c0_8] : memref<128x128xf32, #tpu.memory_space<vmem>>, vector<128x128xf32>
    %cst_9 = arith.constant dense<0.000000e+00> : vector<1x128xf32>
    %13 = tpu.matmul %6, %12, %cst_9 {dimension_numbers = #tpu.dot_dimension_numbers<[1], [0], [0], [1], [0, 0, 1, 1], [], []>} : vector<1x128xf32>, vector<128x128xf32>, vector<1x128xf32> -> vector<1x128xf32>
    %c0_10 = arith.constant 0 : index
    %c0_11 = arith.constant 0 : index
    %14 = vector.load %arg4[%c0_10, %c0_11] : memref<128x128xf32, #tpu.memory_space<vmem>>, vector<128x128xf32>
    %cst_12 = arith.constant dense<0.000000e+00> : vector<1x128xf32>
    %15 = tpu.matmul %11, %14, %cst_12 {dimension_numbers = #tpu.dot_dimension_numbers<[1], [0], [0], [1], [0, 0, 1, 1], [], []>} : vector<1x128xf32>, vector<128x128xf32>, vector<1x128xf32> -> vector<1x128xf32>
    %16 = arith.mulf %13, %13 : vector<1x128xf32>
    %17 = arith.subf %15, %16 : vector<1x128xf32>
    %cst_13 = arith.constant 0.000000e+00 : f32
    %18 = vector.broadcast %cst_13 : f32 to vector<1x128xf32>
    %19 = arith.maximumf %17, %18 : vector<1x128xf32>
    %20 = vector.broadcast %13 : vector<1x128xf32> to vector<196x128xf32>
    %21 = arith.subf %2, %20 : vector<196x128xf32>
    %cst_14 = arith.constant 9.99999974E-6 : f32
    %22 = vector.broadcast %cst_14 : f32 to vector<1x128xf32>
    %23 = arith.addf %19, %22 : vector<1x128xf32>
    %24 = math.rsqrt %23 : vector<1x128xf32>
    %25 = vector.broadcast %24 : vector<1x128xf32> to vector<196x128xf32>
    %26 = arith.mulf %21, %25 : vector<196x128xf32>
    %c0_15 = arith.constant 0 : index
    %c0_16 = arith.constant 0 : index
    %27 = vector.load %arg2[%c0_15, %c0_16] : memref<1x128xf32, #tpu.memory_space<vmem>>, vector<1x128xf32>
    %28 = vector.broadcast %27 : vector<1x128xf32> to vector<196x128xf32>
    %29 = arith.mulf %26, %28 : vector<196x128xf32>
    %c0_17 = arith.constant 0 : index
    %c0_18 = arith.constant 0 : index
    %30 = vector.load %arg3[%c0_17, %c0_18] : memref<1x128xf32, #tpu.memory_space<vmem>>, vector<1x128xf32>
    %31 = vector.broadcast %30 : vector<1x128xf32> to vector<196x128xf32>
    %32 = arith.addf %29, %31 : vector<196x128xf32>
    %cst_19 = arith.constant 0.000000e+00 : f32
    %33 = vector.broadcast %cst_19 : f32 to vector<196x128xf32>
    %34 = arith.maximumf %32, %33 : vector<196x128xf32>
    %c0_20 = arith.constant 0 : index
    %c0_21 = arith.constant 0 : index
    %35 = vector.load %arg5[%c0_20, %c0_21] : memref<196x128xf32, #tpu.memory_space<vmem>>, vector<196x128xf32>
    tpu.vector_store %arg5[%c0_20, %c0_21], %34 {strides = array<i32>} : memref<196x128xf32, #tpu.memory_space<vmem>>, vector<196x128xf32>,
    return
  }
}

module attributes {stable_mosaic.version = 11 : i64} {
  func.func @_matmul_bias_sigmoid_kernel(%arg0: i32, %arg1: memref<400x72xbf16, #tpu.memory_space<vmem>>, %arg2: memref<72x128xbf16, #tpu.memory_space<vmem>>, %arg3: memref<1x128xf32, #tpu.memory_space<vmem>>, %arg4: memref<400x128xf32, #tpu.memory_space<vmem>>) attributes {dimension_semantics = [#tpu.dimension_semantics<parallel>], iteration_bounds = array<i64: 2>, scalar_prefetch = 0 : i64, scratch_operands = 0 : i64, tpu.core_type = #tpu.core_type<tc>, window_params = [{transform_indices = @transform_0, window_bounds = array<i64: 400, 72>}, {pipeline_mode = #tpu.pipeline_mode<synchronous>, transform_indices = @transform_1, window_bounds = array<i64: 72, 128>}, {pipeline_mode = #tpu.pipeline_mode<synchronous>, transform_indices = @transform_2, window_bounds = array<i64: 1, 128>}, {transform_indices = @transform_3, window_bounds = array<i64: 400, 128>}]} {
    %c0 = arith.constant 0 : index
    %c0_0 = arith.constant 0 : index
    %0 = vector.load %arg1[%c0, %c0_0] : memref<400x72xbf16, #tpu.memory_space<vmem>>, vector<400x72xbf16>
    %c0_1 = arith.constant 0 : index
    %c0_2 = arith.constant 0 : index
    %1 = vector.load %arg2[%c0_1, %c0_2] : memref<72x128xbf16, #tpu.memory_space<vmem>>, vector<72x128xbf16>
    %cst = arith.constant dense<0.000000e+00> : vector<400x128xf32>
    %2 = tpu.matmul %0, %1, %cst {dimension_numbers = #tpu.dot_dimension_numbers<[1], [0], [0], [1], [0, 0, 1, 1], [], []>} : vector<400x72xbf16>, vector<72x128xbf16>, vector<400x128xf32> -> vector<400x128xf32>
    %c0_3 = arith.constant 0 : index
    %c0_4 = arith.constant 0 : index
    %3 = vector.load %arg3[%c0_3, %c0_4] : memref<1x128xf32, #tpu.memory_space<vmem>>, vector<1x128xf32>
    %4 = vector.broadcast %3 : vector<1x128xf32> to vector<400x128xf32>
    %5 = arith.addf %2, %4 : vector<400x128xf32>
    %6 = math.absf %5 : vector<400x128xf32>
    %cst_5 = arith.constant 0.000000e+00 : f32
    %7 = vector.broadcast %cst_5 : f32 to vector<400x128xf32>
    %8 = arith.subf %7, %6 : vector<400x128xf32>
    %9 = math.exp %8 : vector<400x128xf32>
    %cst_6 = arith.constant 0.000000e+00 : f32
    %10 = vector.broadcast %cst_6 : f32 to vector<400x128xf32>
    %11 = arith.cmpf oge, %5, %10 : vector<400x128xf32>
    %cst_7 = arith.constant 1.000000e+00 : f32
    %12 = vector.broadcast %cst_7 : f32 to vector<400x128xf32>
    %13 = arith.addf %12, %9 : vector<400x128xf32>
    %cst_8 = arith.constant 1.000000e+00 : f32
    %14 = vector.broadcast %cst_8 : f32 to vector<400x128xf32>
    %15 = arith.divf %14, %13 : vector<400x128xf32>
    %cst_9 = arith.constant 1.000000e+00 : f32
    %16 = vector.broadcast %cst_9 : f32 to vector<400x128xf32>
    %17 = arith.addf %16, %9 : vector<400x128xf32>
    %18 = arith.divf %9, %17 : vector<400x128xf32>
    %19 = arith.select %11, %15, %18 : vector<400x128xi1>, vector<400x128xf32>
    %c0_10 = arith.constant 0 : index
    %c0_11 = arith.constant 0 : index
    %20 = vector.load %arg4[%c0_10, %c0_11] : memref<400x128xf32, #tpu.memory_space<vmem>>, vector<400x128xf32>
    tpu.vector_store %arg4[%c0_10, %c0_11], %19 {strides = array<i32>} : memref<400x128xf32, #tpu.memory_space<vmem>>, vector<400x128xf32>,
    return
  }
  func.func @transform_0(%arg0: i32) -> (i32, i32) {
    %c0_i32 = arith.constant 0 : i32
    %c0_i32_0 = arith.constant 0 : i32
    return %arg0, %c0_i32 : i32, i32
  }
  func.func @transform_1(%arg0: i32) -> (i32, i32) {
    %c0_i32 = arith.constant 0 : i32
    %c0_i32_0 = arith.constant 0 : i32
    %c0_i32_1 = arith.constant 0 : i32
    return %c0_i32, %c0_i32_0 : i32, i32
  }
  func.func @transform_2(%arg0: i32) -> (i32, i32) {
    %c0_i32 = arith.constant 0 : i32
    %c0_i32_0 = arith.constant 0 : i32
    %c0_i32_1 = arith.constant 0 : i32
    return %c0_i32, %c0_i32_0 : i32, i32
  }
  func.func @transform_3(%arg0: i32) -> (i32, i32) {
    %c0_i32 = arith.constant 0 : i32
    %c0_i32_0 = arith.constant 0 : i32
    return %arg0, %c0_i32 : i32, i32
  }
}

</mosaic_0001>

<bundles_post_ra>
// kernel: decoder_forward.4
= control target key start
LH: loop header
LB: loop body
LE: loop exit
PB: predicated region body
PF: predicated region fallthrough
CT: control target
= control target key end

     0   :  { %9 = vsyncpa [#allocation3], 0  ;;  %s680_s15 = smov [#allocation2]   ;;  %s870_s0 = inlined_call_operand.vmem [shape: bf16[4,20], index: 0, kind: input, shape index: {}]   ;;  %s871_s1 = inlined_call_operand.hbm [shape: bf16[20,1000], index: 1, kind: input, shape index: {}]   ;;  %s872_s2 = inlined_call_operand.vmem [shape: f32[1,1000], index: 2, kind: input, shape index: {}]   ;;  %s873_s3 = inlined_call_operand.vmem [shape: f32[1,1000], index: 3, kind: input, shape index: {}]   ;;  %s874_s4 = inlined_call_operand.vmem [shape: f32[4,1000], index: 4, kind: output, shape index: {}]  }
   0x1   :  { %s17_s16 = sshll.u32 %s680_s15, 4  ;;  %s656_s19 = scalar_lea.hbm %s871_s1, 1536  ;;  %s18_s16 = int_to_ptr.vmem [resolvable:$true] %s17_s16 }
   0x2   :  { %p657_p0 = scmp.ne.s32.totalorder %s871_s1, %s656_s19  ;;  %p660_p1 = scmp.lt.u32.totalorder %s656_s19, %s871_s1 }
   0x4   :  { %p662_p2 = pnand %p660_p1, %p657_p0 }
   0x6   :  { %665 = shalt.err (!%p662_p2)
}
   0x7   :  { %s666_s24 = scalar_lea.vmem %s18_s16, 1536  ;;  %p671_p4 = scmp.lt.s32.totalorder %s18_s16, %s18_s16 }
   0x8   :  { %p667_p3 = scmp.ne.s32.totalorder %s18_s16, %s666_s24  ;;  %p672_p5 = scmp.lt.s32.totalorder %s666_s24, %s666_s24 }
   0xa   :  { %p673_p6 = por %p672_p5, %p671_p4 }
   0xc   :  { %p674_p7 = pnand %p673_p6, %p667_p3 }
   0xe   :  { %677 = shalt.err (!%p674_p7)
}
   0xf   :  { %s681_s25 = smov 512   ;;  %s682_s26 = smov 32  }
  0x10   :  { %23 = dma.hbm_to_vmem [thread:$0]  %s871_s1, 1536, %s18_s16, [#allocation3], %s681_s25, %s681_s25, %s682_s26  }
  0x11   :  { %678 = dma.done.wait [#allocation3], 1536  }
  0x12   :  { %679 = vsyncadd [#allocation3], 4294965760  ;;  %v683_v0 = vmov 0   ;;  %v33_v1 = vld [vmem:[#allocation2] sm:$0xff]  ;;  %v34_v3 = vld [vmem:[#allocation2 + $0x8] sm:$0xff]  ;;  %vm109_vm0 = vcmask 1041408   ;;  %v471_v60 = vlaneseq }
  0x13   :  { %166 = vmatprep.mubr.bf16.mxu0 %v683_v0  ;;  %207 = vmatprep.mubr.bf16.mxu1 %v683_v0  ;;  %v37_v2 = vld [vmem:[#allocation2 + $0x20] sm:$0xff]  ;;  %v38_v5 = vld [vmem:[#allocation2 + $0x28] sm:$0xff]  ;;  %v35_v13 = vld [vmem:[#allocation2 + $0x10] sm:$0xff]  ;;  %vm105_vm1 = vcmask 162816   ;;  %vm298_vm2 = vcmask 1043456   ;;  %vm348_vm3 = vcmask 846848  }
  0x14   :  { %v605_v4 = vcombine.high %v33_v1, %v37_v2  ;;  %v604_v6 = vcombine.low %v33_v1, %v37_v2  ;;  %v41_v7 = vld [vmem:[#allocation2 + $0x40] sm:$0x33]  ;;  %v42_v8 = vld [vmem:[#allocation2 + $0x48] sm:$0x33]  ;;  %v607_v9 = vcombine.high %v34_v3, %v38_v5  ;;  %v606_v10 = vcombine.low %v34_v3, %v38_v5  ;;  %v39_v14 = vld [vmem:[#allocation2 + $0x30] sm:$0xff] }
  0x15   :  { %v613_v11 = vcombine.high %v41_v7, %v41_v7  ;;  %v615_v12 = vcombine.high %v42_v8, %v42_v8  ;;  %v612_v15 = vcombine.low %v41_v7, %v41_v7  ;;  %v614_v16 = vcombine.low %v42_v8, %v42_v8  ;;  %v36_v17 = vld [vmem:[#allocation2 + $0x18] sm:$0xff]  ;;  %v43_v23 = vld [vmem:[#allocation2 + $0x50] sm:$0x33]  ;;  %v32_v25 = vld [vmem:[%s870_s0] sm:$0x3] }
  0x16   :  { %134 = vmatprep.subr.bf16.mxu0 %v605_v4  ;;  %v40_v18 = vld [vmem:[#allocation2 + $0x38] sm:$0xff]  ;;  %175 = vmatprep.subr.bf16.mxu1 %v607_v9  ;;  %v609_v20 = vcombine.high %v35_v13, %v39_v14  ;;  %v608_v26 = vcombine.low %v35_v13, %v39_v14  ;;  %v617_v28 = vcombine.high %v43_v23, %v43_v23  ;;  %vm596_vm4 = vcmask 850948  }
  0x17   :  { %135 = vmatpush1.bf16.msra.mxu0 %v604_v6  ;;  %176 = vmatpush1.bf16.msra.mxu1 %v606_v10  ;;  %v111_v19 = vsel %vm109_vm0, %v612_v15, 0  ;;  %v117_v21 = vsel %vm109_vm0, %v614_v16, 0  ;;  %v611_v22 = vcombine.high %v36_v17, %v40_v18  ;;  %v44_v24 = vld [vmem:[#allocation2 + $0x58] sm:$0x33]  ;;  %v610_v27 = vcombine.low %v36_v17, %v40_v18  ;;  %vm597_vm5 = vmor %vm596_vm4, %vm298_vm2 }
  0x18   :  { %620 = vmatprep.subr.msk.bf16.mxu0 %vm109_vm0, %v613_v11  ;;  %622 = vmatprep.subr.msk.bf16.mxu1 %vm109_vm0, %v615_v12  ;;  %v616_v29 = vcombine.low %v43_v23, %v43_v23  ;;  %v619_v30 = vcombine.high %v44_v24, %v44_v24  ;;  %v618_v31 = vcombine.low %v44_v24, %v44_v24 }
  0x1a   :  { %v123_v32 = vsel %vm109_vm0, %v616_v29, 0  ;;  %v129_v33 = vsel %vm109_vm0, %v618_v31, 0 }
  0x1b   :  { %137 = vmatpush1.bf16.msra.mxu0 %v111_v19  ;;  %178 = vmatpush1.bf16.msra.mxu1 %v117_v21 }
  0x1c   :  { %216 = vmatprep.subr.bf16.mxu0 %v609_v20  ;;  %257 = vmatprep.subr.bf16.mxu1 %v611_v22 }
  0x1e   :  { %621 = vmatmul.mubr.msk.bf16.vlgmr.msra.gmra.mrb[0].mxu0 %vm105_vm1, %v32_v25  ;;  %623 = vmatmul.mubr.msk.bf16.vlgmr.msra.gmra.mrb[0].mxu1 %vm105_vm1, %v32_v25 }
  0x1f   :  { %217 = vmatpush1.bf16.msra.mxu0 %v608_v26  ;;  %258 = vmatpush1.bf16.msra.mxu1 %v610_v27 }
  0x20   :  { %624 = vmatprep.subr.msk.bf16.mxu0 %vm109_vm0, %v617_v28  ;;  %626 = vmatprep.subr.msk.bf16.mxu1 %vm109_vm0, %v619_v30 }
  0x21   :  { %248 = vmatprep.mubr.bf16.mxu0 %v683_v0  ;;  %289 = vmatprep.mubr.bf16.mxu1 %v683_v0 }
  0x23   :  { %219 = vmatpush1.bf16.msra.mxu0 %v123_v32  ;;  %260 = vmatpush1.bf16.msra.mxu1 %v129_v33 }
  0x26   :  { %625 = vmatmul.mubr.msk.bf16.vlgmr.msra.gmra.mrb[4].mxu0 %vm105_vm1, %v32_v25  ;;  %627 = vmatmul.mubr.msk.bf16.vlgmr.msra.gmra.mrb[4].mxu1 %vm105_vm1, %v32_v25 }
  0xf1   :  { %v168_v34 = vpop.f32.mrb[0].mxu0  ;;  %v737_v36 = vpop.f32.mrb[0].mxu1 }
  0xf2   :  { %v299_v35 = vsel %vm298_vm2, %v168_v34, 0.0  ;;  %v739_v37 = vpop.f32.mrb[1].mxu0  ;;  %v313_v39 = vsel %vm298_vm2, %v737_v36, 0.0  ;;  %v745_v41 = vpop.f32.mrb[1].mxu1 }
  0xf3   :  { %v300_v38 = vrot.slane %v299_v35, 4  ;;  %v306_v40 = vsel %vm298_vm2, %v739_v37, 0.0  ;;  %v172_v42 = vpop.f32.mrb[2].mxu0  ;;  %v314_v43 = vrot.slane %v313_v39, 4  ;;  %v320_v45 = vsel %vm298_vm2, %v745_v41, 0.0  ;;  %v213_v46 = vpop.f32.mrb[2].mxu1 }
  0xf4   :  { %v307_v44 = vrot.slane %v306_v40, 4  ;;  %v173_v47 = vpop.f32.mrb[3].mxu0  ;;  %v321_v49 = vrot.slane %v320_v45, 4  ;;  %v214_v50 = vpop.f32.mrb[3].mxu1 }
  0xf5   :  { %v301_v48 = vadd.f32 %v300_v38, %v299_v35  ;;  %v315_v51 = vadd.f32 %v314_v43, %v313_v39 }
  0xf6   :  { %v308_v52 = vadd.f32 %v307_v44, %v306_v40  ;;  %v322_v54 = vadd.f32 %v321_v49, %v320_v45 }
  0xf7   :  { %v302_v53 = vrot.slane %v301_v48, 2  ;;  %v316_v55 = vrot.slane %v315_v51, 2 }
  0xf8   :  { %v309_v56 = vrot.slane %v308_v52, 2  ;;  %v323_v58 = vrot.slane %v322_v54, 2 }
  0xf9   :  { %v303_v57 = vadd.f32 %v302_v53, %v301_v48  ;;  %v749_v59 = vpop.f32.mrb[4].mxu0  ;;  %v317_v61 = vadd.f32 %v316_v55, %v315_v51  ;;  %v753_v0 = vpop.f32.mrb[4].mxu1 }
  0xfa   :  { %v310_v62 = vadd.f32 %v309_v56, %v308_v52  ;;  %v327_v63 = vsel %vm298_vm2, %v749_v59, 0.0  ;;  %v755_v1 = vpop.f32.mrb[5].mxu0  ;;  %v324_v3 = vadd.f32 %v323_v58, %v322_v54  ;;  %v341_v5 = vsel %vm298_vm2, %v753_v0, 0.0  ;;  %v759_v6 = vpop.f32.mrb[5].mxu1 }
  0xfb   :  { %v304_v2 = vrot.slane %v303_v57, 1  ;;  %v328_v4 = vrot.slane %v327_v63, 4  ;;  %v254_v7 = vpop.f32.mrb[6].mxu0  ;;  %v318_v8 = vrot.slane %v317_v61, 1  ;;  %v342_v10 = vrot.slane %v341_v5, 4  ;;  %v295_v12 = vpop.f32.mrb[6].mxu1 }
  0xfc   :  { %v311_v9 = vrot.slane %v310_v62, 1  ;;  %v334_v11 = vsel %vm298_vm2, %v755_v1, 0.0  ;;  %v255_v13 = vpop.f32.mrb[7].mxu0  ;;  %v325_v15 = vrot.slane %v324_v3, 1  ;;  %v296_v18 = vpop.f32.mrb[7].mxu1  ;;  %v349_v22 = vsel %vm348_vm3, %v759_v6, 0.0 }
  0xfd   :  { %v305_v14 = vadd.f32 %v304_v2, %v303_v57  ;;  %v329_v16 = vadd.f32 %v328_v4, %v327_v63  ;;  %v335_v17 = vrot.slane %v334_v11, 4  ;;  %v319_v19 = vadd.f32 %v318_v8, %v317_v61 }
  0xfe   :  { %v312_v20 = vadd.f32 %v311_v9, %v310_v62  ;;  %v343_v21 = vadd.f32 %v342_v10, %v341_v5  ;;  %v326_v24 = vadd.f32 %v325_v15, %v324_v3  ;;  %v350_v30 = vrot.slane %v349_v22, 4 }
  0xff   :  { %v357_v23 = vmul.f32 0.25, %v305_v14  ;;  %v330_v25 = vrot.slane %v329_v16, 2  ;;  %v336_v26 = vadd.f32 %v335_v17, %v334_v11  ;;  %v359_v27 = vmul.f32 0.25, %v319_v19 }
 0x100   :  { %v358_v28 = vmul.f32 0.25, %v312_v20  ;;  %v344_v29 = vrot.slane %v343_v21, 2  ;;  %v360_v32 = vmul.f32 0.25, %v326_v24  ;;  %v351_v42 = vadd.f32 %v350_v30, %v349_v22 }
 0x101   :  { %v765_v31 = vsub.f32 %v168_v34, %v357_v23  ;;  %v331_v33 = vadd.f32 %v330_v25, %v329_v16  ;;  %v337_v35 = vrot.slane %v336_v26, 2  ;;  %v768_v38 = vsub.f32 %v737_v36, %v359_v27 }
 0x102   :  { %v771_v39 = vsub.f32 %v739_v37, %v358_v28  ;;  %v345_v40 = vadd.f32 %v344_v29, %v343_v21  ;;  %v776_v44 = vsub.f32 %v745_v41, %v360_v32  ;;  %v352_v48 = vrot.slane %v351_v42, 2 }
 0x103   :  { %v373_v43 = vmul.f32 %v765_v31, %v765_v31  ;;  %v332_v45 = vrot.slane %v331_v33, 1  ;;  %v338_v34 = vadd.f32 %v337_v35, %v336_v26  ;;  %v375_v46 = vmul.f32 %v768_v38, %v768_v38 }
 0x104   :  { %v374_v36 = vmul.f32 %v771_v39, %v771_v39  ;;  %v346_v47 = vrot.slane %v345_v40, 1  ;;  %v376_v49 = vmul.f32 %v776_v44, %v776_v44  ;;  %v353_v7 = vadd.f32 %v352_v48, %v351_v42 }
 0x105   :  { %v381_v37 = vsel %vm298_vm2, %v373_v43, 0.0  ;;  %v333_v50 = vadd.f32 %v332_v45, %v331_v33  ;;  %v339_v51 = vrot.slane %v338_v34, 1  ;;  %v395_v41 = vsel %vm298_vm2, %v375_v46, 0.0 }
 0x106   :  { %v382_v52 = vrot.slane %v381_v37, 4  ;;  %v388_v53 = vsel %vm298_vm2, %v374_v36, 0.0  ;;  %v347_v54 = vadd.f32 %v346_v47, %v345_v40  ;;  %v396_v55 = vrot.slane %v395_v41, 4 }
 0x107   :  { %v389_v56 = vrot.slane %v388_v53, 4  ;;  %v402_v57 = vsel %vm298_vm2, %v376_v49, 0.0  ;;  %v361_v58 = vmul.f32 0.25, %v333_v50  ;;  %v340_v2 = vadd.f32 %v339_v51, %v338_v34 }
 0x108   :  { %v383_v61 = vadd.f32 %v382_v52, %v381_v37  ;;  %v403_v62 = vrot.slane %v402_v57, 4  ;;  %v363_v63 = vmul.f32 0.25, %v347_v54  ;;  %v397_v3 = vadd.f32 %v396_v55, %v395_v41 }
 0x109   :  { %v390_v4 = vadd.f32 %v389_v56, %v388_v53  ;;  %v789_v5 = vsub.f32 %v749_v59, %v361_v58  ;;  %v362_v11 = vmul.f32 0.25, %v340_v2  ;;  %v354_v15 = vrot.slane %v353_v7, 1 }
 0x10a   :  { %v384_v8 = vrot.slane %v383_v61, 2  ;;  %v404_v9 = vadd.f32 %v403_v62, %v402_v57  ;;  %v792_v10 = vsub.f32 %v753_v0, %v363_v63  ;;  %v398_v12 = vrot.slane %v397_v3, 2 }
 0x10b   :  { %v391_v13 = vrot.slane %v390_v4, 2  ;;  %v377_v14 = vmul.f32 %v789_v5, %v789_v5  ;;  %v799_v59 = vsub.f32 %v755_v1, %v362_v11  ;;  %v355_v21 = vadd.f32 %v354_v15, %v353_v7 }
 0x10c   :  { %v385_v16 = vadd.f32 %v384_v8, %v383_v61  ;;  %v405_v17 = vrot.slane %v404_v9, 2  ;;  %v379_v18 = vmul.f32 %v792_v10, %v792_v10  ;;  %v399_v19 = vadd.f32 %v398_v12, %v397_v3 }
 0x10d   :  { %v392_v20 = vadd.f32 %v391_v13, %v390_v4  ;;  %v409_v0 = vsel %vm298_vm2, %v377_v14, 0.0  ;;  %v378_v29 = vmul.f32 %v799_v59, %v799_v59  ;;  %v364_v33 = vmul.f32 0.25, %v355_v21 }
 0x10e   :  { %v386_v22 = vrot.slane %v385_v16, 1  ;;  %v406_v23 = vadd.f32 %v405_v17, %v404_v9  ;;  %v410_v24 = vrot.slane %v409_v0, 4  ;;  %v423_v25 = vsel %vm298_vm2, %v379_v18, 0.0 }
 0x10f   :  { %v400_v26 = vrot.slane %v399_v19, 1  ;;  %v393_v27 = vrot.slane %v392_v20, 1  ;;  %v424_v28 = vrot.slane %v423_v25, 4  ;;  %v416_v43 = vsel %vm298_vm2, %v378_v29, 0.0 }
 0x110   :  { %v387_v30 = vadd.f32 %v386_v22, %v385_v16  ;;  %v407_v32 = vrot.slane %v406_v23, 1  ;;  %v411_v1 = vadd.f32 %v410_v24, %v409_v0  ;;  %v417_v36 = vrot.slane %v416_v43, 4 }
 0x111   :  { %v401_v35 = vadd.f32 %v400_v26, %v399_v19  ;;  %v394_v40 = vadd.f32 %v393_v27, %v392_v20  ;;  %v425_v42 = vadd.f32 %v424_v28, %v423_v25  ;;  %v807_v49 = vsub.f32 %v759_v6, %v364_v33  ;;  %v826_v20 = vld [vmem:[%s873_s3] sm:$0xff] }
 0x112   :  { %v437_v45 = vmul.f32 0.25, %v387_v30  ;;  %v408_v34 = vadd.f32 %v407_v32, %v406_v23  ;;  %v412_v46 = vrot.slane %v411_v1, 2  ;;  %v418_v41 = vadd.f32 %v417_v36, %v416_v43 }
 0x113   :  { %v439_v47 = vmul.f32 0.25, %v401_v35  ;;  %v438_v48 = vmul.f32 0.25, %v394_v40  ;;  %v426_v37 = vrot.slane %v425_v42, 2  ;;  %v380_v56 = vmul.f32 %v807_v49, %v807_v49 }
 0x114   :  { %v445_v50 = vadd.f32 1e-05, %v437_v45  ;;  %v440_v51 = vmul.f32 0.25, %v408_v34  ;;  %v413_v52 = vadd.f32 %v412_v46, %v411_v1  ;;  %v419_v61 = vrot.slane %v418_v41, 2 }
 0x115   :  { %v447_v53 = vadd.f32 1e-05, %v439_v47  ;;  %v446_v54 = vadd.f32 1e-05, %v438_v48  ;;  %v427_v55 = vadd.f32 %v426_v37, %v425_v42  ;;  %v812_v62 = vshrl.u32 %v471_v60, 7  ;;  %v819_v60 = vld [vmem:[%s872_s2] sm:$0xff] }
 0x116   :  { %640 = vrsqrt.f32 %v445_v50  ;;  %v448_v57 = vadd.f32 1e-05, %v440_v51  ;;  %v414_v58 = vrot.slane %v413_v52, 1  ;;  %v430_v63 = vsel %vm348_vm3, %v380_v56, 0.0 }
 0x117   :  { %642 = vrsqrt.f32 %v447_v53  ;;  %v428_v6 = vrot.slane %v427_v55, 1  ;;  %v420_v3 = vadd.f32 %v419_v61, %v418_v41  ;;  %v431_v4 = vrot.slane %v430_v63, 4 }
 0x118   :  { %644 = vrsqrt.f32 %v446_v54  ;;  %v415_v2 = vadd.f32 %v414_v58, %v413_v52  ;;  %v473_v12 = vsub.s32 0, %v812_v62  ;;  %v481_v14 = vsub.s32 2, %v812_v62 }
 0x119   :  { %646 = vrsqrt.f32 %v448_v57  ;;  %v429_v7 = vadd.f32 %v428_v6, %v427_v55  ;;  %v421_v9 = vrot.slane %v420_v3, 1  ;;  %v432_v11 = vadd.f32 %v431_v4, %v430_v63 }
 0x11a   :  { %v441_v8 = vmul.f32 0.25, %v415_v2  ;;  %v477_v18 = vsub.s32 1, %v812_v62  ;;  %v485_v0 = vsub.s32 3, %v812_v62  ;;  %v474_v23 = vrot.slane %v819_v60, %v473_v12 }
 0x11b   :  { %v443_v13 = vmul.f32 0.25, %v429_v7  ;;  %v422_v16 = vadd.f32 %v421_v9, %v420_v3  ;;  %v433_v17 = vrot.slane %v432_v11, 2  ;;  %v482_v25 = vrot.slane %v819_v60, %v481_v14 }
 0x11c   :  { %v449_v15 = vadd.f32 1e-05, %v441_v8  ;;  %v524_v30 = vrot.slane %v826_v20, %v473_v12  ;;  %v532_v32 = vrot.slane %v826_v20, %v481_v14  ;;  %v478_v1 = vrot.slane %v819_v60, %v477_v18 }
 0x11d   :  { %v451_v19 = vadd.f32 1e-05, %v443_v13  ;;  %v442_v21 = vmul.f32 0.25, %v422_v16  ;;  %v434_v22 = vadd.f32 %v433_v17, %v432_v11  ;;  %v486_v40 = vrot.slane %v819_v60, %v485_v0 }
 0x11e   :  { %648 = vrsqrt.f32 %v449_v15  ;;  %v528_v46 = vrot.slane %v826_v20, %v477_v18  ;;  %v536_v48 = vrot.slane %v826_v20, %v485_v0  ;;  %v497_v41 = vsub.s32 6, %v812_v62 }
 0x11f   :  { %650 = vrsqrt.f32 %v451_v19  ;;  %v450_v26 = vadd.f32 1e-05, %v442_v21  ;;  %v435_v27 = vrot.slane %v434_v22, 1  ;;  %v493_v56 = vsub.s32 5, %v812_v62 }
 0x120   :  { %v641_v24 = vpop.eup %640  ;;  %v498_v4 = vrot.slane %v819_v60, %v497_v41  ;;  %v501_v16 = vsub.s32 7, %v812_v62  ;;  %v548_v17 = vrot.slane %v826_v20, %v497_v41 }
 0x121   :  { %v643_v28 = vpop.eup %642  ;;  %v461_v29 = vmul.f32 %v641_v24, %v765_v31  ;;  %652 = vrsqrt.f32 %v450_v26  ;;  %v436_v42 = vadd.f32 %v435_v27, %v434_v22  ;;  %v489_v31 = vsub.s32 4, %v812_v62 }
 0x122   :  { %v645_v33 = vpop.eup %644  ;;  %v463_v35 = vmul.f32 %v643_v28, %v768_v38  ;;  %v494_v11 = vrot.slane %v819_v60, %v493_v56  ;;  %v544_v15 = vrot.slane %v826_v20, %v493_v56  ;;  %v502_v21 = vrot.slane %v819_v60, %v501_v16 }
 0x123   :  { %v647_v43 = vpop.eup %646  ;;  %v511_v45 = vmul.f32 %v474_v23, %v461_v29  ;;  %v462_v34 = vmul.f32 %v645_v33, %v771_v39  ;;  %v444_v37 = vmul.f32 0.25, %v436_v42  ;;  %v490_v39 = vrot.slane %v819_v60, %v489_v31 }
 0x124   :  { %v513_v36 = vmul.f32 %v482_v25, %v463_v35  ;;  %v464_v47 = vmul.f32 %v647_v43, %v776_v44  ;;  %v540_v2 = vrot.slane %v826_v20, %v489_v31  ;;  %v552_v25 = vrot.slane %v826_v20, %v501_v16 }
 0x125   :  { %v561_v50 = vadd.f32 %v524_v30, %v511_v45  ;;  %v512_v38 = vmul.f32 %v478_v1, %v462_v34  ;;  %v452_v53 = vadd.f32 1e-05, %v444_v37 }
 0x126   :  { %v563_v51 = vadd.f32 %v532_v32, %v513_v36  ;;  %v514_v52 = vmul.f32 %v486_v40, %v464_v47 }
 0x127   :  { %v569_v54 = vmax.f32 %v561_v50, 0.0  ;;  %v562_v55 = vadd.f32 %v528_v46, %v512_v38  ;;  %654 = vrsqrt.f32 %v452_v53 }
 0x128   :  { %v649_v57 = vpop.eup %648  ;;  %v571_v58 = vmax.f32 %v563_v51, 0.0  ;;  %v564_v61 = vadd.f32 %v536_v48, %v514_v52 }
 0x129   :  { %v651_v44 = vpop.eup %650  ;;  %v570_v6 = vmax.f32 %v562_v55, 0.0  ;;  %v465_v63 = vmul.f32 %v649_v57, %v789_v5 }
 0x12a   :  { %v572_v3 = vmax.f32 %v564_v61, 0.0  ;;  %v467_v9 = vmul.f32 %v651_v44, %v792_v10 }
 0x12b   :  { %v585_v7 = vcombine.low %v569_v54, %v570_v6  ;;  %v515_v8 = vmul.f32 %v490_v39, %v465_v63  ;;  %v653_v12 = vpop.eup %652 }
 0x12c   :  { %v586_v13 = vcombine.low %v571_v58, %v572_v3  ;;  %v466_v5 = vmul.f32 %v653_v12, %v799_v59  ;;  %v517_v10 = vmul.f32 %v498_v4, %v467_v9 }
 0x12d   :  { %593 = vst [vmem:[%s874_s4] sm:$0xff] %v585_v7  ;;  %v565_v14 = vadd.f32 %v540_v2, %v515_v8 }
 0x12e   :  { %594 = vst [vmem:[%s874_s4 + $0x8] sm:$0xff] %v586_v13  ;;  %v516_v18 = vmul.f32 %v494_v11, %v466_v5  ;;  %v567_v23 = vadd.f32 %v548_v17, %v517_v10 }
 0x12f   :  { %v573_v19 = vmax.f32 %v565_v14, 0.0 }
 0x130   :  { %v566_v0 = vadd.f32 %v544_v15, %v516_v18  ;;  %v575_v27 = vmax.f32 %v567_v23, 0.0 }
 0x131   :  { %v655_v22 = vpop.eup %654 }
 0x132   :  { %v574_v24 = vmax.f32 %v566_v0, 0.0  ;;  %v468_v59 = vmul.f32 %v655_v22, %v807_v49 }
 0x134   :  { %v587_v62 = vcombine.low %v573_v19, %v574_v24  ;;  %v518_v26 = vmul.f32 %v502_v21, %v468_v59 }
 0x136   :  { %595 = vst [vmem:[%s874_s4 + $0x10] sm:$0xff] %v587_v62  ;;  %v568_v28 = vadd.f32 %v552_v25, %v518_v26 }
 0x138   :  { %v576_v29 = vmax.f32 %v568_v28, 0.0 }
 0x13a   :  { %v588_v60 = vcombine.low %v575_v27, %v576_v29 }
 0x13c   :  { %598 = vst.msk [vmem:[%s874_s4 + $0x18] sm:$0xff] %vm597_vm5, %v588_v60 }
 0x13d   :  { %603 = vsyncpa [#allocation3], 1 }

// kernel: decoder_forward.5
= control target key start
LH: loop header
LB: loop body
LE: loop exit
PB: predicated region body
PF: predicated region fallthrough
CT: control target
= control target key end

     0   :  { %9 = vsyncpa [#allocation3], 0  ;;  %s4990_s15 = smov [#allocation2]   ;;  %s5203_s0 = inlined_call_operand.vmem [shape: bf16[4,1000], index: 0, kind: input, shape index: {}]   ;;  %s5204_s1 = inlined_call_operand.hbm [shape: bf16[1000,784], index: 1, kind: input, shape index: {}]   ;;  %s5205_s2 = inlined_call_operand.vmem [shape: f32[1,784], index: 2, kind: input, shape index: {}]   ;;  %s5206_s3 = inlined_call_operand.vmem [shape: f32[1,784], index: 3, kind: input, shape index: {}]   ;;  %s5207_s4 = inlined_call_operand.vmem [shape: f32[4,784], index: 4, kind: output, shape index: {}]  }
   0x1   :  { %s17_s16 = sshll.u32 %s4990_s15, 4  ;;  %s4966_s19 = scalar_lea.hbm %s5204_s1, 56000  ;;  %s18_s16 = int_to_ptr.vmem [resolvable:$true] %s17_s16 }
   0x2   :  { %p4967_p0 = scmp.ne.s32.totalorder %s5204_s1, %s4966_s19  ;;  %p4970_p1 = scmp.lt.u32.totalorder %s4966_s19, %s5204_s1 }
   0x4   :  { %p4972_p2 = pnand %p4970_p1, %p4967_p0 }
   0x6   :  { %4975 = shalt.err (!%p4972_p2)
}
   0x7   :  { %s4976_s24 = scalar_lea.vmem %s18_s16, 56000  ;;  %p4981_p4 = scmp.lt.s32.totalorder %s18_s16, %s18_s16 }
   0x8   :  { %p4977_p3 = scmp.ne.s32.totalorder %s18_s16, %s4976_s24  ;;  %p4982_p5 = scmp.lt.s32.totalorder %s4976_s24, %s4976_s24 }
   0xa   :  { %p4983_p6 = por %p4982_p5, %p4981_p4 }
   0xc   :  { %p4984_p7 = pnand %p4983_p6, %p4977_p3 }
   0xe   :  { %4987 = shalt.err (!%p4984_p7)
}
   0xf   :  { %s4991_s25 = smov 448   ;;  %s4992_s26 = smov 28  }
  0x10   :  { %23 = dma.hbm_to_vmem [thread:$0]  %s5204_s1, 56000, %s18_s16, [#allocation3], %s4991_s25, %s4991_s25, %s4992_s26  }
  0x11   :  { %4988 = dma.done.wait [#allocation3], 56000  }
  0x12   :  { %4989 = vsyncadd [#allocation3], 4294911296  ;;  %v4323_v0 = vld [vmem:[#allocation2 + $0x4] ss:$28 sps:$4 sm:$0xff]   ;;  %v4329_v4 = vld [vmem:[#allocation2 + $0x3c] ss:$28 sps:$4 sm:$0xff]   ;;  %v540_v36 = vlaneseq }
  0x13   :  { %v4325_v1 = vld [vmem:[#allocation2 + $0xa84] ss:$28 sps:$4 sm:$0xff]   ;;  %2853 = vmatprep.subr.bf16.mxu0 %v4323_v0  ;;  %v4331_v5 = vld [vmem:[#allocation2 + $0xabc] ss:$28 sps:$4 sm:$0xff]   ;;  %v4335_v8 = vld [vmem:[#allocation2 + $0x74] ss:$28 sps:$4 sm:$0xff]  }
  0x14   :  { %v4327_v2 = vld [vmem:[#allocation2] ss:$28 sps:$4 sm:$0xff]   ;;  %2976 = vmatprep.subr.bf16.mxu1 %v4325_v1  ;;  %v4333_v6 = vld [vmem:[#allocation2 + $0x38] ss:$28 sps:$4 sm:$0xff]   ;;  %v4339_v10 = vld [vmem:[#allocation2 + $0x70] ss:$28 sps:$4 sm:$0xff]  }
  0x15   :  { %v4328_v3 = vld [vmem:[#allocation2 + $0xa80] ss:$28 sps:$4 sm:$0xff]   ;;  %2854 = vmatpush1.bf16.msra.mxu0 %v4327_v2  ;;  %v4334_v7 = vld [vmem:[#allocation2 + $0xab8] ss:$28 sps:$4 sm:$0xff]   ;;  %v4340_v11 = vld [vmem:[#allocation2 + $0xaf0] ss:$28 sps:$4 sm:$0xff]  }
  0x16   :  { %2977 = vmatpush1.bf16.msra.mxu1 %v4328_v3  ;;  %2855 = vmatprep.subr.bf16.mxu0 %v4329_v4  ;;  %v4337_v9 = vld [vmem:[#allocation2 + $0xaf4] ss:$28 sps:$4 sm:$0xff]   ;;  %v4341_v12 = vld [vmem:[#allocation2 + $0xac] ss:$28 sps:$4 sm:$0xff]   ;;  %v4347_v16 = vld [vmem:[#allocation2 + $0xe4] ss:$28 sps:$4 sm:$0xff]  }
  0x17   :  { %2978 = vmatprep.subr.bf16.mxu1 %v4331_v5  ;;  %v4343_v13 = vld [vmem:[#allocation2 + $0xb2c] ss:$28 sps:$4 sm:$0xff]   ;;  %v4349_v17 = vld [vmem:[#allocation2 + $0xb64] ss:$28 sps:$4 sm:$0xff]   ;;  %v4353_v20 = vld [vmem:[#allocation2 + $0x11c] ss:$28 sps:$4 sm:$0xff]  }
  0x18   :  { %v4345_v14 = vld [vmem:[#allocation2 + $0xa8] ss:$28 sps:$4 sm:$0xff]   ;;  %v4351_v18 = vld [vmem:[#allocation2 + $0xe0] ss:$28 sps:$4 sm:$0xff]   ;;  %v4357_v22 = vld [vmem:[#allocation2 + $0x118] ss:$28 sps:$4 sm:$0xff]  }
  0x19   :  { %2856 = vmatpush1.bf16.msra.mxu0 %v4333_v6  ;;  %v4346_v15 = vld [vmem:[#allocation2 + $0xb28] ss:$28 sps:$4 sm:$0xff]   ;;  %v4352_v19 = vld [vmem:[#allocation2 + $0xb60] ss:$28 sps:$4 sm:$0xff]   ;;  %v4358_v23 = vld [vmem:[#allocation2 + $0xb98] ss:$28 sps:$4 sm:$0xff]  }
  0x1a   :  { %2979 = vmatpush1.bf16.msra.mxu1 %v4334_v7  ;;  %2857 = vmatprep.subr.bf16.mxu0 %v4335_v8  ;;  %v4355_v21 = vld [vmem:[#allocation2 + $0xb9c] ss:$28 sps:$4 sm:$0xff]   ;;  %v4359_v24 = vld [vmem:[#allocation2 + $0x154] ss:$28 sps:$4 sm:$0xff]   ;;  %v4365_v28 = vld [vmem:[#allocation2 + $0x18c] ss:$28 sps:$4 sm:$0xff]  }
  0x1b   :  { %2980 = vmatprep.subr.bf16.mxu1 %v4337_v9  ;;  %v4361_v25 = vld [vmem:[#allocation2 + $0xbd4] ss:$28 sps:$4 sm:$0xff]   ;;  %v4367_v29 = vld [vmem:[#allocation2 + $0xc0c] ss:$28 sps:$4 sm:$0xff]   ;;  %v4371_v32 = vld [vmem:[#allocation2 + $0x1c4] ss:$28 sps:$4 sm:$0xff]  }
  0x1c   :  { %v4363_v26 = vld [vmem:[#allocation2 + $0x150] ss:$28 sps:$4 sm:$0xff]   ;;  %v4369_v30 = vld [vmem:[#allocation2 + $0x188] ss:$28 sps:$4 sm:$0xff]   ;;  %v4993_v34 = vmov 1983009808  }
  0x1d   :  { %2858 = vmatpush1.bf16.msra.mxu0 %v4339_v10  ;;  %v4364_v27 = vld [vmem:[#allocation2 + $0xbd0] ss:$28 sps:$4 sm:$0xff]   ;;  %v4370_v31 = vld [vmem:[#allocation2 + $0xc08] ss:$28 sps:$4 sm:$0xff]   ;;  %v538_v35 = vunpack.c.l.s4 %v4993_v34  ;;  %v4375_v37 = vld [vmem:[#allocation2 + $0x1c0] ss:$28 sps:$4 sm:$0xff]  }
  0x1e   :  { %2981 = vmatpush1.bf16.msra.mxu1 %v4340_v11  ;;  %2859 = vmatprep.subr.bf16.mxu0 %v4341_v12  ;;  %v4373_v33 = vld [vmem:[#allocation2 + $0xc44] ss:$28 sps:$4 sm:$0xff]   ;;  %v4377_v39 = vld [vmem:[#allocation2 + $0x1fc] ss:$28 sps:$4 sm:$0xff]   ;;  %v5032_v42 = vshrl.u32 %v540_v36, 7  ;;  %v33_v49 = vld [vmem:[%s5203_s0 + $0x8] sm:$0xff] }
  0x1f   :  { %2982 = vmatprep.subr.bf16.mxu1 %v4343_v13  ;;  %v4376_v38 = vld [vmem:[#allocation2 + $0xc40] ss:$28 sps:$4 sm:$0xff]   ;;  %v539_v41 = vunpack.c.0.s8 %v538_v35  ;;  %v4381_v43 = vld [vmem:[#allocation2 + $0x1f8] ss:$28 sps:$4 sm:$0xff]   ;;  %v4387_v47 = vld [vmem:[#allocation2 + $0x230] ss:$28 sps:$4 sm:$0xff]   ;;  %v553_v51 = vcombine.high %v33_v49, %v33_v49 }
  0x20   :  { %v4379_v40 = vld [vmem:[#allocation2 + $0xc7c] ss:$28 sps:$4 sm:$0xff]   ;;  %v4383_v45 = vld [vmem:[#allocation2 + $0x234] ss:$28 sps:$4 sm:$0xff]   ;;  %v4389_v52 = vld [vmem:[#allocation2 + $0x26c] ss:$28 sps:$4 sm:$0xff]  }
  0x21   :  { %2860 = vmatpush1.bf16.msra.mxu0 %v4345_v14  ;;  %v4382_v44 = vld [vmem:[#allocation2 + $0xc78] ss:$28 sps:$4 sm:$0xff]   ;;  %v5035_v48 = vsub.s32 %v539_v41, %v5032_v42  ;;  %v4388_v50 = vld [vmem:[#allocation2 + $0xcb0] ss:$28 sps:$4 sm:$0xff]   ;;  %v32_v54 = vld [vmem:[%s5203_s0] sm:$0xff]  ;;  %vm2827_vm0 = vcmask 850944  }
  0x22   :  { %2983 = vmatpush1.bf16.msra.mxu1 %v4346_v15  ;;  %2861 = vmatprep.subr.bf16.mxu0 %v4347_v16  ;;  %v4385_v46 = vld [vmem:[#allocation2 + $0xcb4] ss:$28 sps:$4 sm:$0xff]   ;;  %v4391_v53 = vld [vmem:[#allocation2 + $0xcec] ss:$28 sps:$4 sm:$0xff]   ;;  %v4395_v59 = vld [vmem:[#allocation2 + $0x2a4] ss:$28 sps:$4 sm:$0xff]   ;;  %v536_v13 = vcombine.high %v32_v54, %v32_v54 }
  0x23   :  { %2984 = vmatprep.subr.bf16.mxu1 %v4349_v17  ;;  %v5044_v55 = vrot.slane %v553_v51, %v5035_v48  ;;  %v5047_v56 = vrot.slane %v32_v54, %v5035_v48  ;;  %v4393_v57 = vld [vmem:[#allocation2 + $0x268] ss:$28 sps:$4 sm:$0xff]   ;;  %v4399_v63 = vld [vmem:[#allocation2 + $0x2a0] ss:$28 sps:$4 sm:$0xff]   ;;  %v530_v3 = vld [vmem:[#allocation2 + $0xd90] sm:$0xff]  ;;  %vm2831_vm1 = vcmask 1043456  }
  0x24   :  { %v4394_v58 = vld [vmem:[#allocation2 + $0xce8] ss:$28 sps:$4 sm:$0xff]   ;;  %v4400_v0 = vld [vmem:[#allocation2 + $0xd20] ss:$28 sps:$4 sm:$0xff]   ;;  %v4405_v4 = vld [vmem:[#allocation2 + $0x2d8] ss:$28 sps:$4 sm:$0xff]   ;;  %v4205_v7 = vcombine.high %v530_v3, %v530_v3  ;;  %v4204_v8 = vcombine.low %v530_v3, %v530_v3 }
  0x25   :  { %2862 = vmatpush1.bf16.msra.mxu0 %v4351_v18  ;;  %v5051_v60 = vcombine.high %v5044_v55, %v5044_v55  ;;  %v5055_v61 = vcombine.high %v5047_v56, %v5047_v56  ;;  %v4397_v62 = vld [vmem:[#allocation2 + $0xd24] ss:$28 sps:$4 sm:$0xff]   ;;  %v4401_v1 = vld [vmem:[#allocation2 + $0x2dc] ss:$28 sps:$4 sm:$0xff]   ;;  %v4407_v6 = vld [vmem:[#allocation2 + $0x314] ss:$28 sps:$4 sm:$0xff]   ;;  %v5063_v18 = vrot.slane %v536_v13, %v5035_v48 }
  0x26   :  { %2985 = vmatpush1.bf16.msra.mxu1 %v4352_v19  ;;  %2863 = vmatprep.subr.bf16.mxu0 %v4353_v20  ;;  %v4403_v2 = vld [vmem:[#allocation2 + $0xd5c] ss:$28 sps:$4 sm:$0xff]   ;;  %v4410_v9 = vld [vmem:[#allocation2 + $0x310] ss:$28 sps:$4 sm:$0xff]   ;;  %v2833_v11 = vsel %vm2831_vm1, %v4204_v8, 0  ;;  %v5066_v19 = vrot.slane %v33_v49, %v5035_v48  ;;  %vm3547_vm2 = vcmask 125952  }
  0x27   :  { %2986 = vmatprep.subr.bf16.mxu1 %v4355_v21  ;;  %4212 = vmatprep.mubr.msk.bf16.mxu1 %vm2827_vm0, %v5051_v60  ;;  %v4406_v5 = vld [vmem:[#allocation2 + $0xd58] ss:$28 sps:$4 sm:$0xff]   ;;  %v4413_v10 = vld [vmem:[#allocation2 + $0x34c] ss:$28 sps:$4 sm:$0xff]   ;;  %v4421_v16 = vld [vmem:[#allocation2 + $0x384] ss:$28 sps:$4 sm:$0xff]  }
  0x28   :  { %2885 = vmatprep.mubr.bf16.mxu0 %v5055_v61  ;;  %v4417_v12 = vld [vmem:[#allocation2 + $0xc] ss:$28 sps:$4 sm:$0xff]   ;;  %v4424_v17 = vld [vmem:[#allocation2 + $0x44] ss:$28 sps:$4 sm:$0xff]   ;;  %v4449_v41 = vld [vmem:[#allocation2 + $0x498] ss:$28 sps:$4 sm:$0xff]  }
  0x29   :  { %2864 = vmatpush1.bf16.msra.mxu0 %v4357_v22  ;;  %v4415_v14 = vld [vmem:[#allocation2 + $0x8] ss:$28 sps:$4 sm:$0xff]   ;;  %v4419_v20 = vld [vmem:[#allocation2 + $0x380] ss:$28 sps:$4 sm:$0xff]   ;;  %v4482_v3 = vld [vmem:[#allocation2 + $0x270] ss:$28 sps:$4 sm:$0xff]  }
  0x2a   :  { %2987 = vmatpush1.bf16.msra.mxu1 %v4358_v23  ;;  %2865 = vmatprep.subr.bf16.mxu0 %v4359_v24  ;;  %v4418_v15 = vld [vmem:[#allocation2 + $0x348] ss:$28 sps:$4 sm:$0xff]   ;;  %v4422_v21 = vld [vmem:[#allocation2 + $0x40] ss:$28 sps:$4 sm:$0xff]   ;;  %v5072_v24 = vcombine.high %v5063_v18, %v5063_v18 }
  0x2b   :  { %2988 = vmatprep.subr.bf16.mxu1 %v4361_v25  ;;  %v4427_v22 = vld [vmem:[#allocation2 + $0x3bc] ss:$28 sps:$4 sm:$0xff]   ;;  %v4440_v34 = vld [vmem:[#allocation2 + $0xe8] ss:$28 sps:$4 sm:$0xff]  }
  0x2c   :  { %v4430_v23 = vld [vmem:[#allocation2 + $0x7c] ss:$28 sps:$4 sm:$0xff]   ;;  %v4445_v35 = vld [vmem:[#allocation2 + $0x464] ss:$28 sps:$4 sm:$0xff]   ;;  %v4463_v48 = vld [vmem:[#allocation2 + $0x50c] ss:$28 sps:$4 sm:$0xff]  }
  0x2d   :  { %2866 = vmatpush1.bf16.msra.mxu0 %v4363_v26  ;;  %v4425_v25 = vld [vmem:[#allocation2 + $0x3b8] ss:$28 sps:$4 sm:$0xff]   ;;  %v4448_v36 = vld [vmem:[#allocation2 + $0x124] ss:$28 sps:$4 sm:$0xff]   ;;  %v4466_v49 = vld [vmem:[#allocation2 + $0x1cc] ss:$28 sps:$4 sm:$0xff]  }
  0x2e   :  { %2989 = vmatpush1.bf16.msra.mxu1 %v4364_v27  ;;  %2867 = vmatprep.subr.bf16.mxu0 %v4365_v28  ;;  %v4428_v26 = vld [vmem:[#allocation2 + $0x78] ss:$28 sps:$4 sm:$0xff]   ;;  %v4464_v51 = vld [vmem:[#allocation2 + $0x1c8] ss:$28 sps:$4 sm:$0xff]   ;;  %v4467_v54 = vld [vmem:[#allocation2 + $0x540] ss:$28 sps:$4 sm:$0xff]  }
  0x2f   :  { %2990 = vmatprep.subr.bf16.mxu1 %v4367_v29  ;;  %v4433_v27 = vld [vmem:[#allocation2 + $0x3f4] ss:$28 sps:$4 sm:$0xff]   ;;  %v4493_v8 = vld [vmem:[#allocation2 + $0x624] ss:$28 sps:$4 sm:$0xff]   ;;  %v4502_v13 = vld [vmem:[#allocation2 + $0x31c] ss:$28 sps:$4 sm:$0xff]  }
  0x30   :  { %v4436_v28 = vld [vmem:[#allocation2 + $0xb4] ss:$28 sps:$4 sm:$0xff]  }
  0x31   :  { %2868 = vmatpush1.bf16.msra.mxu0 %v4369_v30  ;;  %v4431_v29 = vld [vmem:[#allocation2 + $0x3f0] ss:$28 sps:$4 sm:$0xff]  }
  0x32   :  { %2991 = vmatpush1.bf16.msra.mxu1 %v4370_v31  ;;  %2869 = vmatprep.subr.bf16.mxu0 %v4371_v32  ;;  %v4434_v30 = vld [vmem:[#allocation2 + $0xb0] ss:$28 sps:$4 sm:$0xff]  }
  0x33   :  { %2992 = vmatprep.subr.bf16.mxu1 %v4373_v33  ;;  %v4439_v31 = vld [vmem:[#allocation2 + $0x42c] ss:$28 sps:$4 sm:$0xff]  }
  0x34   :  { %v4442_v32 = vld [vmem:[#allocation2 + $0xec] ss:$28 sps:$4 sm:$0xff]  }
  0x35   :  { %2870 = vmatpush1.bf16.msra.mxu0 %v4375_v37  ;;  %v4437_v33 = vld [vmem:[#allocation2 + $0x428] ss:$28 sps:$4 sm:$0xff]   ;;  %v4443_v37 = vld [vmem:[#allocation2 + $0x460] ss:$28 sps:$4 sm:$0xff]  }
  0x36   :  { %2993 = vmatpush1.bf16.msra.mxu1 %v4376_v38  ;;  %2871 = vmatprep.subr.bf16.mxu0 %v4377_v39  ;;  %v4446_v38 = vld [vmem:[#allocation2 + $0x120] ss:$28 sps:$4 sm:$0xff]  }
  0x37   :  { %2994 = vmatprep.subr.bf16.mxu1 %v4379_v40  ;;  %v4451_v39 = vld [vmem:[#allocation2 + $0x49c] ss:$28 sps:$4 sm:$0xff]  }
  0x38   :  { %v4454_v40 = vld [vmem:[#allocation2 + $0x15c] ss:$28 sps:$4 sm:$0xff]  }
  0x39   :  { %2872 = vmatpush1.bf16.msra.mxu0 %v4381_v43  ;;  %v4452_v43 = vld [vmem:[#allocation2 + $0x158] ss:$28 sps:$4 sm:$0xff]  }
  0x3a   :  { %2995 = vmatpush1.bf16.msra.mxu1 %v4382_v44  ;;  %2873 = vmatprep.subr.bf16.mxu0 %v4383_v45  ;;  %v4457_v44 = vld [vmem:[#allocation2 + $0x4d4] ss:$28 sps:$4 sm:$0xff]  }
  0x3b   :  { %2996 = vmatprep.subr.bf16.mxu1 %v4385_v46  ;;  %v4460_v45 = vld [vmem:[#allocation2 + $0x194] ss:$28 sps:$4 sm:$0xff]  }
  0x3c   :  { %v4455_v46 = vld [vmem:[#allocation2 + $0x4d0] ss:$28 sps:$4 sm:$0xff]  }
  0x3d   :  { %2874 = vmatpush1.bf16.msra.mxu0 %v4387_v47  ;;  %v4458_v47 = vld [vmem:[#allocation2 + $0x190] ss:$28 sps:$4 sm:$0xff]  }
  0x3e   :  { %2997 = vmatpush1.bf16.msra.mxu1 %v4388_v50  ;;  %2875 = vmatprep.subr.bf16.mxu0 %v4389_v52  ;;  %v4461_v50 = vld [vmem:[#allocation2 + $0x508] ss:$28 sps:$4 sm:$0xff]  }
  0x3f   :  { %2998 = vmatprep.subr.bf16.mxu1 %v4391_v53  ;;  %v4469_v52 = vld [vmem:[#allocation2 + $0x544] ss:$28 sps:$4 sm:$0xff]  }
  0x40   :  { %v4472_v53 = vld [vmem:[#allocation2 + $0x204] ss:$28 sps:$4 sm:$0xff]  }
  0x41   :  { %2876 = vmatpush1.bf16.msra.mxu0 %v4393_v57  ;;  %v4470_v57 = vld [vmem:[#allocation2 + $0x200] ss:$28 sps:$4 sm:$0xff]  }
  0x42   :  { %2999 = vmatpush1.bf16.msra.mxu1 %v4394_v58  ;;  %2877 = vmatprep.subr.bf16.mxu0 %v4395_v59  ;;  %v4475_v58 = vld [vmem:[#allocation2 + $0x57c] ss:$28 sps:$4 sm:$0xff]  }
  0x43   :  { %3000 = vmatprep.subr.bf16.mxu1 %v4397_v62  ;;  %v4478_v59 = vld [vmem:[#allocation2 + $0x23c] ss:$28 sps:$4 sm:$0xff]  }
  0x44   :  { %v4473_v62 = vld [vmem:[#allocation2 + $0x578] ss:$28 sps:$4 sm:$0xff]  }
  0x45   :  { %2878 = vmatpush1.bf16.msra.mxu0 %v4399_v63  ;;  %v4476_v63 = vld [vmem:[#allocation2 + $0x238] ss:$28 sps:$4 sm:$0xff]  }
  0x46   :  { %3001 = vmatpush1.bf16.msra.mxu1 %v4400_v0  ;;  %2879 = vmatprep.subr.bf16.mxu0 %v4401_v1  ;;  %v4481_v0 = vld [vmem:[#allocation2 + $0x5b4] ss:$28 sps:$4 sm:$0xff]  }
  0x47   :  { %3002 = vmatprep.subr.bf16.mxu1 %v4403_v2  ;;  %v4484_v1 = vld [vmem:[#allocation2 + $0x274] ss:$28 sps:$4 sm:$0xff]  }
  0x48   :  { %v4479_v2 = vld [vmem:[#allocation2 + $0x5b0] ss:$28 sps:$4 sm:$0xff]  }
  0x49   :  { %2880 = vmatpush1.bf16.msra.mxu0 %v4405_v4  ;;  %v4487_v4 = vld [vmem:[#allocation2 + $0x5ec] ss:$28 sps:$4 sm:$0xff]  }
  0x4a   :  { %3003 = vmatpush1.bf16.msra.mxu1 %v4406_v5  ;;  %2881 = vmatprep.subr.bf16.mxu0 %v4407_v6  ;;  %v4490_v5 = vld [vmem:[#allocation2 + $0x2ac] ss:$28 sps:$4 sm:$0xff]  }
  0x4b   :  { %4211 = vmatprep.subr.msk.bf16.mxu1 %vm2831_vm1, %v4205_v7  ;;  %v4485_v6 = vld [vmem:[#allocation2 + $0x5e8] ss:$28 sps:$4 sm:$0xff]  }
  0x4c   :  { %v4488_v7 = vld [vmem:[#allocation2 + $0x2a8] ss:$28 sps:$4 sm:$0xff]  }
  0x4d   :  { %2882 = vmatpush1.bf16.msra.mxu0 %v4410_v9  ;;  %v4496_v9 = vld [vmem:[#allocation2 + $0x2e4] ss:$28 sps:$4 sm:$0xff]  }
  0x4e   :  { %3005 = vmatpush1.bf16.msra.mxu1 %v2833_v11  ;;  %2883 = vmatprep.subr.bf16.mxu0 %v4413_v10  ;;  %v4491_v10 = vld [vmem:[#allocation2 + $0x620] ss:$28 sps:$4 sm:$0xff]  }
  0x4f   :  { %3017 = vmatprep.subr.bf16.mxu1 %v4417_v12  ;;  %v4494_v11 = vld [vmem:[#allocation2 + $0x2e0] ss:$28 sps:$4 sm:$0xff]  }
  0x50   :  { %v4499_v12 = vld [vmem:[#allocation2 + $0x65c] ss:$28 sps:$4 sm:$0xff]  }
  0x51   :  { %3009 = vmatmul.mubr.bf16.vlgmr.msra.gmra.mrb[0].mxu1 %v5044_v55  ;;  %2884 = vmatpush1.bf16.msra.mxu0 %v4418_v15  ;;  %v4500_v15 = vld [vmem:[#allocation2 + $0x318] ss:$28 sps:$4 sm:$0xff]  }
  0x52   :  { %3018 = vmatpush1.bf16.msra.mxu1 %v4415_v14  ;;  %2894 = vmatprep.subr.bf16.mxu0 %v4421_v16  ;;  %v4497_v14 = vld [vmem:[#allocation2 + $0x658] ss:$28 sps:$4 sm:$0xff]  }
  0x53   :  { %3019 = vmatprep.subr.bf16.mxu1 %v4424_v17  ;;  %3049 = vmatprep.mubr.bf16.mxu1 %v5055_v61  ;;  %v4505_v16 = vld [vmem:[#allocation2 + $0x694] ss:$28 sps:$4 sm:$0xff]  }
  0x54   :  { %2886 = vmatmul.mubr.bf16.vlgmr.msra.gmra.mrb[0].mxu0 %v5047_v56  ;;  %v4508_v17 = vld [vmem:[#allocation2 + $0x354] ss:$28 sps:$4 sm:$0xff]  }
  0x55   :  { %2895 = vmatpush1.bf16.msra.mxu0 %v4419_v20  ;;  %2926 = vmatprep.mubr.bf16.mxu0 %v5072_v24  ;;  %v4503_v20 = vld [vmem:[#allocation2 + $0x690] ss:$28 sps:$4 sm:$0xff]  }
  0x56   :  { %3020 = vmatpush1.bf16.msra.mxu1 %v4422_v21  ;;  %2896 = vmatprep.subr.bf16.mxu0 %v4427_v22  ;;  %v4506_v21 = vld [vmem:[#allocation2 + $0x350] ss:$28 sps:$4 sm:$0xff]  }
  0x57   :  { %3021 = vmatprep.subr.bf16.mxu1 %v4430_v23  ;;  %v4511_v22 = vld [vmem:[#allocation2 + $0x6cc] ss:$28 sps:$4 sm:$0xff]  }
  0x58   :  { %v4514_v23 = vld [vmem:[#allocation2 + $0x38c] ss:$28 sps:$4 sm:$0xff]  }
  0x59   :  { %2897 = vmatpush1.bf16.msra.mxu0 %v4425_v25  ;;  %v4509_v25 = vld [vmem:[#allocation2 + $0x6c8] ss:$28 sps:$4 sm:$0xff]  }
  0x5a   :  { %3022 = vmatpush1.bf16.msra.mxu1 %v4428_v26  ;;  %2898 = vmatprep.subr.bf16.mxu0 %v4433_v27  ;;  %v4512_v26 = vld [vmem:[#allocation2 + $0x388] ss:$28 sps:$4 sm:$0xff]  }
  0x5b   :  { %3023 = vmatprep.subr.bf16.mxu1 %v4436_v28  ;;  %v4518_v27 = vld [vmem:[#allocation2 + $0x704] ss:$28 sps:$4 sm:$0xff]  }
  0x5c   :  { %v4521_v28 = vld [vmem:[#allocation2 + $0x3c4] ss:$28 sps:$4 sm:$0xff]  }
  0x5d   :  { %2899 = vmatpush1.bf16.msra.mxu0 %v4431_v29  ;;  %v4516_v29 = vld [vmem:[#allocation2 + $0x700] ss:$28 sps:$4 sm:$0xff]  }
  0x5e   :  { %3024 = vmatpush1.bf16.msra.mxu1 %v4434_v30  ;;  %2900 = vmatprep.subr.bf16.mxu0 %v4439_v31  ;;  %v4519_v30 = vld [vmem:[#allocation2 + $0x3c0] ss:$28 sps:$4 sm:$0xff]  }
  0x5f   :  { %3025 = vmatprep.subr.bf16.mxu1 %v4442_v32  ;;  %v4524_v31 = vld [vmem:[#allocation2 + $0x73c] ss:$28 sps:$4 sm:$0xff]  }
  0x60   :  { %v4527_v32 = vld [vmem:[#allocation2 + $0x3fc] ss:$28 sps:$4 sm:$0xff]  }
  0x61   :  { %2901 = vmatpush1.bf16.msra.mxu0 %v4437_v33  ;;  %v5080_v33 = vcombine.high %v5066_v19, %v5066_v19 }
  0x62   :  { %3026 = vmatpush1.bf16.msra.mxu1 %v4440_v34  ;;  %2902 = vmatprep.subr.bf16.mxu0 %v4445_v35  ;;  %v4522_v34 = vld [vmem:[#allocation2 + $0x738] ss:$28 sps:$4 sm:$0xff]  }
  0x63   :  { %3027 = vmatprep.subr.bf16.mxu1 %v4448_v36  ;;  %v4525_v35 = vld [vmem:[#allocation2 + $0x3f8] ss:$28 sps:$4 sm:$0xff]  }
  0x64   :  { %v4530_v36 = vld [vmem:[#allocation2 + $0x774] ss:$28 sps:$4 sm:$0xff]  }
  0x65   :  { %2903 = vmatpush1.bf16.msra.mxu0 %v4443_v37  ;;  %v4533_v37 = vld [vmem:[#allocation2 + $0x434] ss:$28 sps:$4 sm:$0xff]  }
  0x66   :  { %3028 = vmatpush1.bf16.msra.mxu1 %v4446_v38  ;;  %2904 = vmatprep.subr.bf16.mxu0 %v4451_v39  ;;  %v4528_v38 = vld [vmem:[#allocation2 + $0x770] ss:$28 sps:$4 sm:$0xff]  }
  0x67   :  { %3029 = vmatprep.subr.bf16.mxu1 %v4454_v40  ;;  %v4531_v39 = vld [vmem:[#allocation2 + $0x430] ss:$28 sps:$4 sm:$0xff]  }
  0x68   :  { %v4536_v40 = vld [vmem:[#allocation2 + $0x7ac] ss:$28 sps:$4 sm:$0xff]  }
  0x69   :  { %2905 = vmatpush1.bf16.msra.mxu0 %v4449_v41  ;;  %v4539_v41 = vld [vmem:[#allocation2 + $0x46c] ss:$28 sps:$4 sm:$0xff]  }
  0x6a   :  { %3030 = vmatpush1.bf16.msra.mxu1 %v4452_v43  ;;  %2906 = vmatprep.subr.bf16.mxu0 %v4457_v44  ;;  %v4534_v43 = vld [vmem:[#allocation2 + $0x7a8] ss:$28 sps:$4 sm:$0xff]  }
  0x6b   :  { %3031 = vmatprep.subr.bf16.mxu1 %v4460_v45  ;;  %v4537_v44 = vld [vmem:[#allocation2 + $0x468] ss:$28 sps:$4 sm:$0xff]  }
  0x6c   :  { %v4542_v45 = vld [vmem:[#allocation2 + $0x7e4] ss:$28 sps:$4 sm:$0xff]  }
  0x6d   :  { %2907 = vmatpush1.bf16.msra.mxu0 %v4455_v46  ;;  %v4545_v46 = vld [vmem:[#allocation2 + $0x4a4] ss:$28 sps:$4 sm:$0xff]  }
  0x6e   :  { %3032 = vmatpush1.bf16.msra.mxu1 %v4458_v47  ;;  %2908 = vmatprep.subr.bf16.mxu0 %v4463_v48  ;;  %v4540_v47 = vld [vmem:[#allocation2 + $0x7e0] ss:$28 sps:$4 sm:$0xff]  }
  0x6f   :  { %3033 = vmatprep.subr.bf16.mxu1 %v4466_v49  ;;  %v4543_v48 = vld [vmem:[#allocation2 + $0x4a0] ss:$28 sps:$4 sm:$0xff]  }
  0x70   :  { %v4548_v49 = vld [vmem:[#allocation2 + $0x81c] ss:$28 sps:$4 sm:$0xff]  }
  0x71   :  { %2909 = vmatpush1.bf16.msra.mxu0 %v4461_v50  ;;  %v4551_v50 = vld [vmem:[#allocation2 + $0x4dc] ss:$28 sps:$4 sm:$0xff]  }
  0x72   :  { %3034 = vmatpush1.bf16.msra.mxu1 %v4464_v51  ;;  %2910 = vmatprep.subr.bf16.mxu0 %v4469_v52  ;;  %v4546_v51 = vld [vmem:[#allocation2 + $0x818] ss:$28 sps:$4 sm:$0xff]  }
  0x73   :  { %3035 = vmatprep.subr.bf16.mxu1 %v4472_v53  ;;  %v4549_v52 = vld [vmem:[#allocation2 + $0x4d8] ss:$28 sps:$4 sm:$0xff]  }
  0x74   :  { %v4554_v53 = vld [vmem:[#allocation2 + $0x854] ss:$28 sps:$4 sm:$0xff]  }
  0x75   :  { %2911 = vmatpush1.bf16.msra.mxu0 %v4467_v54  ;;  %v4557_v54 = vld [vmem:[#allocation2 + $0x514] ss:$28 sps:$4 sm:$0xff]  }
  0x76   :  { %3036 = vmatpush1.bf16.msra.mxu1 %v4470_v57  ;;  %2912 = vmatprep.subr.bf16.mxu0 %v4475_v58  ;;  %v4552_v57 = vld [vmem:[#allocation2 + $0x850] ss:$28 sps:$4 sm:$0xff]  }
  0x77   :  { %3037 = vmatprep.subr.bf16.mxu1 %v4478_v59  ;;  %v4555_v58 = vld [vmem:[#allocation2 + $0x510] ss:$28 sps:$4 sm:$0xff]  }
  0x78   :  { %v4560_v59 = vld [vmem:[#allocation2 + $0x88c] ss:$28 sps:$4 sm:$0xff]  }
  0x79   :  { %2913 = vmatpush1.bf16.msra.mxu0 %v4473_v62  ;;  %v4563_v62 = vld [vmem:[#allocation2 + $0x54c] ss:$28 sps:$4 sm:$0xff]  }
  0x7a   :  { %3038 = vmatpush1.bf16.msra.mxu1 %v4476_v63  ;;  %2914 = vmatprep.subr.bf16.mxu0 %v4481_v0  ;;  %v4558_v63 = vld [vmem:[#allocation2 + $0x888] ss:$28 sps:$4 sm:$0xff]  }
  0x7b   :  { %3039 = vmatprep.subr.bf16.mxu1 %v4484_v1  ;;  %v4561_v0 = vld [vmem:[#allocation2 + $0x548] ss:$28 sps:$4 sm:$0xff]  }
  0x7c   :  { %v4566_v1 = vld [vmem:[#allocation2 + $0x8c4] ss:$28 sps:$4 sm:$0xff]  }
  0x7d   :  { %2915 = vmatpush1.bf16.msra.mxu0 %v4479_v2  ;;  %v4569_v2 = vld [vmem:[#allocation2 + $0x584] ss:$28 sps:$4 sm:$0xff]  }
  0x7e   :  { %3040 = vmatpush1.bf16.msra.mxu1 %v4482_v3  ;;  %2916 = vmatprep.subr.bf16.mxu0 %v4487_v4  ;;  %v4564_v3 = vld [vmem:[#allocation2 + $0x8c0] ss:$28 sps:$4 sm:$0xff]  }
  0x7f   :  { %3041 = vmatprep.subr.bf16.mxu1 %v4490_v5  ;;  %v4567_v4 = vld [vmem:[#allocation2 + $0x580] ss:$28 sps:$4 sm:$0xff]  }
  0x80   :  { %v4572_v5 = vld [vmem:[#allocation2 + $0x8fc] ss:$28 sps:$4 sm:$0xff]  }
  0x81   :  { %2917 = vmatpush1.bf16.msra.mxu0 %v4485_v6  ;;  %v4575_v6 = vld [vmem:[#allocation2 + $0x5bc] ss:$28 sps:$4 sm:$0xff]  }
  0x82   :  { %3042 = vmatpush1.bf16.msra.mxu1 %v4488_v7  ;;  %2918 = vmatprep.subr.bf16.mxu0 %v4493_v8  ;;  %v4570_v7 = vld [vmem:[#allocation2 + $0x8f8] ss:$28 sps:$4 sm:$0xff]  }
  0x83   :  { %3043 = vmatprep.subr.bf16.mxu1 %v4496_v9  ;;  %v4573_v8 = vld [vmem:[#allocation2 + $0x5b8] ss:$28 sps:$4 sm:$0xff]  }
  0x84   :  { %v4578_v9 = vld [vmem:[#allocation2 + $0x934] ss:$28 sps:$4 sm:$0xff]  }
  0x85   :  { %2919 = vmatpush1.bf16.msra.mxu0 %v4491_v10  ;;  %v4581_v10 = vld [vmem:[#allocation2 + $0x5f4] ss:$28 sps:$4 sm:$0xff]  }
  0x86   :  { %3044 = vmatpush1.bf16.msra.mxu1 %v4494_v11  ;;  %2920 = vmatprep.subr.bf16.mxu0 %v4499_v12  ;;  %v4576_v11 = vld [vmem:[#allocation2 + $0x930] ss:$28 sps:$4 sm:$0xff]  }
  0x87   :  { %3045 = vmatprep.subr.bf16.mxu1 %v4502_v13  ;;  %v4579_v12 = vld [vmem:[#allocation2 + $0x5f0] ss:$28 sps:$4 sm:$0xff]  }
  0x88   :  { %v4584_v13 = vld [vmem:[#allocation2 + $0x96c] ss:$28 sps:$4 sm:$0xff]  }
  0x89   :  { %2921 = vmatpush1.bf16.msra.mxu0 %v4497_v14  ;;  %v4587_v14 = vld [vmem:[#allocation2 + $0x62c] ss:$28 sps:$4 sm:$0xff]  }
  0x8a   :  { %3046 = vmatpush1.bf16.msra.mxu1 %v4500_v15  ;;  %2922 = vmatprep.subr.bf16.mxu0 %v4505_v16  ;;  %v4582_v15 = vld [vmem:[#allocation2 + $0x968] ss:$28 sps:$4 sm:$0xff]  }
  0x8b   :  { %3047 = vmatprep.subr.bf16.mxu1 %v4508_v17  ;;  %v4585_v16 = vld [vmem:[#allocation2 + $0x628] ss:$28 sps:$4 sm:$0xff]  }
  0x8c   :  { %v4590_v17 = vld [vmem:[#allocation2 + $0x9a4] ss:$28 sps:$4 sm:$0xff]  }
  0x8d   :  { %2923 = vmatpush1.bf16.msra.mxu0 %v4503_v20  ;;  %v4593_v20 = vld [vmem:[#allocation2 + $0x664] ss:$28 sps:$4 sm:$0xff]  }
  0x8e   :  { %3048 = vmatpush1.bf16.msra.mxu1 %v4506_v21  ;;  %2924 = vmatprep.subr.bf16.mxu0 %v4511_v22  ;;  %v4588_v21 = vld [vmem:[#allocation2 + $0x9a0] ss:$28 sps:$4 sm:$0xff]  }
  0x8f   :  { %3058 = vmatprep.subr.bf16.mxu1 %v4514_v23  ;;  %v4591_v22 = vld [vmem:[#allocation2 + $0x660] ss:$28 sps:$4 sm:$0xff]  }
  0x90   :  { %v4596_v23 = vld [vmem:[#allocation2 + $0x9dc] ss:$28 sps:$4 sm:$0xff]  }
  0x91   :  { %3050 = vmatmul.mubr.bf16.vlgmr.msra.gmra.mrb[4].mxu1 %v5047_v56  ;;  %2925 = vmatpush1.bf16.msra.mxu0 %v4509_v25  ;;  %v4599_v25 = vld [vmem:[#allocation2 + $0x69c] ss:$28 sps:$4 sm:$0xff]  }
  0x92   :  { %3059 = vmatpush1.bf16.msra.mxu1 %v4512_v26  ;;  %2935 = vmatprep.subr.bf16.mxu0 %v4518_v27  ;;  %v4594_v26 = vld [vmem:[#allocation2 + $0x9d8] ss:$28 sps:$4 sm:$0xff]  }
  0x93   :  { %3060 = vmatprep.subr.bf16.mxu1 %v4521_v28  ;;  %3090 = vmatprep.mubr.bf16.mxu1 %v5072_v24  ;;  %v4597_v27 = vld [vmem:[#allocation2 + $0x698] ss:$28 sps:$4 sm:$0xff]  }
  0x94   :  { %2927 = vmatmul.mubr.bf16.vlgmr.msra.gmra.mrb[0].mxu0 %v5063_v18  ;;  %v4602_v28 = vld [vmem:[#allocation2 + $0xa14] ss:$28 sps:$4 sm:$0xff]  }
  0x95   :  { %2936 = vmatpush1.bf16.msra.mxu0 %v4516_v29  ;;  %2967 = vmatprep.mubr.bf16.mxu0 %v5080_v33  ;;  %v4605_v29 = vld [vmem:[#allocation2 + $0x6d4] ss:$28 sps:$4 sm:$0xff]  }
  0x96   :  { %3061 = vmatpush1.bf16.msra.mxu1 %v4519_v30  ;;  %2937 = vmatprep.subr.bf16.mxu0 %v4524_v31  ;;  %v4600_v30 = vld [vmem:[#allocation2 + $0xa10] ss:$28 sps:$4 sm:$0xff]  }
  0x97   :  { %3062 = vmatprep.subr.bf16.mxu1 %v4527_v32  ;;  %v4603_v31 = vld [vmem:[#allocation2 + $0x6d0] ss:$28 sps:$4 sm:$0xff]  }
  0x98   :  { %v4608_v32 = vld [vmem:[#allocation2 + $0xa4c] ss:$28 sps:$4 sm:$0xff]  }
  0x99   :  { %2938 = vmatpush1.bf16.msra.mxu0 %v4522_v34  ;;  %v4611_v34 = vld [vmem:[#allocation2 + $0x70c] ss:$28 sps:$4 sm:$0xff]  }
  0x9a   :  { %3063 = vmatpush1.bf16.msra.mxu1 %v4525_v35  ;;  %2939 = vmatprep.subr.bf16.mxu0 %v4530_v36  ;;  %v4606_v35 = vld [vmem:[#allocation2 + $0xa48] ss:$28 sps:$4 sm:$0xff]  }
  0x9b   :  { %3064 = vmatprep.subr.bf16.mxu1 %v4533_v37  ;;  %v4609_v36 = vld [vmem:[#allocation2 + $0x708] ss:$28 sps:$4 sm:$0xff]  }
  0x9c   :  { %v4614_v37 = vld [vmem:[#allocation2 + $0x744] ss:$28 sps:$4 sm:$0xff]  }
  0x9d   :  { %2940 = vmatpush1.bf16.msra.mxu0 %v4528_v38  ;;  %v4617_v38 = vld [vmem:[#allocation2 + $0x14] ss:$28 sps:$4 sm:$0xff]  }
  0x9e   :  { %3065 = vmatpush1.bf16.msra.mxu1 %v4531_v39  ;;  %2941 = vmatprep.subr.bf16.mxu0 %v4536_v40  ;;  %v4612_v39 = vld [vmem:[#allocation2 + $0x740] ss:$28 sps:$4 sm:$0xff]   ;;  %v4615_v40 = vld [vmem:[#allocation2 + $0x10] ss:$28 sps:$4 sm:$0xff]  }
  0x9f   :  { %3066 = vmatprep.subr.bf16.mxu1 %v4539_v41  ;;  %v4620_v41 = vld [vmem:[#allocation2 + $0x77c] ss:$28 sps:$4 sm:$0xff]  }
  0xa1   :  { %2942 = vmatpush1.bf16.msra.mxu0 %v4534_v43  ;;  %v4623_v43 = vld [vmem:[#allocation2 + $0x4c] ss:$28 sps:$4 sm:$0xff]  }
  0xa2   :  { %3067 = vmatpush1.bf16.msra.mxu1 %v4537_v44  ;;  %2943 = vmatprep.subr.bf16.mxu0 %v4542_v45  ;;  %v4618_v44 = vld [vmem:[#allocation2 + $0x778] ss:$28 sps:$4 sm:$0xff]   ;;  %v4621_v45 = vld [vmem:[#allocation2 + $0x48] ss:$28 sps:$4 sm:$0xff]  }
  0xa3   :  { %3068 = vmatprep.subr.bf16.mxu1 %v4545_v46  ;;  %v4626_v46 = vld [vmem:[#allocation2 + $0x7b4] ss:$28 sps:$4 sm:$0xff]  }
  0xa5   :  { %2944 = vmatpush1.bf16.msra.mxu0 %v4540_v47  ;;  %v4629_v47 = vld [vmem:[#allocation2 + $0x84] ss:$28 sps:$4 sm:$0xff]  }
  0xa6   :  { %3069 = vmatpush1.bf16.msra.mxu1 %v4543_v48  ;;  %2945 = vmatprep.subr.bf16.mxu0 %v4548_v49  ;;  %v4624_v48 = vld [vmem:[#allocation2 + $0x7b0] ss:$28 sps:$4 sm:$0xff]   ;;  %v4627_v49 = vld [vmem:[#allocation2 + $0x80] ss:$28 sps:$4 sm:$0xff]  }
  0xa7   :  { %3070 = vmatprep.subr.bf16.mxu1 %v4551_v50  ;;  %v4632_v50 = vld [vmem:[#allocation2 + $0x7ec] ss:$28 sps:$4 sm:$0xff]  }
  0xa9   :  { %2946 = vmatpush1.bf16.msra.mxu0 %v4546_v51  ;;  %v4635_v51 = vld [vmem:[#allocation2 + $0xbc] ss:$28 sps:$4 sm:$0xff]  }
  0xaa   :  { %3071 = vmatpush1.bf16.msra.mxu1 %v4549_v52  ;;  %2947 = vmatprep.subr.bf16.mxu0 %v4554_v53  ;;  %v4630_v52 = vld [vmem:[#allocation2 + $0x7e8] ss:$28 sps:$4 sm:$0xff]   ;;  %v4633_v53 = vld [vmem:[#allocation2 + $0xb8] ss:$28 sps:$4 sm:$0xff]  }
  0xab   :  { %3072 = vmatprep.subr.bf16.mxu1 %v4557_v54  ;;  %v4638_v54 = vld [vmem:[#allocation2 + $0x824] ss:$28 sps:$4 sm:$0xff]  }
  0xad   :  { %2948 = vmatpush1.bf16.msra.mxu0 %v4552_v57  ;;  %v4641_v57 = vld [vmem:[#allocation2 + $0xf4] ss:$28 sps:$4 sm:$0xff]  }
  0xae   :  { %3073 = vmatpush1.bf16.msra.mxu1 %v4555_v58  ;;  %2949 = vmatprep.subr.bf16.mxu0 %v4560_v59  ;;  %v4636_v58 = vld [vmem:[#allocation2 + $0x820] ss:$28 sps:$4 sm:$0xff]   ;;  %v4639_v59 = vld [vmem:[#allocation2 + $0xf0] ss:$28 sps:$4 sm:$0xff]  }
  0xaf   :  { %3074 = vmatprep.subr.bf16.mxu1 %v4563_v62  ;;  %v4644_v62 = vld [vmem:[#allocation2 + $0x85c] ss:$28 sps:$4 sm:$0xff]  }
  0xb1   :  { %2950 = vmatpush1.bf16.msra.mxu0 %v4558_v63  ;;  %v4647_v63 = vld [vmem:[#allocation2 + $0x12c] ss:$28 sps:$4 sm:$0xff]  }
  0xb2   :  { %3075 = vmatpush1.bf16.msra.mxu1 %v4561_v0  ;;  %2951 = vmatprep.subr.bf16.mxu0 %v4566_v1  ;;  %v4642_v0 = vld [vmem:[#allocation2 + $0x858] ss:$28 sps:$4 sm:$0xff]   ;;  %v4645_v1 = vld [vmem:[#allocation2 + $0x128] ss:$28 sps:$4 sm:$0xff]  }
  0xb3   :  { %3076 = vmatprep.subr.bf16.mxu1 %v4569_v2  ;;  %v4650_v2 = vld [vmem:[#allocation2 + $0x894] ss:$28 sps:$4 sm:$0xff]  }
  0xb5   :  { %2952 = vmatpush1.bf16.msra.mxu0 %v4564_v3  ;;  %v4653_v3 = vld [vmem:[#allocation2 + $0x164] ss:$28 sps:$4 sm:$0xff]  }
  0xb6   :  { %3077 = vmatpush1.bf16.msra.mxu1 %v4567_v4  ;;  %2953 = vmatprep.subr.bf16.mxu0 %v4572_v5  ;;  %v4648_v4 = vld [vmem:[#allocation2 + $0x890] ss:$28 sps:$4 sm:$0xff]   ;;  %v4651_v5 = vld [vmem:[#allocation2 + $0x160] ss:$28 sps:$4 sm:$0xff]  }
  0xb7   :  { %3078 = vmatprep.subr.bf16.mxu1 %v4575_v6  ;;  %v4656_v6 = vld [vmem:[#allocation2 + $0x8cc] ss:$28 sps:$4 sm:$0xff]  }
  0xb9   :  { %2954 = vmatpush1.bf16.msra.mxu0 %v4570_v7  ;;  %v4659_v7 = vld [vmem:[#allocation2 + $0x19c] ss:$28 sps:$4 sm:$0xff]  }
  0xba   :  { %3079 = vmatpush1.bf16.msra.mxu1 %v4573_v8  ;;  %2955 = vmatprep.subr.bf16.mxu0 %v4578_v9  ;;  %v4654_v8 = vld [vmem:[#allocation2 + $0x8c8] ss:$28 sps:$4 sm:$0xff]   ;;  %v4657_v9 = vld [vmem:[#allocation2 + $0x198] ss:$28 sps:$4 sm:$0xff]  }
  0xbb   :  { %3080 = vmatprep.subr.bf16.mxu1 %v4581_v10  ;;  %v4662_v10 = vld [vmem:[#allocation2 + $0x904] ss:$28 sps:$4 sm:$0xff]  }
  0xbd   :  { %2956 = vmatpush1.bf16.msra.mxu0 %v4576_v11  ;;  %v4665_v11 = vld [vmem:[#allocation2 + $0x1d4] ss:$28 sps:$4 sm:$0xff]  }
  0xbe   :  { %3081 = vmatpush1.bf16.msra.mxu1 %v4579_v12  ;;  %2957 = vmatprep.subr.bf16.mxu0 %v4584_v13  ;;  %v4660_v12 = vld [vmem:[#allocation2 + $0x900] ss:$28 sps:$4 sm:$0xff]   ;;  %v4663_v13 = vld [vmem:[#allocation2 + $0x1d0] ss:$28 sps:$4 sm:$0xff]  }
  0xbf   :  { %3082 = vmatprep.subr.bf16.mxu1 %v4587_v14  ;;  %v4668_v14 = vld [vmem:[#allocation2 + $0x93c] ss:$28 sps:$4 sm:$0xff]  }
  0xc1   :  { %2958 = vmatpush1.bf16.msra.mxu0 %v4582_v15  ;;  %v4671_v15 = vld [vmem:[#allocation2 + $0x20c] ss:$28 sps:$4 sm:$0xff]  }
  0xc2   :  { %3083 = vmatpush1.bf16.msra.mxu1 %v4585_v16  ;;  %2959 = vmatprep.subr.bf16.mxu0 %v4590_v17  ;;  %v4666_v16 = vld [vmem:[#allocation2 + $0x938] ss:$28 sps:$4 sm:$0xff]   ;;  %v4669_v17 = vld [vmem:[#allocation2 + $0x208] ss:$28 sps:$4 sm:$0xff]  }
  0xc3   :  { %3084 = vmatprep.subr.bf16.mxu1 %v4593_v20  ;;  %v4674_v20 = vld [vmem:[#allocation2 + $0x974] ss:$28 sps:$4 sm:$0xff]  }
  0xc5   :  { %2960 = vmatpush1.bf16.msra.mxu0 %v4588_v21  ;;  %v4677_v21 = vld [vmem:[#allocation2 + $0x244] ss:$28 sps:$4 sm:$0xff]  }
  0xc6   :  { %3085 = vmatpush1.bf16.msra.mxu1 %v4591_v22  ;;  %2961 = vmatprep.subr.bf16.mxu0 %v4596_v23  ;;  %v4672_v22 = vld [vmem:[#allocation2 + $0x970] ss:$28 sps:$4 sm:$0xff]   ;;  %v4675_v23 = vld [vmem:[#allocation2 + $0x240] ss:$28 sps:$4 sm:$0xff]  }
  0xc7   :  { %3086 = vmatprep.subr.bf16.mxu1 %v4599_v25  ;;  %v4680_v25 = vld [vmem:[#allocation2 + $0x9ac] ss:$28 sps:$4 sm:$0xff]  }
  0xc9   :  { %2962 = vmatpush1.bf16.msra.mxu0 %v4594_v26  ;;  %v4683_v26 = vld [vmem:[#allocation2 + $0x27c] ss:$28 sps:$4 sm:$0xff]  }
  0xca   :  { %3087 = vmatpush1.bf16.msra.mxu1 %v4597_v27  ;;  %2963 = vmatprep.subr.bf16.mxu0 %v4602_v28  ;;  %v4678_v27 = vld [vmem:[#allocation2 + $0x9a8] ss:$28 sps:$4 sm:$0xff]   ;;  %v4681_v28 = vld [vmem:[#allocation2 + $0x278] ss:$28 sps:$4 sm:$0xff]  }
  0xcb   :  { %3088 = vmatprep.subr.bf16.mxu1 %v4605_v29  ;;  %v4686_v29 = vld [vmem:[#allocation2 + $0x9e4] ss:$28 sps:$4 sm:$0xff]  }
  0xcd   :  { %2964 = vmatpush1.bf16.msra.mxu0 %v4600_v30  ;;  %v4689_v30 = vld [vmem:[#allocation2 + $0x2b4] ss:$28 sps:$4 sm:$0xff]  }
  0xce   :  { %3089 = vmatpush1.bf16.msra.mxu1 %v4603_v31  ;;  %2965 = vmatprep.subr.bf16.mxu0 %v4608_v32  ;;  %v4684_v31 = vld [vmem:[#allocation2 + $0x9e0] ss:$28 sps:$4 sm:$0xff]   ;;  %v4687_v32 = vld [vmem:[#allocation2 + $0x2b0] ss:$28 sps:$4 sm:$0xff]  }
  0xcf   :  { %3099 = vmatprep.subr.bf16.mxu1 %v4611_v34  ;;  %v4692_v34 = vld [vmem:[#allocation2 + $0xa1c] ss:$28 sps:$4 sm:$0xff]  }
  0xd1   :  { %3091 = vmatmul.mubr.bf16.vlgmr.msra.gmra.mrb[4].mxu1 %v5063_v18  ;;  %2966 = vmatpush1.bf16.msra.mxu0 %v4606_v35  ;;  %v4695_v35 = vld [vmem:[#allocation2 + $0x2ec] ss:$28 sps:$4 sm:$0xff]  }
  0xd2   :  { %3100 = vmatpush1.bf16.msra.mxu1 %v4609_v36  ;;  %3181 = vmatprep.subr.bf16.mxu0 %v4617_v38  ;;  %v4690_v36 = vld [vmem:[#allocation2 + $0xa18] ss:$28 sps:$4 sm:$0xff]  }
  0xd3   :  { %3101 = vmatprep.subr.bf16.mxu1 %v4614_v37  ;;  %3131 = vmatprep.mubr.bf16.mxu1 %v5080_v33  ;;  %v4693_v37 = vld [vmem:[#allocation2 + $0x2e8] ss:$28 sps:$4 sm:$0xff]   ;;  %v4698_v38 = vld [vmem:[#allocation2 + $0xa54] ss:$28 sps:$4 sm:$0xff]  }
  0xd4   :  { %2968 = vmatmul.mubr.bf16.vlgmr.msra.gmra.mrb[0].mxu0 %v5066_v19 }
  0xd5   :  { %3182 = vmatpush1.bf16.msra.mxu0 %v4615_v40  ;;  %3213 = vmatprep.mubr.bf16.mxu0 %v5055_v61  ;;  %v4696_v40 = vld [vmem:[#allocation2 + $0xa50] ss:$28 sps:$4 sm:$0xff]  }
  0xd6   :  { %3102 = vmatpush1.bf16.msra.mxu1 %v4612_v39  ;;  %3183 = vmatprep.subr.bf16.mxu0 %v4623_v43  ;;  %v4701_v39 = vld [vmem:[#allocation2 + $0x324] ss:$28 sps:$4 sm:$0xff]   ;;  %v4704_v43 = vld [vmem:[#allocation2 + $0xa8c] ss:$28 sps:$4 sm:$0xff]  }
  0xd7   :  { %3103 = vmatprep.subr.bf16.mxu1 %v4620_v41  ;;  %v4699_v41 = vld [vmem:[#allocation2 + $0x320] ss:$28 sps:$4 sm:$0xff]  }
  0xd9   :  { %3184 = vmatpush1.bf16.msra.mxu0 %v4621_v45  ;;  %v4702_v45 = vld [vmem:[#allocation2 + $0xa88] ss:$28 sps:$4 sm:$0xff]  }
  0xda   :  { %3104 = vmatpush1.bf16.msra.mxu1 %v4618_v44  ;;  %3185 = vmatprep.subr.bf16.mxu0 %v4629_v47  ;;  %v4707_v44 = vld [vmem:[#allocation2 + $0x35c] ss:$28 sps:$4 sm:$0xff]   ;;  %v4710_v47 = vld [vmem:[#allocation2 + $0xac4] ss:$28 sps:$4 sm:$0xff]  }
  0xdb   :  { %3105 = vmatprep.subr.bf16.mxu1 %v4626_v46  ;;  %v4705_v46 = vld [vmem:[#allocation2 + $0x358] ss:$28 sps:$4 sm:$0xff]  }
  0xdd   :  { %3186 = vmatpush1.bf16.msra.mxu0 %v4627_v49  ;;  %v4708_v49 = vld [vmem:[#allocation2 + $0xac0] ss:$28 sps:$4 sm:$0xff]  }
  0xde   :  { %3106 = vmatpush1.bf16.msra.mxu1 %v4624_v48  ;;  %3187 = vmatprep.subr.bf16.mxu0 %v4635_v51  ;;  %v4713_v48 = vld [vmem:[#allocation2 + $0x394] ss:$28 sps:$4 sm:$0xff]   ;;  %v4716_v51 = vld [vmem:[#allocation2 + $0xafc] ss:$28 sps:$4 sm:$0xff]  }
  0xdf   :  { %3107 = vmatprep.subr.bf16.mxu1 %v4632_v50  ;;  %v4711_v50 = vld [vmem:[#allocation2 + $0x390] ss:$28 sps:$4 sm:$0xff]  }
  0xe1   :  { %3188 = vmatpush1.bf16.msra.mxu0 %v4633_v53  ;;  %v4714_v53 = vld [vmem:[#allocation2 + $0xaf8] ss:$28 sps:$4 sm:$0xff]  }
  0xe2   :  { %3108 = vmatpush1.bf16.msra.mxu1 %v4630_v52  ;;  %3189 = vmatprep.subr.bf16.mxu0 %v4641_v57  ;;  %v4719_v52 = vld [vmem:[#allocation2 + $0x3cc] ss:$28 sps:$4 sm:$0xff]   ;;  %v4722_v57 = vld [vmem:[#allocation2 + $0xb34] ss:$28 sps:$4 sm:$0xff]  }
  0xe3   :  { %3109 = vmatprep.subr.bf16.mxu1 %v4638_v54  ;;  %v4717_v54 = vld [vmem:[#allocation2 + $0x3c8] ss:$28 sps:$4 sm:$0xff]  }
  0xe5   :  { %3190 = vmatpush1.bf16.msra.mxu0 %v4639_v59  ;;  %v4720_v59 = vld [vmem:[#allocation2 + $0xb30] ss:$28 sps:$4 sm:$0xff]  }
  0xe6   :  { %3110 = vmatpush1.bf16.msra.mxu1 %v4636_v58  ;;  %3191 = vmatprep.subr.bf16.mxu0 %v4647_v63  ;;  %v4725_v58 = vld [vmem:[#allocation2 + $0x404] ss:$28 sps:$4 sm:$0xff]   ;;  %v4728_v63 = vld [vmem:[#allocation2 + $0xb6c] ss:$28 sps:$4 sm:$0xff]  }
  0xe7   :  { %3111 = vmatprep.subr.bf16.mxu1 %v4644_v62  ;;  %v4723_v62 = vld [vmem:[#allocation2 + $0x400] ss:$28 sps:$4 sm:$0xff]  }
  0xe9   :  { %3192 = vmatpush1.bf16.msra.mxu0 %v4645_v1  ;;  %v4726_v1 = vld [vmem:[#allocation2 + $0xb68] ss:$28 sps:$4 sm:$0xff]  }
  0xea   :  { %3112 = vmatpush1.bf16.msra.mxu1 %v4642_v0  ;;  %3193 = vmatprep.subr.bf16.mxu0 %v4653_v3  ;;  %v4731_v0 = vld [vmem:[#allocation2 + $0x43c] ss:$28 sps:$4 sm:$0xff]   ;;  %v4734_v3 = vld [vmem:[#allocation2 + $0xba4] ss:$28 sps:$4 sm:$0xff]  }
  0xeb   :  { %3113 = vmatprep.subr.bf16.mxu1 %v4650_v2  ;;  %v4729_v2 = vld [vmem:[#allocation2 + $0x438] ss:$28 sps:$4 sm:$0xff]  }
  0xed   :  { %3194 = vmatpush1.bf16.msra.mxu0 %v4651_v5  ;;  %v4732_v5 = vld [vmem:[#allocation2 + $0xba0] ss:$28 sps:$4 sm:$0xff]  }
  0xee   :  { %3114 = vmatpush1.bf16.msra.mxu1 %v4648_v4  ;;  %3195 = vmatprep.subr.bf16.mxu0 %v4659_v7  ;;  %v4737_v4 = vld [vmem:[#allocation2 + $0x474] ss:$28 sps:$4 sm:$0xff]   ;;  %v4740_v7 = vld [vmem:[#allocation2 + $0xbdc] ss:$28 sps:$4 sm:$0xff]  }
  0xef   :  { %3115 = vmatprep.subr.bf16.mxu1 %v4656_v6  ;;  %v4735_v6 = vld [vmem:[#allocation2 + $0x470] ss:$28 sps:$4 sm:$0xff]  }
  0xf1   :  { %3196 = vmatpush1.bf16.msra.mxu0 %v4657_v9 }
  0xf2   :  { %3116 = vmatpush1.bf16.msra.mxu1 %v4654_v8  ;;  %3197 = vmatprep.subr.bf16.mxu0 %v4665_v11  ;;  %v4743_v8 = vld [vmem:[#allocation2 + $0x4ac] ss:$28 sps:$4 sm:$0xff]  }
  0xf3   :  { %3117 = vmatprep.subr.bf16.mxu1 %v4662_v10  ;;  %v4738_v10 = vld [vmem:[#allocation2 + $0xbd8] ss:$28 sps:$4 sm:$0xff]   ;;  %v4741_v11 = vld [vmem:[#allocation2 + $0x4a8] ss:$28 sps:$4 sm:$0xff]  }
  0xf5   :  { %3198 = vmatpush1.bf16.msra.mxu0 %v4663_v13 }
  0xf6   :  { %3118 = vmatpush1.bf16.msra.mxu1 %v4660_v12  ;;  %3199 = vmatprep.subr.bf16.mxu0 %v4671_v15 }
  0xf7   :  { %3119 = vmatprep.subr.bf16.mxu1 %v4668_v14  ;;  %v4746_v14 = vld [vmem:[#allocation2 + $0xc14] ss:$28 sps:$4 sm:$0xff]  }
  0xf9   :  { %3200 = vmatpush1.bf16.msra.mxu0 %v4669_v17  ;;  %v4744_v17 = vld [vmem:[#allocation2 + $0xc10] ss:$28 sps:$4 sm:$0xff]  }
  0xfa   :  { %3120 = vmatpush1.bf16.msra.mxu1 %v4666_v16  ;;  %3201 = vmatprep.subr.bf16.mxu0 %v4677_v21  ;;  %v4749_v16 = vld [vmem:[#allocation2 + $0x4e4] ss:$28 sps:$4 sm:$0xff]   ;;  %v4752_v21 = vld [vmem:[#allocation2 + $0xc4c] ss:$28 sps:$4 sm:$0xff]  }
  0xfb   :  { %3121 = vmatprep.subr.bf16.mxu1 %v4674_v20  ;;  %v4747_v20 = vld [vmem:[#allocation2 + $0x4e0] ss:$28 sps:$4 sm:$0xff]  }
  0xfd   :  { %3202 = vmatpush1.bf16.msra.mxu0 %v4675_v23  ;;  %v4750_v23 = vld [vmem:[#allocation2 + $0xc48] ss:$28 sps:$4 sm:$0xff]  }
  0xfe   :  { %3122 = vmatpush1.bf16.msra.mxu1 %v4672_v22  ;;  %3203 = vmatprep.subr.bf16.mxu0 %v4683_v26  ;;  %v4755_v22 = vld [vmem:[#allocation2 + $0x51c] ss:$28 sps:$4 sm:$0xff]   ;;  %v4758_v26 = vld [vmem:[#allocation2 + $0xc84] ss:$28 sps:$4 sm:$0xff]  }
  0xff   :  { %3123 = vmatprep.subr.bf16.mxu1 %v4680_v25  ;;  %v4753_v25 = vld [vmem:[#allocation2 + $0x518] ss:$28 sps:$4 sm:$0xff]  }
 0x101   :  { %3204 = vmatpush1.bf16.msra.mxu0 %v4681_v28  ;;  %v4756_v28 = vld [vmem:[#allocation2 + $0xc80] ss:$28 sps:$4 sm:$0xff]  }
 0x102   :  { %3124 = vmatpush1.bf16.msra.mxu1 %v4678_v27  ;;  %3205 = vmatprep.subr.bf16.mxu0 %v4689_v30  ;;  %v4761_v27 = vld [vmem:[#allocation2 + $0x554] ss:$28 sps:$4 sm:$0xff]   ;;  %v4764_v30 = vld [vmem:[#allocation2 + $0xcbc] ss:$28 sps:$4 sm:$0xff]  }
 0x103   :  { %3125 = vmatprep.subr.bf16.mxu1 %v4686_v29  ;;  %v4759_v29 = vld [vmem:[#allocation2 + $0x550] ss:$28 sps:$4 sm:$0xff]  }
 0x105   :  { %3206 = vmatpush1.bf16.msra.mxu0 %v4687_v32  ;;  %v4762_v32 = vld [vmem:[#allocation2 + $0xcb8] ss:$28 sps:$4 sm:$0xff]  }
 0x106   :  { %3126 = vmatpush1.bf16.msra.mxu1 %v4684_v31  ;;  %3207 = vmatprep.subr.bf16.mxu0 %v4695_v35  ;;  %v4767_v31 = vld [vmem:[#allocation2 + $0x58c] ss:$28 sps:$4 sm:$0xff]   ;;  %v4770_v35 = vld [vmem:[#allocation2 + $0xcf4] ss:$28 sps:$4 sm:$0xff]  }
 0x107   :  { %3127 = vmatprep.subr.bf16.mxu1 %v4692_v34  ;;  %v4765_v34 = vld [vmem:[#allocation2 + $0x588] ss:$28 sps:$4 sm:$0xff]  }
 0x109   :  { %3208 = vmatpush1.bf16.msra.mxu0 %v4693_v37  ;;  %v4768_v37 = vld [vmem:[#allocation2 + $0xcf0] ss:$28 sps:$4 sm:$0xff]  }
 0x10a   :  { %3128 = vmatpush1.bf16.msra.mxu1 %v4690_v36  ;;  %3209 = vmatprep.subr.bf16.mxu0 %v4701_v39  ;;  %v4773_v36 = vld [vmem:[#allocation2 + $0x5c4] ss:$28 sps:$4 sm:$0xff]   ;;  %v4776_v39 = vld [vmem:[#allocation2 + $0xd2c] ss:$28 sps:$4 sm:$0xff]  }
 0x10b   :  { %3129 = vmatprep.subr.bf16.mxu1 %v4698_v38  ;;  %v4771_v38 = vld [vmem:[#allocation2 + $0x5c0] ss:$28 sps:$4 sm:$0xff]  }
 0x10d   :  { %3210 = vmatpush1.bf16.msra.mxu0 %v4699_v41  ;;  %v4774_v41 = vld [vmem:[#allocation2 + $0xd28] ss:$28 sps:$4 sm:$0xff]  }
 0x10e   :  { %3130 = vmatpush1.bf16.msra.mxu1 %v4696_v40  ;;  %3211 = vmatprep.subr.bf16.mxu0 %v4707_v44  ;;  %v4779_v40 = vld [vmem:[#allocation2 + $0x5fc] ss:$28 sps:$4 sm:$0xff]   ;;  %v4782_v44 = vld [vmem:[#allocation2 + $0xd64] ss:$28 sps:$4 sm:$0xff]  }
 0x10f   :  { %3140 = vmatprep.subr.bf16.mxu1 %v4704_v43  ;;  %v4777_v43 = vld [vmem:[#allocation2 + $0x5f8] ss:$28 sps:$4 sm:$0xff]  }
 0x111   :  { %3132 = vmatmul.mubr.bf16.vlgmr.msra.gmra.mrb[4].mxu1 %v5066_v19  ;;  %3212 = vmatpush1.bf16.msra.mxu0 %v4705_v46  ;;  %v4780_v46 = vld [vmem:[#allocation2 + $0xd60] ss:$28 sps:$4 sm:$0xff]  }
 0x112   :  { %3141 = vmatpush1.bf16.msra.mxu1 %v4702_v45  ;;  %3222 = vmatprep.subr.bf16.mxu0 %v4713_v48  ;;  %v4785_v45 = vld [vmem:[#allocation2 + $0x634] ss:$28 sps:$4 sm:$0xff]   ;;  %v531_v48 = vld [vmem:[#allocation2 + $0xd98] sm:$0xff] }
 0x113   :  { %3142 = vmatprep.subr.bf16.mxu1 %v4710_v47  ;;  %4214 = vmatprep.mubr.msk.bf16.mxu1 %vm2827_vm0, %v5051_v60  ;;  %v4783_v47 = vld [vmem:[#allocation2 + $0x630] ss:$28 sps:$4 sm:$0xff]  }
 0x114   :  { %3214 = vmatmul.mubr.bf16.vlgmr.msra.gmra.mrb[4].mxu0 %v5047_v56 }
 0x115   :  { %3223 = vmatpush1.bf16.msra.mxu0 %v4711_v50  ;;  %3254 = vmatprep.mubr.bf16.mxu0 %v5072_v24  ;;  %v4789_v50 = vld [vmem:[#allocation2 + $0x66c] ss:$28 sps:$4 sm:$0xff]  }
 0x116   :  { %3143 = vmatpush1.bf16.msra.mxu1 %v4708_v49  ;;  %3224 = vmatprep.subr.bf16.mxu0 %v4719_v52  ;;  %v4207_v49 = vcombine.high %v531_v48, %v531_v48  ;;  %v4787_v52 = vld [vmem:[#allocation2 + $0x668] ss:$28 sps:$4 sm:$0xff]  }
 0x117   :  { %3144 = vmatprep.subr.bf16.mxu1 %v4716_v51  ;;  %v4206_v51 = vcombine.low %v531_v48, %v531_v48  ;;  %v4854_v48 = vld [vmem:[#allocation2 + $0x638] ss:$28 sps:$4 sm:$0xff]  }
 0x119   :  { %3225 = vmatpush1.bf16.msra.mxu0 %v4717_v54  ;;  %v4793_v54 = vld [vmem:[#allocation2 + $0x6a4] ss:$28 sps:$4 sm:$0xff]  }
 0x11a   :  { %3145 = vmatpush1.bf16.msra.mxu1 %v4714_v53  ;;  %3226 = vmatprep.subr.bf16.mxu0 %v4725_v58  ;;  %v2839_v53 = vsel %vm2831_vm1, %v4206_v51, 0  ;;  %v4791_v58 = vld [vmem:[#allocation2 + $0x6a0] ss:$28 sps:$4 sm:$0xff]   ;;  %v4859_v51 = vld [vmem:[#allocation2 + $0x670] ss:$28 sps:$4 sm:$0xff]  }
 0x11b   :  { %3146 = vmatprep.subr.bf16.mxu1 %v4722_v57  ;;  %v4794_v57 = vld [vmem:[#allocation2 + $0x1d8] ss:$28 sps:$4 sm:$0xff]  }
 0x11d   :  { %3227 = vmatpush1.bf16.msra.mxu0 %v4723_v62  ;;  %v4798_v62 = vld [vmem:[#allocation2 + $0x6dc] ss:$28 sps:$4 sm:$0xff]  }
 0x11e   :  { %3147 = vmatpush1.bf16.msra.mxu1 %v4720_v59  ;;  %3228 = vmatprep.subr.bf16.mxu0 %v4731_v0  ;;  %v4795_v59 = vld [vmem:[#allocation2 + $0x18] ss:$28 sps:$4 sm:$0xff]  }
 0x11f   :  { %3148 = vmatprep.subr.bf16.mxu1 %v4728_v63  ;;  %v4799_v63 = vld [vmem:[#allocation2 + $0x210] ss:$28 sps:$4 sm:$0xff]   ;;  %v4796_v0 = vld [vmem:[#allocation2 + $0x6d8] ss:$28 sps:$4 sm:$0xff]  }
 0x121   :  { %3229 = vmatpush1.bf16.msra.mxu0 %v4729_v2  ;;  %v4803_v2 = vld [vmem:[#allocation2 + $0x714] ss:$28 sps:$4 sm:$0xff]  }
 0x122   :  { %3149 = vmatpush1.bf16.msra.mxu1 %v4726_v1  ;;  %3230 = vmatprep.subr.bf16.mxu0 %v4737_v4  ;;  %v4800_v1 = vld [vmem:[#allocation2 + $0x50] ss:$28 sps:$4 sm:$0xff]  }
 0x123   :  { %3150 = vmatprep.subr.bf16.mxu1 %v4734_v3  ;;  %v4804_v3 = vld [vmem:[#allocation2 + $0x248] ss:$28 sps:$4 sm:$0xff]   ;;  %v4801_v4 = vld [vmem:[#allocation2 + $0x710] ss:$28 sps:$4 sm:$0xff]  }
 0x124   :  { %v5093_v9 = vpop.f32.mrb[0].mxu1 }
 0x125   :  { %v5095_v12 = vpop.f32.mrb[1].mxu1  ;;  %3231 = vmatpush1.bf16.msra.mxu0 %v4735_v6  ;;  %v4808_v6 = vld [vmem:[#allocation2 + $0x74c] ss:$28 sps:$4 sm:$0xff]  }
 0x126   :  { %v3014_v13 = vpop.f32.mrb[2].mxu1  ;;  %3151 = vmatpush1.bf16.msra.mxu1 %v4732_v5  ;;  %3232 = vmatprep.subr.bf16.mxu0 %v4743_v8  ;;  %v4805_v5 = vld [vmem:[#allocation2 + $0x88] ss:$28 sps:$4 sm:$0xff]  }
 0x127   :  { %v3015_v15 = vpop.f32.mrb[3].mxu1  ;;  %3152 = vmatprep.subr.bf16.mxu1 %v4740_v7  ;;  %v4809_v7 = vld [vmem:[#allocation2 + $0x280] ss:$28 sps:$4 sm:$0xff]   ;;  %v4806_v8 = vld [vmem:[#allocation2 + $0x748] ss:$28 sps:$4 sm:$0xff]  }
 0x128   :  { %v4814_v13 = vld [vmem:[#allocation2 + $0x2b8] ss:$28 sps:$4 sm:$0xff]  }
 0x129   :  { %3233 = vmatpush1.bf16.msra.mxu0 %v4741_v11  ;;  %v4813_v11 = vld [vmem:[#allocation2 + $0x784] ss:$28 sps:$4 sm:$0xff]   ;;  %v4818_v15 = vld [vmem:[#allocation2 + $0x7bc] ss:$28 sps:$4 sm:$0xff]  }
 0x12a   :  { %3153 = vmatpush1.bf16.msra.mxu1 %v4738_v10  ;;  %3234 = vmatprep.subr.bf16.mxu0 %v4749_v16  ;;  %v4810_v10 = vld [vmem:[#allocation2 + $0xc0] ss:$28 sps:$4 sm:$0xff]   ;;  %v4819_v16 = vld [vmem:[#allocation2 + $0x2f0] ss:$28 sps:$4 sm:$0xff]  }
 0x12b   :  { %3154 = vmatprep.subr.bf16.mxu1 %v4746_v14  ;;  %v4815_v14 = vld [vmem:[#allocation2 + $0xf8] ss:$28 sps:$4 sm:$0xff]  }
 0x12d   :  { %3235 = vmatpush1.bf16.msra.mxu0 %v4747_v20  ;;  %v4820_v20 = vld [vmem:[#allocation2 + $0x130] ss:$28 sps:$4 sm:$0xff]  }
 0x12e   :  { %3155 = vmatpush1.bf16.msra.mxu1 %v4744_v17  ;;  %3236 = vmatprep.subr.bf16.mxu0 %v4755_v22  ;;  %v4816_v17 = vld [vmem:[#allocation2 + $0x7b8] ss:$28 sps:$4 sm:$0xff]   ;;  %v4824_v22 = vld [vmem:[#allocation2 + $0x328] ss:$28 sps:$4 sm:$0xff]  }
 0x12f   :  { %3156 = vmatprep.subr.bf16.mxu1 %v4752_v21  ;;  %v4823_v21 = vld [vmem:[#allocation2 + $0x7f4] ss:$28 sps:$4 sm:$0xff]  }
 0x131   :  { %3237 = vmatpush1.bf16.msra.mxu0 %v4753_v25  ;;  %v4825_v25 = vld [vmem:[#allocation2 + $0x168] ss:$28 sps:$4 sm:$0xff]  }
 0x132   :  { %3157 = vmatpush1.bf16.msra.mxu1 %v4750_v23  ;;  %3238 = vmatprep.subr.bf16.mxu0 %v4761_v27  ;;  %v4821_v23 = vld [vmem:[#allocation2 + $0x7f0] ss:$28 sps:$4 sm:$0xff]   ;;  %v4829_v27 = vld [vmem:[#allocation2 + $0x360] ss:$28 sps:$4 sm:$0xff]  }
 0x133   :  { %3158 = vmatprep.subr.bf16.mxu1 %v4758_v26  ;;  %v4828_v26 = vld [vmem:[#allocation2 + $0x82c] ss:$28 sps:$4 sm:$0xff]  }
 0x135   :  { %3239 = vmatpush1.bf16.msra.mxu0 %v4759_v29  ;;  %v4830_v29 = vld [vmem:[#allocation2 + $0x1a0] ss:$28 sps:$4 sm:$0xff]  }
 0x136   :  { %3159 = vmatpush1.bf16.msra.mxu1 %v4756_v28  ;;  %3240 = vmatprep.subr.bf16.mxu0 %v4767_v31  ;;  %v4826_v28 = vld [vmem:[#allocation2 + $0x828] ss:$28 sps:$4 sm:$0xff]   ;;  %v4834_v31 = vld [vmem:[#allocation2 + $0x558] ss:$28 sps:$4 sm:$0xff]  }
 0x137   :  { %3160 = vmatprep.subr.bf16.mxu1 %v4764_v30  ;;  %v4833_v30 = vld [vmem:[#allocation2 + $0x864] ss:$28 sps:$4 sm:$0xff]  }
 0x139   :  { %3241 = vmatpush1.bf16.msra.mxu0 %v4765_v34  ;;  %v4835_v34 = vld [vmem:[#allocation2 + $0x398] ss:$28 sps:$4 sm:$0xff]  }
 0x13a   :  { %3161 = vmatpush1.bf16.msra.mxu1 %v4762_v32  ;;  %3242 = vmatprep.subr.bf16.mxu0 %v4773_v36  ;;  %v4831_v32 = vld [vmem:[#allocation2 + $0x860] ss:$28 sps:$4 sm:$0xff]   ;;  %v4839_v36 = vld [vmem:[#allocation2 + $0x590] ss:$28 sps:$4 sm:$0xff]  }
 0x13b   :  { %3162 = vmatprep.subr.bf16.mxu1 %v4770_v35  ;;  %v4838_v35 = vld [vmem:[#allocation2 + $0x89c] ss:$28 sps:$4 sm:$0xff]  }
 0x13d   :  { %3243 = vmatpush1.bf16.msra.mxu0 %v4771_v38  ;;  %v4840_v38 = vld [vmem:[#allocation2 + $0x3d0] ss:$28 sps:$4 sm:$0xff]  }
 0x13e   :  { %3163 = vmatpush1.bf16.msra.mxu1 %v4768_v37  ;;  %3244 = vmatprep.subr.bf16.mxu0 %v4779_v40  ;;  %v4836_v37 = vld [vmem:[#allocation2 + $0x898] ss:$28 sps:$4 sm:$0xff]   ;;  %v4844_v40 = vld [vmem:[#allocation2 + $0x5c8] ss:$28 sps:$4 sm:$0xff]  }
 0x13f   :  { %3164 = vmatprep.subr.bf16.mxu1 %v4776_v39  ;;  %v4843_v39 = vld [vmem:[#allocation2 + $0x8d4] ss:$28 sps:$4 sm:$0xff]  }
 0x141   :  { %3245 = vmatpush1.bf16.msra.mxu0 %v4777_v43  ;;  %v4845_v43 = vld [vmem:[#allocation2 + $0x408] ss:$28 sps:$4 sm:$0xff]  }
 0x142   :  { %3165 = vmatpush1.bf16.msra.mxu1 %v4774_v41  ;;  %3246 = vmatprep.subr.bf16.mxu0 %v4785_v45  ;;  %v4841_v41 = vld [vmem:[#allocation2 + $0x8d0] ss:$28 sps:$4 sm:$0xff]   ;;  %v4849_v45 = vld [vmem:[#allocation2 + $0x600] ss:$28 sps:$4 sm:$0xff]  }
 0x143   :  { %3166 = vmatprep.subr.bf16.mxu1 %v4782_v44  ;;  %v4848_v44 = vld [vmem:[#allocation2 + $0x90c] ss:$28 sps:$4 sm:$0xff]  }
 0x145   :  { %3247 = vmatpush1.bf16.msra.mxu0 %v4783_v47  ;;  %v4853_v47 = vld [vmem:[#allocation2 + $0x944] ss:$28 sps:$4 sm:$0xff]  }
 0x146   :  { %3167 = vmatpush1.bf16.msra.mxu1 %v4780_v46  ;;  %3248 = vmatprep.subr.bf16.mxu0 %v4789_v50  ;;  %v4850_v46 = vld [vmem:[#allocation2 + $0x440] ss:$28 sps:$4 sm:$0xff]  }
 0x147   :  { %4213 = vmatprep.subr.msk.bf16.mxu1 %vm2831_vm1, %v4207_v49  ;;  %v4851_v49 = vld [vmem:[#allocation2 + $0x940] ss:$28 sps:$4 sm:$0xff]  }
 0x148   :  { %v4858_v50 = vld [vmem:[#allocation2 + $0x97c] ss:$28 sps:$4 sm:$0xff]  }
 0x149   :  { %3249 = vmatpush1.bf16.msra.mxu0 %v4787_v52  ;;  %v4856_v52 = vld [vmem:[#allocation2 + $0x978] ss:$28 sps:$4 sm:$0xff]  }
 0x14a   :  { %3169 = vmatpush1.bf16.msra.mxu1 %v2839_v53  ;;  %3250 = vmatprep.subr.bf16.mxu0 %v4793_v54  ;;  %v4860_v53 = vld [vmem:[#allocation2 + $0x4b0] ss:$28 sps:$4 sm:$0xff]  }
 0x14b   :  { %4218 = vmatprep.subr.bf16.mxu1 %v4794_v57  ;;  %v4863_v54 = vld [vmem:[#allocation2 + $0x9b4] ss:$28 sps:$4 sm:$0xff]   ;;  %v4864_v57 = vld [vmem:[#allocation2 + $0x6a8] ss:$28 sps:$4 sm:$0xff]  }
 0x14d   :  { %3173 = vmatmul.mubr.bf16.vlgmr.msra.gmra.mrb[4].mxu1 %v5044_v55  ;;  %3251 = vmatpush1.bf16.msra.mxu0 %v4791_v58  ;;  %v4861_v58 = vld [vmem:[#allocation2 + $0x9b0] ss:$28 sps:$4 sm:$0xff]  }
 0x14e   :  { %4219 = vmatpush3.bf16.msra.mxu1 %v4795_v59  ;;  %3252 = vmatprep.subr.bf16.mxu0 %v4798_v62  ;;  %v4865_v59 = vld [vmem:[#allocation2 + $0x4e8] ss:$28 sps:$4 sm:$0xff]  }
 0x14f   :  { %4220 = vmatprep.subr.bf16.mxu1 %v4799_v63  ;;  %3377 = vmatprep.mubr.bf16.mxu1 %v5055_v61  ;;  %v4811_v61 = vld [vmem:[#allocation2 + $0x780] ss:$28 sps:$4 sm:$0xff]   ;;  %v4868_v62 = vld [vmem:[#allocation2 + $0x9ec] ss:$28 sps:$4 sm:$0xff]  }
 0x150   :  { %v4869_v63 = vld [vmem:[#allocation2 + $0x6e0] ss:$28 sps:$4 sm:$0xff]  }
 0x151   :  { %3253 = vmatpush1.bf16.msra.mxu0 %v4796_v0  ;;  %v4866_v0 = vld [vmem:[#allocation2 + $0x9e8] ss:$28 sps:$4 sm:$0xff]  }
 0x152   :  { %4221 = vmatpush3.bf16.msra.mxu1 %v4800_v1  ;;  %3263 = vmatprep.subr.bf16.mxu0 %v4803_v2  ;;  %v4870_v1 = vld [vmem:[#allocation2 + $0x520] ss:$28 sps:$4 sm:$0xff]  }
 0x153   :  { %4222 = vmatprep.subr.bf16.mxu1 %v4804_v3  ;;  %v4873_v2 = vld [vmem:[#allocation2 + $0xa24] ss:$28 sps:$4 sm:$0xff]   ;;  %v4874_v3 = vld [vmem:[#allocation2 + $0x8d8] ss:$28 sps:$4 sm:$0xff]  }
 0x154   :  { %3255 = vmatmul.mubr.bf16.vlgmr.msra.gmra.mrb[4].mxu0 %v5063_v18 }
 0x155   :  { %3264 = vmatpush1.bf16.msra.mxu0 %v4801_v4  ;;  %3295 = vmatprep.mubr.bf16.mxu0 %v5080_v33  ;;  %v4871_v4 = vld [vmem:[#allocation2 + $0xa20] ss:$28 sps:$4 sm:$0xff]  }
 0x156   :  { %4223 = vmatpush3.bf16.msra.mxu1 %v4805_v5  ;;  %3265 = vmatprep.subr.bf16.mxu0 %v4808_v6  ;;  %v4875_v5 = vld [vmem:[#allocation2 + $0x718] ss:$28 sps:$4 sm:$0xff]  }
 0x157   :  { %4224 = vmatprep.subr.bf16.mxu1 %v4809_v7  ;;  %v4878_v6 = vld [vmem:[#allocation2 + $0xa5c] ss:$28 sps:$4 sm:$0xff]   ;;  %v4879_v7 = vld [vmem:[#allocation2 + $0x910] ss:$28 sps:$4 sm:$0xff]  }
 0x159   :  { %3266 = vmatpush1.bf16.msra.mxu0 %v4806_v8  ;;  %v4876_v8 = vld [vmem:[#allocation2 + $0xa58] ss:$28 sps:$4 sm:$0xff]  }
 0x15a   :  { %4225 = vmatpush3.bf16.msra.mxu1 %v4810_v10  ;;  %3267 = vmatprep.subr.bf16.mxu0 %v4813_v11  ;;  %v4880_v10 = vld [vmem:[#allocation2 + $0x750] ss:$28 sps:$4 sm:$0xff]  }
 0x15b   :  { %4226 = vmatprep.subr.bf16.mxu1 %v4814_v13  ;;  %v4883_v11 = vld [vmem:[#allocation2 + $0xa94] ss:$28 sps:$4 sm:$0xff]   ;;  %v4884_v13 = vld [vmem:[#allocation2 + $0x948] ss:$28 sps:$4 sm:$0xff]  }
 0x15d   :  { %3268 = vmatpush1.bf16.msra.mxu0 %v4811_v61  ;;  %v4881_v61 = vld [vmem:[#allocation2 + $0xa90] ss:$28 sps:$4 sm:$0xff]  }
 0x15e   :  { %4227 = vmatpush3.bf16.msra.mxu1 %v4815_v14  ;;  %3269 = vmatprep.subr.bf16.mxu0 %v4818_v15  ;;  %v4885_v14 = vld [vmem:[#allocation2 + $0x788] ss:$28 sps:$4 sm:$0xff]  }
 0x15f   :  { %4228 = vmatprep.subr.bf16.mxu1 %v4819_v16  ;;  %v4888_v15 = vld [vmem:[#allocation2 + $0xacc] ss:$28 sps:$4 sm:$0xff]   ;;  %v4889_v16 = vld [vmem:[#allocation2 + $0x980] ss:$28 sps:$4 sm:$0xff]  }
 0x161   :  { %3270 = vmatpush1.bf16.msra.mxu0 %v4816_v17  ;;  %v4890_v17 = vld [vmem:[#allocation2 + $0x7c0] ss:$28 sps:$4 sm:$0xff]  }
 0x162   :  { %4229 = vmatpush3.bf16.msra.mxu1 %v4820_v20  ;;  %3271 = vmatprep.subr.bf16.mxu0 %v4823_v21  ;;  %v4893_v20 = vld [vmem:[#allocation2 + $0xb04] ss:$28 sps:$4 sm:$0xff]   ;;  %v4894_v21 = vld [vmem:[#allocation2 + $0x9b8] ss:$28 sps:$4 sm:$0xff]  }
 0x163   :  { %4230 = vmatprep.subr.bf16.mxu1 %v4824_v22  ;;  %v4895_v22 = vld [vmem:[#allocation2 + $0x7f8] ss:$28 sps:$4 sm:$0xff]  }
 0x165   :  { %3272 = vmatpush1.bf16.msra.mxu0 %v4821_v23  ;;  %v4898_v23 = vld [vmem:[#allocation2 + $0xb3c] ss:$28 sps:$4 sm:$0xff]  }
 0x166   :  { %4231 = vmatpush3.bf16.msra.mxu1 %v4825_v25  ;;  %3273 = vmatprep.subr.bf16.mxu0 %v4828_v26  ;;  %v4899_v25 = vld [vmem:[#allocation2 + $0x9f0] ss:$28 sps:$4 sm:$0xff]   ;;  %v4896_v26 = vld [vmem:[#allocation2 + $0xb38] ss:$28 sps:$4 sm:$0xff]  }
 0x167   :  { %4232 = vmatprep.subr.bf16.mxu1 %v4829_v27  ;;  %v4900_v27 = vld [vmem:[#allocation2 + $0x830] ss:$28 sps:$4 sm:$0xff]  }
 0x169   :  { %3274 = vmatpush1.bf16.msra.mxu0 %v4826_v28  ;;  %v4903_v28 = vld [vmem:[#allocation2 + $0xb74] ss:$28 sps:$4 sm:$0xff]  }
 0x16a   :  { %4233 = vmatpush3.bf16.msra.mxu1 %v4830_v29  ;;  %3275 = vmatprep.subr.bf16.mxu0 %v4833_v30  ;;  %v4904_v29 = vld [vmem:[#allocation2 + $0xa28] ss:$28 sps:$4 sm:$0xff]   ;;  %v4901_v30 = vld [vmem:[#allocation2 + $0xb70] ss:$28 sps:$4 sm:$0xff]  }
 0x16b   :  { %4240 = vmatprep.subr.bf16.mxu1 %v4834_v31  ;;  %v4905_v31 = vld [vmem:[#allocation2 + $0x868] ss:$28 sps:$4 sm:$0xff]  }
 0x16d   :  { %3378 = vmatmul.mubr.bf16.vlgmr.msra.gmra.mrb[8].mxu1 %v5047_v56  ;;  %3276 = vmatpush1.bf16.msra.mxu0 %v4831_v32  ;;  %v4846_v56 = vld [vmem:[#allocation2 + $0x908] ss:$28 sps:$4 sm:$0xff]  }
 0x16e   :  { %4241 = vmatpush3.bf16.msra.mxu1 %v4835_v34  ;;  %3277 = vmatprep.subr.bf16.mxu0 %v4838_v35  ;;  %v4908_v32 = vld [vmem:[#allocation2 + $0xbac] ss:$28 sps:$4 sm:$0xff]   ;;  %v4909_v34 = vld [vmem:[#allocation2 + $0xa60] ss:$28 sps:$4 sm:$0xff]  }
 0x16f   :  { %4242 = vmatprep.subr.bf16.mxu1 %v4839_v36  ;;  %3417 = vmatprep.mubr.bf16.mxu1 %v5072_v24  ;;  %v4855_v24 = vld [vmem:[#allocation2 + $0x478] ss:$28 sps:$4 sm:$0xff]   ;;  %v4906_v35 = vld [vmem:[#allocation2 + $0xba8] ss:$28 sps:$4 sm:$0xff]   ;;  %v4910_v36 = vld [vmem:[#allocation2 + $0x8a0] ss:$28 sps:$4 sm:$0xff]  }
 0x171   :  { %3278 = vmatpush1.bf16.msra.mxu0 %v4836_v37  ;;  %v4913_v37 = vld [vmem:[#allocation2 + $0xbe4] ss:$28 sps:$4 sm:$0xff]  }
 0x172   :  { %4243 = vmatpush3.bf16.msra.mxu1 %v4840_v38  ;;  %3279 = vmatprep.subr.bf16.mxu0 %v4843_v39 }
 0x173   :  { %4244 = vmatprep.subr.bf16.mxu1 %v4844_v40 }
 0x175   :  { %3280 = vmatpush1.bf16.msra.mxu0 %v4841_v41 }
 0x176   :  { %4245 = vmatpush3.bf16.msra.mxu1 %v4845_v43  ;;  %3281 = vmatprep.subr.bf16.mxu0 %v4848_v44  ;;  %v4911_v44 = vld [vmem:[#allocation2 + $0xbe0] ss:$28 sps:$4 sm:$0xff]  }
 0x177   :  { %4246 = vmatprep.subr.bf16.mxu1 %v4849_v45  ;;  %v4914_v45 = vld [vmem:[#allocation2 + $0xa98] ss:$28 sps:$4 sm:$0xff]  }
 0x179   :  { %3282 = vmatpush1.bf16.msra.mxu0 %v4846_v56 }
 0x17a   :  { %4247 = vmatpush3.bf16.msra.mxu1 %v4850_v46  ;;  %3283 = vmatprep.subr.bf16.mxu0 %v4853_v47  ;;  %v4994_v47 = vmov 0  }
 0x17b   :  { %4248 = vmatprep.subr.bf16.mxu1 %v4854_v48  ;;  %v4917_v48 = vld [vmem:[#allocation2 + $0xc1c] ss:$28 sps:$4 sm:$0xff]  }
 0x17d   :  { %3284 = vmatpush1.bf16.msra.mxu0 %v4851_v49 }
 0x17e   :  { %4249 = vmatpush3.bf16.msra.mxu1 %v4855_v24  ;;  %3285 = vmatprep.subr.bf16.mxu0 %v4858_v50  ;;  %v4915_v50 = vld [vmem:[#allocation2 + $0xc18] ss:$28 sps:$4 sm:$0xff]  }
 0x17f   :  { %4250 = vmatprep.subr.bf16.mxu1 %v4859_v51  ;;  %v4918_v51 = vld [vmem:[#allocation2 + $0xad0] ss:$28 sps:$4 sm:$0xff]  }
 0x181   :  { %3286 = vmatpush1.bf16.msra.mxu0 %v4856_v52 }
 0x182   :  { %4251 = vmatpush3.bf16.msra.mxu1 %v4860_v53  ;;  %3287 = vmatprep.subr.bf16.mxu0 %v4863_v54  ;;  %v4921_v53 = vld [vmem:[#allocation2 + $0xc54] ss:$28 sps:$4 sm:$0xff]  }
 0x183   :  { %4252 = vmatprep.subr.bf16.mxu1 %v4864_v57 }
 0x185   :  { %3288 = vmatpush1.bf16.msra.mxu0 %v4861_v58 }
 0x186   :  { %4253 = vmatpush3.bf16.msra.mxu1 %v4865_v59  ;;  %3289 = vmatprep.subr.bf16.mxu0 %v4868_v62  ;;  %v4919_v59 = vld [vmem:[#allocation2 + $0xc50] ss:$28 sps:$4 sm:$0xff]  }
 0x187   :  { %4254 = vmatprep.subr.bf16.mxu1 %v4869_v63  ;;  %v4925_v63 = vld [vmem:[#allocation2 + $0xc8c] ss:$28 sps:$4 sm:$0xff]  }
 0x189   :  { %3290 = vmatpush1.bf16.msra.mxu0 %v4866_v0 }
 0x18a   :  { %4255 = vmatpush3.bf16.msra.mxu1 %v4870_v1  ;;  %3291 = vmatprep.subr.bf16.mxu0 %v4873_v2 }
 0x18b   :  { %4262 = vmatprep.subr.bf16.mxu1 %v4874_v3  ;;  %v4923_v3 = vld [vmem:[#allocation2 + $0xc88] ss:$28 sps:$4 sm:$0xff]  }
 0x18d   :  { %3418 = vmatmul.mubr.bf16.vlgmr.msra.gmra.mrb[12].mxu1 %v5063_v18  ;;  %3292 = vmatpush1.bf16.msra.mxu0 %v4871_v4  ;;  %v4886_v18 = vld [vmem:[#allocation2 + $0xac8] ss:$28 sps:$4 sm:$0xff]   ;;  %v4926_v4 = vld [vmem:[#allocation2 + $0xb40] ss:$28 sps:$4 sm:$0xff]  }
 0x18e   :  { %4263 = vmatpush3.bf16.msra.mxu1 %v4875_v5  ;;  %3293 = vmatprep.subr.bf16.mxu0 %v4878_v6 }
 0x18f   :  { %4264 = vmatprep.subr.bf16.mxu1 %v4879_v7  ;;  %3457 = vmatprep.mubr.bf16.mxu1 %v5080_v33  ;;  %v4891_v33 = vld [vmem:[#allocation2 + $0xb00] ss:$28 sps:$4 sm:$0xff]  }
 0x191   :  { %3294 = vmatpush1.bf16.msra.mxu0 %v4876_v8 }
 0x192   :  { %4265 = vmatpush3.bf16.msra.mxu1 %v4880_v10  ;;  %3304 = vmatprep.subr.bf16.mxu0 %v4883_v11  ;;  %v4927_v10 = vld [vmem:[#allocation2 + $0xcc0] ss:$28 sps:$4 sm:$0xff]   ;;  %v4930_v11 = vld [vmem:[#allocation2 + $0xb78] ss:$28 sps:$4 sm:$0xff]  }
 0x193   :  { %4266 = vmatprep.subr.bf16.mxu1 %v4884_v13 }
 0x194   :  { %3296 = vmatmul.mubr.bf16.vlgmr.msra.gmra.mrb[4].mxu0 %v5066_v19 }
 0x195   :  { %3305 = vmatpush1.bf16.msra.mxu0 %v4881_v61  ;;  %4216 = vmatprep.mubr.msk.bf16.mxu0 %vm2827_vm0, %v5051_v60  ;;  %v4933_v61 = vld [vmem:[#allocation2 + $0xcfc] ss:$28 sps:$4 sm:$0xff]  }
 0x196   :  { %4267 = vmatpush3.bf16.msra.mxu1 %v4885_v14  ;;  %3306 = vmatprep.subr.bf16.mxu0 %v4888_v15 }
 0x197   :  { %4268 = vmatprep.subr.bf16.mxu1 %v4889_v16 }
 0x199   :  { %3307 = vmatpush1.bf16.msra.mxu0 %v4886_v18  ;;  %v4931_v18 = vld [vmem:[#allocation2 + $0xcf8] ss:$28 sps:$4 sm:$0xff]  }
 0x19a   :  { %4269 = vmatpush3.bf16.msra.mxu1 %v4890_v17  ;;  %3308 = vmatprep.subr.bf16.mxu0 %v4893_v20  ;;  %v4934_v17 = vld [vmem:[#allocation2 + $0xbb0] ss:$28 sps:$4 sm:$0xff]  }
 0x19b   :  { %4270 = vmatprep.subr.bf16.mxu1 %v4894_v21 }
 0x19d   :  { %3309 = vmatpush1.bf16.msra.mxu0 %v4891_v33  ;;  %v4937_v33 = vld [vmem:[#allocation2 + $0xd34] ss:$28 sps:$4 sm:$0xff]  }
 0x19e   :  { %4271 = vmatpush3.bf16.msra.mxu1 %v4895_v22  ;;  %3310 = vmatprep.subr.bf16.mxu0 %v4898_v23 }
 0x19f   :  { %4272 = vmatprep.subr.bf16.mxu1 %v4899_v25 }
 0x1a1   :  { %3311 = vmatpush1.bf16.msra.mxu0 %v4896_v26  ;;  %v4935_v26 = vld [vmem:[#allocation2 + $0xd30] ss:$28 sps:$4 sm:$0xff]  }
 0x1a2   :  { %4273 = vmatpush3.bf16.msra.mxu1 %v4900_v27  ;;  %3312 = vmatprep.subr.bf16.mxu0 %v4903_v28  ;;  %v4938_v27 = vld [vmem:[#allocation2 + $0xbe8] ss:$28 sps:$4 sm:$0xff]  }
 0x1a3   :  { %4274 = vmatprep.subr.bf16.mxu1 %v4904_v29  ;;  %v4941_v29 = vld [vmem:[#allocation2 + $0xd6c] ss:$28 sps:$4 sm:$0xff]  }
 0x1a5   :  { %3313 = vmatpush1.bf16.msra.mxu0 %v4901_v30 }
 0x1a6   :  { %4275 = vmatpush3.bf16.msra.mxu1 %v4905_v31  ;;  %3314 = vmatprep.subr.bf16.mxu0 %v4908_v32  ;;  %v532_v31 = vld [vmem:[#allocation2 + $0xda0] sm:$0xff] }
 0x1a7   :  { %4276 = vmatprep.subr.bf16.mxu1 %v4909_v34  ;;  %v2969_v38 = vpop.f32.mrb[0].mxu0 }
 0x1a8   :  { %v4284_v39 = vadd.f32 %v5093_v9, %v2969_v38  ;;  %v2971_v40 = vpop.f32.mrb[1].mxu0  ;;  %v4209_v38 = vcombine.high %v532_v31, %v532_v31 }
 0x1a9   :  { %v4285_v41 = vadd.f32 %v5095_v12, %v2971_v40  ;;  %v2973_v43 = vpop.f32.mrb[2].mxu0  ;;  %3315 = vmatpush1.bf16.msra.mxu0 %v4906_v35  ;;  %v4939_v35 = vld [vmem:[#allocation2 + $0xd68] ss:$28 sps:$4 sm:$0xff]  }
 0x1aa   :  { %4277 = vmatpush3.bf16.msra.mxu1 %v4910_v36  ;;  %v3505_v56 = vsel %vm2831_vm1, %v4284_v39, 0.0  ;;  %v2974_v46 = vpop.f32.mrb[3].mxu0  ;;  %3316 = vmatprep.subr.bf16.mxu0 %v4913_v37  ;;  %v4942_v36 = vld [vmem:[#allocation2 + $0xc20] ss:$28 sps:$4 sm:$0xff]  }
 0x1ab   :  { %3465 = vmatprep.subr.bf16.mxu1 %v4994_v47  ;;  %v3506_v49 = vrot.slane %v3505_v56, 4  ;;  %v3512_v24 = vsel %vm2831_vm1, %v4285_v41, 0.0 }
 0x1ac   :  { %v3513_v9 = vrot.slane %v3512_v24, 4 }
 0x1ad   :  { %3458 = vmatmul.mubr.bf16.vlgmr.msra.gmra.mrb[16].mxu1 %v5066_v19  ;;  %v3507_v12 = vadd.f32 %v3506_v49, %v3505_v56  ;;  %3317 = vmatpush1.bf16.msra.mxu0 %v4911_v44  ;;  %v4922_v19 = vld [vmem:[#allocation2 + $0xb08] ss:$28 sps:$4 sm:$0xff]   ;;  %v4945_v44 = vld [vmem:[#allocation2 + $0xc58] ss:$28 sps:$4 sm:$0xff]  }
 0x1ae   :  { %3466 = vmatpush1.bf16.msra.mxu1 %v4914_v45  ;;  %v3514_v52 = vadd.f32 %v3513_v9, %v3512_v24  ;;  %3318 = vmatprep.subr.bf16.mxu0 %v4917_v48  ;;  %v4946_v24 = vld [vmem:[#allocation2 + $0xc90] ss:$28 sps:$4 sm:$0xff]   ;;  %v4947_v9 = vld [vmem:[#allocation2 + $0xcc8] ss:$28 sps:$4 sm:$0xff]  }
 0x1af   :  { %3467 = vmatprep.subr.bf16.mxu1 %v4994_v47  ;;  %v3508_v54 = vrot.slane %v3507_v12, 2  ;;  %4217 = vmatprep.mubr.msk.bf16.mxu1 %vm2827_vm0, %v5051_v60  ;;  %v4929_v60 = vld [vmem:[#allocation2 + $0xcc4] ss:$28 sps:$4 sm:$0xff]  }
 0x1b0   :  { %v3515_v57 = vrot.slane %v3514_v52, 2 }
 0x1b1   :  { %v3509_v58 = vadd.f32 %v3508_v54, %v3507_v12  ;;  %3319 = vmatpush1.bf16.msra.mxu0 %v4915_v50  ;;  %v3658_v12 = vsub.s32 0, %v5032_v42  ;;  %v5145_v50 = vld [vmem:[%s5205_s2] sm:$0x7f] }
 0x1b2   :  { %3468 = vmatpush1.bf16.msra.mxu1 %v4918_v51  ;;  %v3516_v62 = vadd.f32 %v3515_v57, %v3514_v52  ;;  %3320 = vmatprep.subr.bf16.mxu0 %v4921_v53  ;;  %v3662_v51 = vsub.s32 1, %v5032_v42  ;;  %v4948_v52 = vld [vmem:[#allocation2 + $0xd00] ss:$28 sps:$4 sm:$0xff]  }
 0x1b3   :  { %3469 = vmatprep.subr.bf16.mxu1 %v4994_v47  ;;  %v3510_v0 = vrot.slane %v3509_v58, 1  ;;  %v5151_v53 = vld [vmem:[%s5206_s3] sm:$0x7f]  ;;  %v3659_v54 = vrot.slane %v5145_v50, %v3658_v12 }
 0x1b4   :  { %v3517_v1 = vrot.slane %v3516_v62, 1 }
 0x1b5   :  { %v3511_v2 = vadd.f32 %v3510_v0, %v3509_v58  ;;  %3321 = vmatpush1.bf16.msra.mxu0 %v4919_v59  ;;  %v3663_v58 = vrot.slane %v5145_v50, %v3662_v51 }
 0x1b6   :  { %3470 = vmatpush1.bf16.msra.mxu1 %v4922_v19  ;;  %v3518_v5 = vadd.f32 %v3517_v1, %v3516_v62  ;;  %3322 = vmatprep.subr.bf16.mxu0 %v4925_v63  ;;  %v3703_v62 = vrot.slane %v5151_v53, %v3658_v12  ;;  %v4949_v63 = vld [vmem:[#allocation2 + $0xd38] ss:$28 sps:$4 sm:$0xff]   ;;  %v3707_v1 = vrot.slane %v5151_v53, %v3662_v51 }
 0x1b7   :  { %3471 = vmatprep.subr.bf16.mxu1 %v4994_v47  ;;  %v3556_v6 = vmul.f32 0.25, %v3511_v2 }
 0x1b8   :  { %v3557_v7 = vmul.f32 0.25, %v3518_v5  ;;  %v4950_v5 = vld [vmem:[#allocation2 + $0xd70] ss:$28 sps:$4 sm:$0xff]  }
 0x1b9   :  { %v5121_v8 = vsub.f32 %v4284_v39, %v3556_v6  ;;  %3323 = vmatpush1.bf16.msra.mxu0 %v4923_v3  ;;  %v4208_v39 = vcombine.low %v532_v31, %v532_v31  ;;  %v4951_v6 = vld [vmem:[#allocation2 + $0xda8] ss:$0 sps:$4 sm:$0xff]  }
 0x1ba   :  { %3472 = vmatpush1.bf16.msra.mxu1 %v4926_v4  ;;  %v5123_v13 = vsub.f32 %v4285_v41, %v3557_v7  ;;  %3324 = vmatprep.subr.bf16.mxu0 %v4929_v60 }
 0x1bb   :  { %3473 = vmatprep.subr.bf16.mxu1 %v4994_v47  ;;  %v3570_v14 = vmul.f32 %v5121_v8, %v5121_v8  ;;  %v2845_v56 = vsel %vm2831_vm1, %v4208_v39, 0 }
 0x1bc   :  { %v3571_v15 = vmul.f32 %v5123_v13, %v5123_v13 }
 0x1bd   :  { %v3577_v16 = vsel %vm2831_vm1, %v3570_v14, 0.0  ;;  %3325 = vmatpush1.bf16.msra.mxu0 %v4927_v10 }
 0x1be   :  { %3474 = vmatpush1.bf16.msra.mxu1 %v4930_v11  ;;  %v3578_v20 = vrot.slane %v3577_v16, 4  ;;  %v3584_v21 = vsel %vm2831_vm1, %v3571_v15, 0.0  ;;  %3326 = vmatprep.subr.bf16.mxu0 %v4933_v61  ;;  %v2851_v11 = vsel %vm2831_vm1, %v4951_v6, 0 }
 0x1bf   :  { %3475 = vmatprep.subr.bf16.mxu1 %v4994_v47  ;;  %v3585_v22 = vrot.slane %v3584_v21, 4 }
 0x1c0   :  { %v3579_v23 = vadd.f32 %v3578_v20, %v3577_v16 }
 0x1c1   :  { %v3586_v25 = vadd.f32 %v3585_v22, %v3584_v21  ;;  %3327 = vmatpush1.bf16.msra.mxu0 %v4931_v18 }
 0x1c2   :  { %3476 = vmatpush1.bf16.msra.mxu1 %v4934_v17  ;;  %v3580_v28 = vrot.slane %v3579_v23, 2  ;;  %3328 = vmatprep.subr.bf16.mxu0 %v4937_v33 }
 0x1c3   :  { %3477 = vmatprep.subr.bf16.mxu1 %v4994_v47  ;;  %v3587_v30 = vrot.slane %v3586_v25, 2 }
 0x1c4   :  { %v3581_v32 = vadd.f32 %v3580_v28, %v3579_v23 }
 0x1c5   :  { %v3588_v34 = vadd.f32 %v3587_v30, %v3586_v25  ;;  %3329 = vmatpush1.bf16.msra.mxu0 %v4935_v26 }
 0x1c6   :  { %3478 = vmatpush1.bf16.msra.mxu1 %v4938_v27  ;;  %v3582_v37 = vrot.slane %v3581_v32, 1  ;;  %3330 = vmatprep.subr.bf16.mxu0 %v4941_v29 }
 0x1c7   :  { %3479 = vmatprep.subr.bf16.mxu1 %v4994_v47  ;;  %v3589_v40 = vrot.slane %v3588_v34, 1 }
 0x1c8   :  { %v3583_v41 = vadd.f32 %v3582_v37, %v3581_v32 }
 0x1c9   :  { %v3590_v43 = vadd.f32 %v3589_v40, %v3588_v34  ;;  %3331 = vmatpush1.bf16.msra.mxu0 %v4939_v35 }
 0x1ca   :  { %3480 = vmatpush1.bf16.msra.mxu1 %v4942_v36  ;;  %v3626_v45 = vmul.f32 0.25, %v3583_v41  ;;  %4215 = vmatprep.subr.msk.bf16.mxu0 %vm2831_vm1, %v4209_v38 }
 0x1cb   :  { %3481 = vmatprep.subr.bf16.mxu1 %v4994_v47  ;;  %v3627_v46 = vmul.f32 0.25, %v3590_v43 }
 0x1cc   :  { %v3633_v48 = vadd.f32 1e-05, %v3626_v45 }
 0x1cd   :  { %v3634_v49 = vadd.f32 1e-05, %v3627_v46  ;;  %3333 = vmatpush1.bf16.msra.mxu0 %v2845_v56 }
 0x1ce   :  { %3482 = vmatpush1.bf16.msra.mxu1 %v4945_v44  ;;  %4952 = vrsqrt.f32 %v3633_v48 }
 0x1cf   :  { %3483 = vmatprep.subr.bf16.mxu1 %v4994_v47  ;;  %4954 = vrsqrt.f32 %v3634_v49 }
 0x1d0   :  { %3337 = vmatmul.mubr.bf16.vlgmr.msra.gmra.mrb[4].mxu0 %v5044_v55 }
 0x1d2   :  { %3484 = vmatpush1.bf16.msra.mxu1 %v4946_v24 }
 0x1d3   :  { %3485 = vmatprep.subr.bf16.mxu1 %v4994_v47 }
 0x1d6   :  { %3486 = vmatpush1.bf16.msra.mxu1 %v4947_v9 }
 0x1d7   :  { %3487 = vmatprep.subr.bf16.mxu1 %v4994_v47 }
 0x1d8   :  { %v4953_v57 = vpop.eup %4952 }
 0x1d9   :  { %v4955_v59 = vpop.eup %4954  ;;  %v3647_v19 = vmul.f32 %v4953_v57, %v5121_v8 }
 0x1da   :  { %3488 = vmatpush1.bf16.msra.mxu1 %v4948_v52  ;;  %v3648_v0 = vmul.f32 %v4955_v59, %v5123_v13 }
 0x1db   :  { %3489 = vmatprep.subr.bf16.mxu1 %v4994_v47  ;;  %v3691_v2 = vmul.f32 %v3659_v54, %v3647_v19 }
 0x1dc   :  { %v3692_v3 = vmul.f32 %v3663_v58, %v3648_v0 }
 0x1dd   :  { %v3735_v4 = vadd.f32 %v3703_v62, %v3691_v2  ;;  %v3666_v62 = vsub.s32 2, %v5032_v42 }
 0x1de   :  { %3490 = vmatpush1.bf16.msra.mxu1 %v4949_v63  ;;  %v3736_v60 = vadd.f32 %v3707_v1, %v3692_v3  ;;  %v3670_v63 = vsub.s32 3, %v5032_v42 }
 0x1df   :  { %3491 = vmatprep.subr.bf16.mxu1 %v4994_v47  ;;  %v3742_v7 = vmax.f32 %v3735_v4, 0.0  ;;  %v3667_v0 = vrot.slane %v5145_v50, %v3666_v62 }
 0x1e0   :  { %v3743_v8 = vmax.f32 %v3736_v60, 0.0  ;;  %v3671_v2 = vrot.slane %v5145_v50, %v3670_v63  ;;  %v3715_v6 = vrot.slane %v5151_v53, %v3670_v63 }
 0x1e2   :  { %3492 = vmatpush1.bf16.msra.mxu1 %v4950_v5  ;;  %v3755_v10 = vcombine.low %v3742_v7, %v3743_v8  ;;  %v3711_v5 = vrot.slane %v5151_v53, %v3666_v62 }
 0x1e3   :  { %3493 = vmatprep.subr.bf16.mxu1 %v4994_v47 }
 0x1e4   :  { %3761 = vst [vmem:[%s5207_s4] sm:$0xff] %v3755_v10 }
 0x1e6   :  { %3494 = vmatpush1.bf16.msra.mxu1 %v2851_v11 }
 0x1e9   :  { %3498 = vmatmul.mubr.bf16.vlgmr.msra.gmra.mrb[20].mxu1 %v5044_v55 }
 0x220   :  { %v3174_v13 = vpop.f32.mrb[4].mxu1 }
 0x221   :  { %v3519_v61 = vsel %vm2831_vm1, %v3174_v13, 0.0  ;;  %v3176_v14 = vpop.f32.mrb[5].mxu1 }
 0x222   :  { %v3520_v15 = vrot.slane %v3519_v61, 4  ;;  %v3526_v16 = vsel %vm2831_vm1, %v3176_v14, 0.0  ;;  %v3178_v18 = vpop.f32.mrb[6].mxu1 }
 0x223   :  { %v3527_v17 = vrot.slane %v3526_v16, 4  ;;  %v3179_v20 = vpop.f32.mrb[7].mxu1 }
 0x224   :  { %v3521_v47 = vadd.f32 %v3520_v15, %v3519_v61 }
 0x225   :  { %v3528_v21 = vadd.f32 %v3527_v17, %v3526_v16 }
 0x226   :  { %v3522_v33 = vrot.slane %v3521_v47, 2 }
 0x227   :  { %v3529_v22 = vrot.slane %v3528_v21, 2 }
 0x228   :  { %v3523_v23 = vadd.f32 %v3522_v33, %v3521_v47 }
 0x229   :  { %v3530_v25 = vadd.f32 %v3529_v22, %v3528_v21 }
 0x22a   :  { %v3524_v26 = vrot.slane %v3523_v23, 1 }
 0x22b   :  { %v3531_v27 = vrot.slane %v3530_v25, 1 }
 0x22c   :  { %v3525_v28 = vadd.f32 %v3524_v26, %v3523_v23 }
 0x22d   :  { %v3532_v55 = vadd.f32 %v3531_v27, %v3530_v25 }
 0x22e   :  { %v3558_v29 = vmul.f32 0.25, %v3525_v28 }
 0x22f   :  { %v3559_v30 = vmul.f32 0.25, %v3532_v55 }
 0x230   :  { %v3565_v31 = vsub.f32 %v3174_v13, %v3558_v29 }
 0x231   :  { %v3566_v32 = vsub.f32 %v3176_v14, %v3559_v30 }
 0x232   :  { %v3572_v34 = vmul.f32 %v3565_v31, %v3565_v31 }
 0x233   :  { %v3573_v35 = vmul.f32 %v3566_v32, %v3566_v32 }
 0x234   :  { %v3591_v36 = vsel %vm2831_vm1, %v3572_v34, 0.0 }
 0x235   :  { %v3592_v37 = vrot.slane %v3591_v36, 4  ;;  %v3598_v38 = vsel %vm2831_vm1, %v3573_v35, 0.0 }
 0x236   :  { %v3599_v39 = vrot.slane %v3598_v38, 4 }
 0x237   :  { %v3593_v40 = vadd.f32 %v3592_v37, %v3591_v36 }
 0x238   :  { %v3600_v41 = vadd.f32 %v3599_v39, %v3598_v38 }
 0x239   :  { %v3594_v43 = vrot.slane %v3593_v40, 2 }
 0x23a   :  { %v3601_v44 = vrot.slane %v3600_v41, 2 }
 0x23b   :  { %v3595_v45 = vadd.f32 %v3594_v43, %v3593_v40 }
 0x23c   :  { %v3602_v56 = vadd.f32 %v3601_v44, %v3600_v41 }
 0x23d   :  { %v3596_v46 = vrot.slane %v3595_v45, 1 }
 0x23e   :  { %v3603_v48 = vrot.slane %v3602_v56, 1 }
 0x23f   :  { %v3597_v49 = vadd.f32 %v3596_v46, %v3595_v45 }
 0x240   :  { %v3604_v24 = vadd.f32 %v3603_v48, %v3602_v56  ;;  %v4234_v9 = vpop.f32.mrb[8].mxu1 }
 0x241   :  { %v3628_v12 = vmul.f32 0.25, %v3597_v49  ;;  %v4235_v51 = vpop.f32.mrb[9].mxu1 }
 0x242   :  { %v3629_v52 = vmul.f32 0.25, %v3604_v24  ;;  %v4236_v54 = vadd.f32 %v4235_v51, %v4234_v9  ;;  %v4237_v57 = vpop.f32.mrb[10].mxu1 }
 0x243   :  { %v3635_v58 = vadd.f32 1e-05, %v3628_v12  ;;  %v4238_v59 = vpop.f32.mrb[11].mxu1 }
 0x244   :  { %v3636_v19 = vadd.f32 1e-05, %v3629_v52 }
 0x245   :  { %4956 = vrsqrt.f32 %v3635_v58 }
 0x246   :  { %4958 = vrsqrt.f32 %v3636_v19 }
 0x24f   :  { %v4957_v1 = vpop.eup %4956 }
 0x250   :  { %v4959_v3 = vpop.eup %4958  ;;  %v3649_v4 = vmul.f32 %v4957_v1, %v3565_v31 }
 0x251   :  { %v3650_v60 = vmul.f32 %v4959_v3, %v3566_v32 }
 0x252   :  { %v3693_v7 = vmul.f32 %v3667_v0, %v3649_v4 }
 0x253   :  { %v3694_v8 = vmul.f32 %v3671_v2, %v3650_v60 }
 0x254   :  { %v3737_v10 = vadd.f32 %v3711_v5, %v3693_v7 }
 0x255   :  { %v3738_v11 = vadd.f32 %v3715_v6, %v3694_v8 }
 0x256   :  { %v3744_v13 = vmax.f32 %v3737_v10, 0.0 }
 0x257   :  { %v3745_v61 = vmax.f32 %v3738_v11, 0.0 }
 0x259   :  { %v3756_v14 = vcombine.low %v3744_v13, %v3745_v61 }
 0x25b   :  { %3762 = vst [vmem:[%s5207_s4 + $0x8] sm:$0xff] %v3756_v14 }
 0x260   :  { %v4256_v15 = vpop.f32.mrb[12].mxu1 }
 0x261   :  { %v4257_v16 = vpop.f32.mrb[13].mxu1 }
 0x262   :  { %v4258_v18 = vadd.f32 %v4257_v16, %v4256_v15  ;;  %v4259_v17 = vpop.f32.mrb[14].mxu1 }
 0x263   :  { %v4260_v20 = vpop.f32.mrb[15].mxu1 }
 0x264   :  { %v3420_v47 = vadd.f32 %v4258_v18, %v4236_v54 }
 0x280   :  { %v4278_v21 = vpop.f32.mrb[16].mxu1 }
 0x281   :  { %v4279_v33 = vpop.f32.mrb[17].mxu1 }
 0x282   :  { %v4280_v22 = vadd.f32 %v4279_v33, %v4278_v21  ;;  %v4281_v23 = vpop.f32.mrb[18].mxu1  ;;  %v3674_v21 = vsub.s32 4, %v5032_v42 }
 0x283   :  { %v4282_v25 = vpop.f32.mrb[19].mxu1 }
 0x284   :  { %v3460_v26 = vadd.f32 %v4280_v22, %v3420_v47  ;;  %v3678_v22 = vsub.s32 5, %v5032_v42  ;;  %v3675_v25 = vrot.slane %v5145_v50, %v3674_v21 }
 0x2a3   :  { %v3338_v27 = vpop.f32.mrb[4].mxu0 }
 0x2a4   :  { %v3533_v28 = vsel %vm2831_vm1, %v3338_v27, 0.0  ;;  %v3340_v55 = vpop.f32.mrb[5].mxu0 }
 0x2a5   :  { %v3534_v29 = vrot.slane %v3533_v28, 4  ;;  %v3540_v30 = vsel %vm2831_vm1, %v3340_v55, 0.0  ;;  %v3342_v31 = vpop.f32.mrb[6].mxu0 }
 0x2a6   :  { %v3541_v32 = vrot.slane %v3540_v30, 4  ;;  %v3343_v34 = vpop.f32.mrb[7].mxu0  ;;  %v3719_v31 = vrot.slane %v5151_v53, %v3674_v21 }
 0x2a7   :  { %v3535_v35 = vadd.f32 %v3534_v29, %v3533_v28  ;;  %v3679_v28 = vrot.slane %v5145_v50, %v3678_v22  ;;  %v3723_v34 = vrot.slane %v5151_v53, %v3678_v22 }
 0x2a8   :  { %v3542_v36 = vadd.f32 %v3541_v32, %v3540_v30 }
 0x2a9   :  { %v3536_v37 = vrot.slane %v3535_v35, 2 }
 0x2aa   :  { %v3543_v38 = vrot.slane %v3542_v36, 2 }
 0x2ab   :  { %v3537_v39 = vadd.f32 %v3536_v37, %v3535_v35 }
 0x2ac   :  { %v3544_v40 = vadd.f32 %v3543_v38, %v3542_v36 }
 0x2ad   :  { %v3538_v41 = vrot.slane %v3537_v39, 1 }
 0x2ae   :  { %v3545_v43 = vrot.slane %v3544_v40, 1 }
 0x2af   :  { %v3539_v44 = vadd.f32 %v3538_v41, %v3537_v39 }
 0x2b0   :  { %v3546_v45 = vadd.f32 %v3545_v43, %v3544_v40 }
 0x2b1   :  { %v3560_v56 = vmul.f32 0.25, %v3539_v44 }
 0x2b2   :  { %v3561_v46 = vmul.f32 0.25, %v3546_v45 }
 0x2b3   :  { %v3567_v48 = vsub.f32 %v3338_v27, %v3560_v56 }
 0x2b4   :  { %v3568_v49 = vsub.f32 %v3340_v55, %v3561_v46 }
 0x2b5   :  { %v3574_v24 = vmul.f32 %v3567_v48, %v3567_v48 }
 0x2b6   :  { %v3575_v9 = vmul.f32 %v3568_v49, %v3568_v49 }
 0x2b7   :  { %v3605_v12 = vsel %vm2831_vm1, %v3574_v24, 0.0  ;;  %v3682_v24 = vsub.s32 6, %v5032_v42 }
 0x2b8   :  { %v3606_v51 = vrot.slane %v3605_v12, 4  ;;  %v3612_v52 = vsel %vm2831_vm1, %v3575_v9, 0.0 }
 0x2b9   :  { %v3613_v54 = vrot.slane %v3612_v52, 4  ;;  %v3683_v9 = vrot.slane %v5145_v50, %v3682_v24 }
 0x2ba   :  { %v3607_v57 = vadd.f32 %v3606_v51, %v3605_v12 }
 0x2bb   :  { %v3614_v58 = vadd.f32 %v3613_v54, %v3612_v52  ;;  %v3727_v52 = vrot.slane %v5151_v53, %v3682_v24 }
 0x2bc   :  { %v3499_v59 = vpop.f32.mrb[20].mxu1  ;;  %v3608_v19 = vrot.slane %v3607_v57, 2 }
 0x2bd   :  { %v3500_v62 = vadd.f32 %v3499_v59, %v3460_v26  ;;  %v3501_v63 = vpop.f32.mrb[21].mxu1  ;;  %v3615_v0 = vrot.slane %v3614_v58, 2 }
 0x2be   :  { %v3502_v1 = vpop.f32.mrb[22].mxu1  ;;  %v3609_v2 = vadd.f32 %v3608_v19, %v3607_v57 }
 0x2bf   :  { %v3548_v3 = vsel %vm3547_vm2, %v3500_v62, 0.0  ;;  %v3503_v4 = vpop.f32.mrb[23].mxu1  ;;  %v3616_v5 = vadd.f32 %v3615_v0, %v3614_v58 }
 0x2c0   :  { %v3549_v60 = vrot.slane %v3548_v3, 4  ;;  %v3610_v6 = vrot.slane %v3609_v2, 1 }
 0x2c1   :  { %v3617_v7 = vrot.slane %v3616_v5, 1 }
 0x2c2   :  { %v3550_v8 = vadd.f32 %v3549_v60, %v3548_v3  ;;  %v3611_v10 = vadd.f32 %v3610_v6, %v3609_v2 }
 0x2c3   :  { %v3618_v11 = vadd.f32 %v3617_v7, %v3616_v5 }
 0x2c4   :  { %v3551_v13 = vrot.slane %v3550_v8, 2  ;;  %v3630_v61 = vmul.f32 0.25, %v3611_v10 }
 0x2c5   :  { %v3631_v14 = vmul.f32 0.25, %v3618_v11 }
 0x2c6   :  { %v3552_v15 = vadd.f32 %v3551_v13, %v3550_v8  ;;  %v3637_v16 = vadd.f32 1e-05, %v3630_v61 }
 0x2c7   :  { %v3638_v18 = vadd.f32 1e-05, %v3631_v14 }
 0x2c8   :  { %v3553_v17 = vrot.slane %v3552_v15, 1  ;;  %4960 = vrsqrt.f32 %v3637_v16 }
 0x2c9   :  { %4962 = vrsqrt.f32 %v3638_v18 }
 0x2ca   :  { %v3554_v20 = vadd.f32 %v3553_v17, %v3552_v15 }
 0x2cc   :  { %v3562_v47 = vmul.f32 0.25, %v3554_v20 }
 0x2ce   :  { %v3569_v33 = vsub.f32 %v3500_v62, %v3562_v47 }
 0x2d0   :  { %v3576_v23 = vmul.f32 %v3569_v33, %v3569_v33 }
 0x2d2   :  { %v3619_v26 = vsel %vm3547_vm2, %v3576_v23, 0.0  ;;  %v4961_v27 = vpop.eup %4960 }
 0x2d3   :  { %v3620_v55 = vrot.slane %v3619_v26, 4  ;;  %v4963_v29 = vpop.eup %4962  ;;  %v3651_v30 = vmul.f32 %v4961_v27, %v3567_v48 }
 0x2d4   :  { %v3652_v32 = vmul.f32 %v4963_v29, %v3568_v49 }
 0x2d5   :  { %v3621_v35 = vadd.f32 %v3620_v55, %v3619_v26  ;;  %v3695_v36 = vmul.f32 %v3675_v25, %v3651_v30 }
 0x2d6   :  { %v3696_v37 = vmul.f32 %v3679_v28, %v3652_v32 }
 0x2d7   :  { %v3622_v38 = vrot.slane %v3621_v35, 2  ;;  %v3739_v39 = vadd.f32 %v3719_v31, %v3695_v36 }
 0x2d8   :  { %v3740_v40 = vadd.f32 %v3723_v34, %v3696_v37 }
 0x2d9   :  { %v3623_v41 = vadd.f32 %v3622_v38, %v3621_v35  ;;  %v3746_v43 = vmax.f32 %v3739_v39, 0.0 }
 0x2da   :  { %v3747_v44 = vmax.f32 %v3740_v40, 0.0 }
 0x2db   :  { %v3624_v45 = vrot.slane %v3623_v41, 1 }
 0x2dc   :  { %v3757_v56 = vcombine.low %v3746_v43, %v3747_v44 }
 0x2dd   :  { %v3625_v46 = vadd.f32 %v3624_v45, %v3623_v41 }
 0x2de   :  { %3763 = vst [vmem:[%s5207_s4 + $0x10] sm:$0xff] %v3757_v56 }
 0x2df   :  { %v3632_v48 = vmul.f32 0.25, %v3625_v46 }
 0x2e1   :  { %v3639_v49 = vadd.f32 1e-05, %v3632_v48 }
 0x2e3   :  { %4964 = vrsqrt.f32 %v3639_v49 }
 0x2ed   :  { %v4965_v12 = vpop.eup %4964 }
 0x2ee   :  { %v3653_v51 = vmul.f32 %v4965_v12, %v3569_v33 }
 0x2f0   :  { %v3697_v54 = vmul.f32 %v3683_v9, %v3653_v51 }
 0x2f2   :  { %v3741_v57 = vadd.f32 %v3727_v52, %v3697_v54 }
 0x2f4   :  { %v3748_v58 = vmax.f32 %v3741_v57, 0.0 }
 0x2f6   :  { %3764 = vst.msk [vmem:[%s5207_s4 + $0x18] sm:$0xf] %vm3547_vm2, %v3748_v58 }
 0x2f7   :  { %3769 = vsyncpa [#allocation3], 1 }

// kernel: decoder_forward.6
= control target key start
LH: loop header
LB: loop body
LE: loop exit
PB: predicated region body
PF: predicated region fallthrough
CT: control target
= control target key end

     0   :  { %v1109_v0 = vmov 0   ;;  %vm232_vm0 = vcmask 130048   ;;  %v1110_v40 = vmov 0.0|0.0   ;;  %vm1111_vm1 = vmmov 0   ;;  %s1616_s1 = inlined_call_operand.vmem [shape: bf16[144,128], index: 1, kind: input, shape index: {}]   ;;  %s1617_s0 = inlined_call_operand.vmem [shape: bf16[196,144], index: 0, kind: input, shape index: {}]   ;;  %s1618_s4 = inlined_call_operand.vmem [shape: f32[128,128], index: 4, kind: input, shape index: {}]   ;;  %s1619_s2 = inlined_call_operand.vmem [shape: f32[1,128], index: 2, kind: input, shape index: {}]   ;;  %s1620_s3 = inlined_call_operand.vmem [shape: f32[1,128], index: 3, kind: input, shape index: {}]   ;;  %s1621_s5 = inlined_call_operand.vmem [shape: f32[196,128], index: 5, kind: output, shape index: {}]  }
   0x1   :  { %272 = vmatprep.subr.bf16.mxu0 %v1109_v0  ;;  %v1060_v1 = vld [vmem:[%s1616_s1] sm:$0xff]   ;;  %1038 = vmatprep.subr.bf16.mxu1 %v1109_v0  ;;  %v1061_v2 = vld [vmem:[%s1616_s1 + $0x8] sm:$0xff]   ;;  %v1062_v3 = vld [vmem:[%s1616_s1 + $0x10] sm:$0xff]   ;;  %v1112_v62 = vmov 0.0   ;;  %vm431_vm2 = vcmask 1043456  }
   0x2   :  { %273 = vmatpush1.bf16.msra.mxu0 %v1060_v1  ;;  %1047 = vmatpush1.bf16.msra.mxu1 %v1060_v1  ;;  %v1063_v4 = vld [vmem:[%s1616_s1 + $0x18] sm:$0xff]   ;;  %v1071_v5 = vld [vmem:[%s1617_s0 + $0x4] ss:$8 sps:$4 sm:$0xff]   ;;  %v1066_v9 = vld [vmem:[%s1616_s1 + $0x30] sm:$0xff]  }
   0x3   :  { %274 = vmatprep.subr.bf16.mxu0 %v1109_v0  ;;  %1039 = vmatprep.subr.bf16.mxu1 %v1109_v0  ;;  %v1064_v6 = vld [vmem:[%s1616_s1 + $0x20] sm:$0xff]   ;;  %v1065_v7 = vld [vmem:[%s1616_s1 + $0x28] sm:$0xff]   ;;  %v1092_v8 = vld [vmem:[%s1617_s0 + $0x94] ss:$8 sps:$4 sm:$0xff]  }
   0x4   :  { %871 = vmatprep.mubr.msk.bf16.mxu0 %vm232_vm0, %v1071_v5  ;;  %880 = vmatprep.mubr.msk.bf16.mxu1 %vm232_vm0, %v1092_v8  ;;  %v1067_v10 = vld [vmem:[%s1616_s1 + $0x38] sm:$0xff]   ;;  %v1068_v11 = vld [vmem:[%s1616_s1 + $0x40] sm:$0xff]   ;;  %v500_v38 = vld [vmem:[%s1618_s4 + $0x8] sm:$0xff] }
   0x5   :  { %v1069_v12 = vld [vmem:[%s1617_s0] ss:$8 sps:$4 sm:$0xff]   ;;  %v1090_v13 = vld [vmem:[%s1617_s0 + $0x90] ss:$8 sps:$4 sm:$0xff]   ;;  %v1072_v14 = vld [vmem:[%s1617_s0 + $0x14] ss:$8 sps:$4 sm:$0xff]  }
   0x6   :  { %275 = vmatpush1.bf16.msra.mxu0 %v1061_v2  ;;  %1048 = vmatpush1.bf16.msra.mxu1 %v1061_v2  ;;  %v1096_v15 = vld [vmem:[%s1617_s0 + $0xa4] ss:$8 sps:$4 sm:$0xff]   ;;  %v1074_v16 = vld [vmem:[%s1617_s0 + $0x10] ss:$8 sps:$4 sm:$0xff]   ;;  %v1098_v17 = vld [vmem:[%s1617_s0 + $0xa0] ss:$8 sps:$4 sm:$0xff]  }
   0x7   :  { %276 = vmatprep.subr.bf16.mxu0 %v1109_v0  ;;  %1040 = vmatprep.subr.bf16.mxu1 %v1109_v0  ;;  %v1075_v18 = vld [vmem:[%s1617_s0 + $0x24] ss:$8 sps:$4 sm:$0xff]   ;;  %v1102_v19 = vld [vmem:[%s1617_s0 + $0xb4] ss:$8 sps:$4 sm:$0xff]   ;;  %v1077_v21 = vld [vmem:[%s1617_s0 + $0x20] ss:$8 sps:$4 sm:$0xff]  }
   0x8   :  { %v45_v20 = vld [vmem:[%s1617_s0 + $0xc0] sm:$0x33]  ;;  %v1104_v22 = vld [vmem:[%s1617_s0 + $0xb0] ss:$8 sps:$4 sm:$0xff]   ;;  %v1078_v23 = vld [vmem:[%s1617_s0 + $0x34] ss:$8 sps:$4 sm:$0xff]  }
   0x9   :  { %v861_v24 = vcombine.high %v45_v20, %v45_v20  ;;  %v1080_v25 = vld [vmem:[%s1617_s0 + $0x30] ss:$8 sps:$4 sm:$0xff]   ;;  %v860_v26 = vcombine.low %v45_v20, %v45_v20  ;;  %v1081_v27 = vld [vmem:[%s1617_s0 + $0x44] ss:$8 sps:$4 sm:$0xff]   ;;  %v1083_v28 = vld [vmem:[%s1617_s0 + $0x40] ss:$8 sps:$4 sm:$0xff]  }
   0xa   :  { %277 = vmatpush1.bf16.msra.mxu0 %v1062_v3  ;;  %1049 = vmatpush1.bf16.msra.mxu1 %v1062_v3  ;;  %v1084_v29 = vld [vmem:[%s1617_s0 + $0x54] ss:$8 sps:$4 sm:$0xff]   ;;  %v1086_v30 = vld [vmem:[%s1617_s0 + $0x50] ss:$8 sps:$4 sm:$0xff]   ;;  %v1087_v31 = vld [vmem:[%s1617_s0 + $0x64] ss:$8 sps:$4 sm:$0xff]  }
   0xb   :  { %278 = vmatprep.subr.bf16.mxu0 %v1109_v0  ;;  %1041 = vmatprep.subr.bf16.mxu1 %v1109_v0  ;;  %v1089_v32 = vld [vmem:[%s1617_s0 + $0x60] ss:$8 sps:$4 sm:$0xff]   ;;  %v1093_v33 = vld [vmem:[%s1617_s0 + $0x74] ss:$8 sps:$4 sm:$0xff]   ;;  %v1095_v34 = vld [vmem:[%s1617_s0 + $0x70] ss:$8 sps:$4 sm:$0xff]  }
   0xc   :  { %v1099_v35 = vld [vmem:[%s1617_s0 + $0x84] ss:$8 sps:$4 sm:$0xff]   ;;  %v1101_v36 = vld [vmem:[%s1617_s0 + $0x80] ss:$8 sps:$4 sm:$0xff]   ;;  %v501_v41 = vld [vmem:[%s1618_s4 + $0x10] sm:$0xff] }
   0xd   :  { %v499_v37 = vld [vmem:[%s1618_s4] sm:$0xff]  ;;  %v502_v42 = vld [vmem:[%s1618_s4 + $0x18] sm:$0xff]  ;;  %v504_v45 = vld [vmem:[%s1618_s4 + $0x28] sm:$0xff] }
   0xe   :  { %279 = vmatpush1.bf16.msra.mxu0 %v1063_v4  ;;  %1050 = vmatpush1.bf16.msra.mxu1 %v1063_v4  ;;  %v1264_v39 = vpack.c.bf16 %v500_v38, %v499_v37  ;;  %v1275_v43 = vpack.c.bf16 %v502_v42, %v501_v41  ;;  %v503_v44 = vld [vmem:[%s1618_s4 + $0x20] sm:$0xff]  ;;  %v505_v47 = vld [vmem:[%s1618_s4 + $0x30] sm:$0xff]  ;;  %v506_v48 = vld [vmem:[%s1618_s4 + $0x38] sm:$0xff] }
   0xf   :  { %280 = vmatprep.subr.bf16.mxu0 %v1109_v0  ;;  %1042 = vmatprep.subr.bf16.mxu1 %v1109_v0  ;;  %v1285_v46 = vpack.c.bf16 %v504_v45, %v503_v44  ;;  %v1295_v49 = vpack.c.bf16 %v506_v48, %v505_v47  ;;  %v507_v50 = vld [vmem:[%s1618_s4 + $0x40] sm:$0xff]  ;;  %v508_v51 = vld [vmem:[%s1618_s4 + $0x48] sm:$0xff]  ;;  %v509_v53 = vld [vmem:[%s1618_s4 + $0x50] sm:$0xff] }
  0x10   :  { %v1305_v52 = vpack.c.bf16 %v508_v51, %v507_v50  ;;  %v510_v54 = vld [vmem:[%s1618_s4 + $0x58] sm:$0xff]  ;;  %v511_v56 = vld [vmem:[%s1618_s4 + $0x60] sm:$0xff]  ;;  %v512_v57 = vld [vmem:[%s1618_s4 + $0x68] sm:$0xff] }
  0x11   :  { %v1315_v55 = vpack.c.bf16 %v510_v54, %v509_v53  ;;  %v1325_v58 = vpack.c.bf16 %v512_v57, %v511_v56  ;;  %v513_v59 = vld [vmem:[%s1618_s4 + $0x70] sm:$0xff]  ;;  %v514_v60 = vld [vmem:[%s1618_s4 + $0x78] sm:$0xff] }
  0x12   :  { %281 = vmatpush1.bf16.msra.mxu0 %v1064_v6  ;;  %1051 = vmatpush1.bf16.msra.mxu1 %v1064_v6  ;;  %v1335_v61 = vpack.c.bf16 %v514_v60, %v513_v59 }
  0x13   :  { %282 = vmatprep.subr.bf16.mxu0 %v1109_v0  ;;  %1043 = vmatprep.subr.bf16.mxu1 %v1109_v0 }
  0x16   :  { %283 = vmatpush1.bf16.msra.mxu0 %v1065_v7  ;;  %1052 = vmatpush1.bf16.msra.mxu1 %v1065_v7 }
  0x17   :  { %284 = vmatprep.subr.bf16.mxu0 %v1109_v0  ;;  %1044 = vmatprep.subr.bf16.mxu1 %v1109_v0 }
  0x1a   :  { %285 = vmatpush1.bf16.msra.mxu0 %v1066_v9  ;;  %1053 = vmatpush1.bf16.msra.mxu1 %v1066_v9 }
  0x1b   :  { %286 = vmatprep.subr.bf16.mxu0 %v1109_v0  ;;  %1045 = vmatprep.subr.bf16.mxu1 %v1109_v0 }
  0x1e   :  { %287 = vmatpush1.bf16.msra.mxu0 %v1067_v10  ;;  %1054 = vmatpush1.bf16.msra.mxu1 %v1067_v10 }
  0x1f   :  { %288 = vmatprep.subr.bf16.mxu0 %v1109_v0  ;;  %1046 = vmatprep.subr.bf16.mxu1 %v1109_v0 }
  0x22   :  { %289 = vmatpush1.bf16.msra.mxu0 %v1068_v11  ;;  %1055 = vmatpush1.bf16.msra.mxu1 %v1068_v11 }
  0x23   :  { %990 = vmatprep.subr.bf16.mxu1 %v1110_v40 }
  0x25   :  { %305 = vmatmul.mubr.bf16.vlgmr.msra.gmra.mrb[0].mxu0 %v1069_v12  ;;  %377 = vmatmul.mubr.bf16.vlgmr.msra.gmra.mrb[0].mxu1 %v1090_v13 }
  0x26   :  { %872 = vmatprep.mubr.msk.bf16.mxu0 %vm232_vm0, %v1072_v14  ;;  %881 = vmatprep.mubr.msk.bf16.mxu1 %vm232_vm0, %v1096_v15 }
  0x27   :  { %992 = vmatpush3.bf16.msra.mxu1 %v1264_v39 }
  0x28   :  { %993 = vmatprep.subr.bf16.mxu1 %v1110_v40 }
  0x2b   :  { %995 = vmatpush3.bf16.msra.mxu1 %v1275_v43 }
  0x2c   :  { %996 = vmatprep.subr.bf16.mxu1 %v1110_v40 }
  0x2d   :  { %313 = vmatmul.mubr.bf16.gmra.mrb[4].mxu0 %v1074_v16  ;;  %385 = vmatmul.mubr.bf16.gmra.mrb[4].mxu1 %v1098_v17 }
  0x2e   :  { %873 = vmatprep.mubr.msk.bf16.mxu0 %vm232_vm0, %v1075_v18  ;;  %882 = vmatprep.mubr.msk.bf16.mxu1 %vm232_vm0, %v1102_v19 }
  0x2f   :  { %998 = vmatpush3.bf16.msra.mxu1 %v1285_v46 }
  0x30   :  { %999 = vmatprep.subr.bf16.mxu1 %v1110_v40 }
  0x33   :  { %1001 = vmatpush3.bf16.msra.mxu1 %v1295_v49 }
  0x34   :  { %1002 = vmatprep.subr.bf16.mxu1 %v1110_v40 }
  0x35   :  { %321 = vmatmul.mubr.bf16.gmra.mrb[8].mxu0 %v1077_v21  ;;  %393 = vmatmul.mubr.bf16.gmra.mrb[8].mxu1 %v1104_v22 }
  0x36   :  { %874 = vmatprep.mubr.msk.bf16.mxu0 %vm232_vm0, %v1078_v23  ;;  %883 = vmatprep.mubr.msk.bf16.mxu1 %vm232_vm0, %v861_v24 }
  0x37   :  { %1004 = vmatpush3.bf16.msra.mxu1 %v1305_v52 }
  0x38   :  { %1005 = vmatprep.subr.bf16.mxu1 %v1110_v40 }
  0x3b   :  { %1007 = vmatpush3.bf16.msra.mxu1 %v1315_v55 }
  0x3c   :  { %1008 = vmatprep.subr.bf16.mxu1 %v1110_v40 }
  0x3d   :  { %329 = vmatmul.mubr.bf16.gmra.mrb[12].mxu0 %v1080_v25  ;;  %401 = vmatmul.mubr.bf16.gmra.mrb[12].mxu1 %v860_v26 }
  0x3e   :  { %875 = vmatprep.mubr.msk.bf16.mxu0 %vm232_vm0, %v1081_v27  ;;  %952 = vmatprep.mubr.msk.f32.mxu1 %vm1111_vm1, %v1112_v62 }
  0x3f   :  { %1010 = vmatpush3.bf16.msra.mxu1 %v1325_v58 }
  0x40   :  { %1011 = vmatprep.subr.bf16.mxu1 %v1110_v40 }
  0x43   :  { %1013 = vmatpush3.bf16.msra.mxu1 %v1335_v61 }
  0x44   :  { %1014 = vmatprep.subr.bf16.mxu1 %v1110_v40 }
  0x45   :  { %337 = vmatmul.mubr.bf16.gmra.mrb[16].mxu0 %v1083_v28 }
  0x46   :  { %876 = vmatprep.mubr.msk.bf16.mxu0 %vm232_vm0, %v1084_v29 }
  0x4d   :  { %345 = vmatmul.mubr.bf16.gmra.mrb[20].mxu0 %v1086_v30 }
  0x4e   :  { %877 = vmatprep.mubr.msk.bf16.mxu0 %vm232_vm0, %v1087_v31 }
  0x55   :  { %353 = vmatmul.mubr.bf16.gmra.mrb[24].mxu0 %v1089_v32 }
  0x56   :  { %878 = vmatprep.mubr.msk.bf16.mxu0 %vm232_vm0, %v1093_v33 }
  0x5d   :  { %361 = vmatmul.mubr.bf16.gmra.mrb[28].mxu0 %v1095_v34 }
  0x5e   :  { %879 = vmatprep.mubr.msk.bf16.mxu0 %vm232_vm0, %v1099_v35 }
  0x65   :  { %369 = vmatmul.mubr.bf16.gmra.mrb[32].mxu0 %v1101_v36 }
  0xf8   :  { %v1341_v63 = vpop.f32.mrb[0].mxu0  ;;  %v1343_v0 = vpop.f32.mrb[0].mxu1 }
  0xf9   :  { %v308_v1 = vpop.f32.mrb[1].mxu0  ;;  %v380_v2 = vpop.f32.mrb[1].mxu1  ;;  %v442_v5 = vmul.f32 %v1341_v63, %v1341_v63 }
  0xfa   :  { %v1345_v3 = vpop.f32.mrb[2].mxu0  ;;  %v1347_v4 = vpop.f32.mrb[2].mxu1 }
  0xfb   :  { %v408_v6 = vadd.f32 %v1345_v3, %v1341_v63  ;;  %v443_v7 = vmul.f32 %v1345_v3, %v1345_v3  ;;  %v311_v8 = vpop.f32.mrb[3].mxu0  ;;  %v383_v9 = vpop.f32.mrb[3].mxu1 }
  0xfd   :  { %v467_v10 = vadd.f32 %v443_v7, %v442_v5 }
 0x100   :  { %v1355_v11 = vpop.f32.mrb[4].mxu0  ;;  %v1357_v12 = vpop.f32.mrb[4].mxu1 }
 0x101   :  { %v409_v13 = vadd.f32 %v408_v6, %v1355_v11  ;;  %v444_v14 = vmul.f32 %v1355_v11, %v1355_v11  ;;  %v316_v15 = vpop.f32.mrb[5].mxu0  ;;  %v388_v16 = vpop.f32.mrb[5].mxu1 }
 0x102   :  { %v1362_v17 = vpop.f32.mrb[6].mxu0  ;;  %v1364_v18 = vpop.f32.mrb[6].mxu1 }
 0x103   :  { %v468_v19 = vadd.f32 %v467_v10, %v444_v14  ;;  %v410_v20 = vadd.f32 %v409_v13, %v1362_v17  ;;  %v445_v21 = vmul.f32 %v1362_v17, %v1362_v17  ;;  %v319_v22 = vpop.f32.mrb[7].mxu0  ;;  %v391_v23 = vpop.f32.mrb[7].mxu1 }
 0x105   :  { %v469_v24 = vadd.f32 %v468_v19, %v445_v21 }
 0x108   :  { %v1369_v25 = vpop.f32.mrb[8].mxu0  ;;  %v1371_v26 = vpop.f32.mrb[8].mxu1 }
 0x109   :  { %v411_v27 = vadd.f32 %v410_v20, %v1369_v25  ;;  %v446_v28 = vmul.f32 %v1369_v25, %v1369_v25  ;;  %v324_v29 = vpop.f32.mrb[9].mxu0  ;;  %v396_v30 = vpop.f32.mrb[9].mxu1 }
 0x10a   :  { %v1376_v31 = vpop.f32.mrb[10].mxu0  ;;  %v1378_v32 = vpop.f32.mrb[10].mxu1 }
 0x10b   :  { %v470_v33 = vadd.f32 %v469_v24, %v446_v28  ;;  %v412_v34 = vadd.f32 %v411_v27, %v1376_v31  ;;  %v447_v35 = vmul.f32 %v1376_v31, %v1376_v31  ;;  %v327_v36 = vpop.f32.mrb[11].mxu0  ;;  %v399_v37 = vpop.f32.mrb[11].mxu1 }
 0x10d   :  { %v471_v38 = vadd.f32 %v470_v33, %v447_v35 }
 0x110   :  { %v1383_v41 = vpop.f32.mrb[12].mxu0  ;;  %v1385_v42 = vpop.f32.mrb[12].mxu1 }
 0x111   :  { %v413_v44 = vadd.f32 %v412_v34, %v1383_v41  ;;  %v448_v45 = vmul.f32 %v1383_v41, %v1383_v41  ;;  %v332_v47 = vpop.f32.mrb[13].mxu0  ;;  %v404_v48 = vpop.f32.mrb[13].mxu1 }
 0x112   :  { %v1390_v50 = vpop.f32.mrb[14].mxu0  ;;  %v405_v51 = vpop.f32.mrb[14].mxu1 }
 0x113   :  { %v472_v53 = vadd.f32 %v471_v38, %v448_v45  ;;  %v414_v54 = vadd.f32 %v413_v44, %v1390_v50  ;;  %v449_v56 = vmul.f32 %v1390_v50, %v1390_v50  ;;  %v335_v57 = vpop.f32.mrb[15].mxu0  ;;  %v406_v59 = vpop.f32.mrb[15].mxu1 }
 0x115   :  { %v473_v60 = vadd.f32 %v472_v53, %v449_v56 }
 0x118   :  { %v1395_v1 = vpop.f32.mrb[16].mxu0 }
 0x119   :  { %v415_v2 = vadd.f32 %v414_v54, %v1395_v1  ;;  %v450_v5 = vmul.f32 %v1395_v1, %v1395_v1  ;;  %v340_v6 = vpop.f32.mrb[17].mxu0 }
 0x11a   :  { %v1400_v7 = vpop.f32.mrb[18].mxu0 }
 0x11b   :  { %v474_v8 = vadd.f32 %v473_v60, %v450_v5  ;;  %v416_v9 = vadd.f32 %v415_v2, %v1400_v7  ;;  %v451_v10 = vmul.f32 %v1400_v7, %v1400_v7  ;;  %v343_v13 = vpop.f32.mrb[19].mxu0 }
 0x11d   :  { %v475_v14 = vadd.f32 %v474_v8, %v451_v10 }
 0x120   :  { %v1405_v15 = vpop.f32.mrb[20].mxu0 }
 0x121   :  { %v417_v16 = vadd.f32 %v416_v9, %v1405_v15  ;;  %v452_v19 = vmul.f32 %v1405_v15, %v1405_v15  ;;  %v348_v20 = vpop.f32.mrb[21].mxu0 }
 0x122   :  { %v1410_v21 = vpop.f32.mrb[22].mxu0  ;;  %v460_v20 = vmul.f32 %v1343_v0, %v1343_v0 }
 0x123   :  { %v476_v22 = vadd.f32 %v475_v14, %v452_v19  ;;  %v418_v23 = vadd.f32 %v417_v16, %v1410_v21  ;;  %v453_v24 = vmul.f32 %v1410_v21, %v1410_v21  ;;  %v351_v27 = vpop.f32.mrb[23].mxu0 }
 0x125   :  { %v477_v28 = vadd.f32 %v476_v22, %v453_v24  ;;  %v461_v24 = vmul.f32 %v1347_v4, %v1347_v4 }
 0x128   :  { %v1415_v29 = vpop.f32.mrb[24].mxu0 }
 0x129   :  { %v419_v30 = vadd.f32 %v418_v23, %v1415_v29  ;;  %v454_v33 = vmul.f32 %v1415_v29, %v1415_v29  ;;  %v356_v34 = vpop.f32.mrb[25].mxu0 }
 0x12a   :  { %v1420_v35 = vpop.f32.mrb[26].mxu0 }
 0x12b   :  { %v478_v36 = vadd.f32 %v477_v28, %v454_v33  ;;  %v420_v37 = vadd.f32 %v419_v30, %v1420_v35  ;;  %v455_v38 = vmul.f32 %v1420_v35, %v1420_v35  ;;  %v359_v44 = vpop.f32.mrb[27].mxu0  ;;  %v462_v30 = vmul.f32 %v1357_v12, %v1357_v12 }
 0x12c   :  { %v466_v44 = vmul.f32 %v1385_v42, %v1385_v42 }
 0x12d   :  { %v479_v45 = vadd.f32 %v478_v36, %v455_v38  ;;  %v463_v36 = vmul.f32 %v1364_v18, %v1364_v18 }
 0x130   :  { %v1425_v47 = vpop.f32.mrb[28].mxu0 }
 0x131   :  { %v421_v48 = vadd.f32 %v420_v37, %v1425_v47  ;;  %v456_v51 = vmul.f32 %v1425_v47, %v1425_v47  ;;  %v364_v53 = vpop.f32.mrb[29].mxu0 }
 0x132   :  { %v1430_v54 = vpop.f32.mrb[30].mxu0  ;;  %v432_v53 = vsel %vm431_vm2, %v1385_v42, 0.0 }
 0x133   :  { %v480_v56 = vadd.f32 %v479_v45, %v456_v51  ;;  %v422_v57 = vadd.f32 %v421_v48, %v1430_v54  ;;  %v457_v59 = vmul.f32 %v1430_v54, %v1430_v54  ;;  %v367_v60 = vpop.f32.mrb[31].mxu0  ;;  %v464_v48 = vmul.f32 %v1371_v26, %v1371_v26 }
 0x134   :  { %v490_v60 = vsel %vm431_vm2, %v466_v44, 0.0 }
 0x135   :  { %v481_v2 = vadd.f32 %v480_v56, %v457_v59  ;;  %v465_v59 = vmul.f32 %v1378_v32, %v1378_v32 }
 0x138   :  { %v1435_v5 = vpop.f32.mrb[32].mxu0 }
 0x139   :  { %v423_v6 = vadd.f32 %v422_v57, %v1435_v5  ;;  %v458_v8 = vmul.f32 %v1435_v5, %v1435_v5  ;;  %v372_v9 = vpop.f32.mrb[33].mxu0 }
 0x13a   :  { %v1440_v10 = vpop.f32.mrb[34].mxu0 }
 0x13b   :  { %v482_v13 = vadd.f32 %v481_v2, %v458_v8  ;;  %v424_v14 = vadd.f32 %v423_v6, %v1440_v10  ;;  %v459_v16 = vmul.f32 %v1440_v10, %v1440_v10  ;;  %v375_v19 = vpop.f32.mrb[35].mxu0 }
 0x13d   :  { %v425_v22 = vadd.f32 %v424_v14, %v1343_v0  ;;  %v483_v23 = vadd.f32 %v482_v13, %v459_v16 }
 0x13f   :  { %v426_v27 = vadd.f32 %v425_v22, %v1347_v4  ;;  %v484_v28 = vadd.f32 %v483_v23, %v460_v20 }
 0x141   :  { %v485_v33 = vadd.f32 %v484_v28, %v461_v24  ;;  %v427_v34 = vadd.f32 %v426_v27, %v1357_v12 }
 0x143   :  { %v428_v37 = vadd.f32 %v427_v34, %v1364_v18  ;;  %v486_v38 = vadd.f32 %v485_v33, %v462_v30 }
 0x145   :  { %v429_v45 = vadd.f32 %v428_v37, %v1371_v26  ;;  %v487_v51 = vadd.f32 %v486_v38, %v463_v36 }
 0x147   :  { %v488_v56 = vadd.f32 %v487_v51, %v464_v48  ;;  %v430_v57 = vadd.f32 %v429_v45, %v1378_v32 }
 0x149   :  { %v489_v2 = vadd.f32 %v488_v56, %v465_v59  ;;  %v433_v6 = vadd.f32 %v432_v53, %v430_v57 }
 0x14b   :  { %v434_v8 = vrot.slane %v433_v6, 4  ;;  %v491_v9 = vadd.f32 %v490_v60, %v489_v2 }
 0x14d   :  { %v435_v13 = vadd.f32 %v434_v8, %v433_v6  ;;  %v492_v23 = vrot.slane %v491_v9, 4 }
 0x14f   :  { %v436_v14 = vrot.slane %v435_v13, 2  ;;  %v493_v24 = vadd.f32 %v492_v23, %v491_v9 }
 0x151   :  { %v437_v16 = vadd.f32 %v436_v14, %v435_v13  ;;  %v494_v27 = vrot.slane %v493_v24, 2 }
 0x153   :  { %v438_v19 = vrot.slane %v437_v16, 1 }
 0x155   :  { %v439_v20 = vadd.f32 %v438_v19, %v437_v16 }
 0x157   :  { %v441_v22 = vmul.f32 0.0051020407, %v439_v20  ;;  %v884_v20 = vld [vmem:[%s1619_s2] ss:$0 sm:$0xff] }
 0x159   :  { %953 = vmatmul.mubr.f32.vlgmr.msra.gmra.mrb[16].mxu1 %v441_v22 }
 0x15a   :  { %1016 = vmatpush3.bf16.msra.mxu1 %v1264_v39  ;;  %987 = vmatprep.mubr.msk.f32.mxu1 %vm1111_vm1, %v1112_v62  ;;  %v495_v39 = vadd.f32 %v494_v27, %v493_v24  ;;  %v658_v62 = vlaneseq }
 0x15b   :  { %1017 = vmatprep.subr.bf16.mxu1 %v1110_v40 }
 0x15c   :  { %v659_v28 = vshrl.u32 %v658_v62, 7 }
 0x15e   :  { %1019 = vmatpush3.bf16.msra.mxu1 %v1275_v43  ;;  %v496_v43 = vrot.slane %v495_v39, 1 }
 0x15f   :  { %1020 = vmatprep.subr.bf16.mxu1 %v1110_v40 }
 0x162   :  { %1022 = vmatpush3.bf16.msra.mxu1 %v1285_v46  ;;  %v497_v46 = vadd.f32 %v496_v43, %v495_v39 }
 0x163   :  { %1023 = vmatprep.subr.bf16.mxu1 %v1110_v40 }
 0x166   :  { %1025 = vmatpush3.bf16.msra.mxu1 %v1295_v49  ;;  %v498_v49 = vmul.f32 0.0051020407, %v497_v46 }
 0x167   :  { %1026 = vmatprep.subr.bf16.mxu1 %v1110_v40 }
 0x16a   :  { %1028 = vmatpush3.bf16.msra.mxu1 %v1305_v52  ;;  %v660_v52 = vsub.s32 0, %v659_v28 }
 0x16b   :  { %1029 = vmatprep.subr.bf16.mxu1 %v1110_v40 }
 0x16e   :  { %1031 = vmatpush3.bf16.msra.mxu1 %v1315_v55 }
 0x16f   :  { %1032 = vmatprep.subr.bf16.mxu1 %v1110_v40 }
 0x172   :  { %1034 = vmatpush3.bf16.msra.mxu1 %v1325_v58 }
 0x173   :  { %1035 = vmatprep.subr.bf16.mxu1 %v1110_v40 }
 0x176   :  { %1037 = vmatpush3.bf16.msra.mxu1 %v1335_v61 }
 0x179   :  { %988 = vmatmul.mubr.f32.vlgmr.msra.gmra.mrb[18].mxu1 %v498_v49 }
 0x22c   :  { %v581_v30 = vpop.f32.mrb[16].mxu1 }
 0x22d   :  { %v1483_v33 = vrot.slane %v581_v30, %v660_v52  ;;  %v954_v34 = vpop.f32.mrb[17].mxu1  ;;  %v655_v44 = vmul.f32 %v581_v30, %v581_v30 }
 0x22f   :  { %v662_v55 = vsub.f32 %v1341_v63, %v1483_v33  ;;  %v663_v58 = vsub.f32 %v1345_v3, %v1483_v33  ;;  %v664_v40 = vsub.f32 %v1355_v11, %v1483_v33  ;;  %v665_v61 = vsub.f32 %v1362_v17, %v1483_v33 }
 0x230   :  { %v666_v36 = vsub.f32 %v1369_v25, %v1483_v33  ;;  %v667_v37 = vsub.f32 %v1376_v31, %v1483_v33  ;;  %v668_v38 = vsub.f32 %v1383_v41, %v1483_v33  ;;  %v669_v63 = vsub.f32 %v1390_v50, %v1483_v33 }
 0x231   :  { %v670_v3 = vsub.f32 %v1395_v1, %v1483_v33  ;;  %v671_v11 = vsub.f32 %v1400_v7, %v1483_v33  ;;  %v672_v17 = vsub.f32 %v1405_v15, %v1483_v33  ;;  %v673_v25 = vsub.f32 %v1410_v21, %v1483_v33 }
 0x232   :  { %v674_v31 = vsub.f32 %v1415_v29, %v1483_v33  ;;  %v675_v41 = vsub.f32 %v1420_v35, %v1483_v33  ;;  %v676_v50 = vsub.f32 %v1425_v47, %v1483_v33  ;;  %v677_v1 = vsub.f32 %v1430_v54, %v1483_v33 }
 0x233   :  { %v678_v7 = vsub.f32 %v1435_v5, %v1483_v33  ;;  %v679_v15 = vsub.f32 %v1440_v10, %v1483_v33  ;;  %v680_v21 = vsub.f32 %v1343_v0, %v1483_v33  ;;  %v681_v29 = vsub.f32 %v1347_v4, %v1483_v33 }
 0x234   :  { %v682_v35 = vsub.f32 %v1357_v12, %v1483_v33  ;;  %v683_v47 = vsub.f32 %v1364_v18, %v1483_v33  ;;  %v684_v54 = vsub.f32 %v1371_v26, %v1483_v33  ;;  %v685_v5 = vsub.f32 %v1378_v32, %v1483_v33 }
 0x235   :  { %v686_v10 = vsub.f32 %v1385_v42, %v1483_v33 }
 0x24c   :  { %v651_v0 = vpop.f32.mrb[18].mxu1 }
 0x24d   :  { %v656_v45 = vsub.f32 %v651_v0, %v655_v44  ;;  %v989_v48 = vpop.f32.mrb[19].mxu1 }
 0x24f   :  { %v657_v4 = vmax.f32 %v656_v45, 0.0 }
 0x251   :  { %v687_v51 = vadd.f32 1e-05, %v657_v4 }
 0x253   :  { %1107 = vrsqrt.f32 %v687_v51 }
 0x25d   :  { %v1108_v12 = vpop.eup %1107 }
 0x25e   :  { %v692_v53 = vrot.slane %v1108_v12, %v660_v52 }
 0x260   :  { %v693_v56 = vmul.f32 %v692_v53, %v662_v55  ;;  %v694_v18 = vmul.f32 %v692_v53, %v663_v58  ;;  %v695_v57 = vmul.f32 %v692_v53, %v664_v40  ;;  %v696_v59 = vmul.f32 %v692_v53, %v665_v61 }
 0x261   :  { %v697_v26 = vmul.f32 %v692_v53, %v666_v36  ;;  %v698_v60 = vmul.f32 %v692_v53, %v667_v37  ;;  %v699_v2 = vmul.f32 %v692_v53, %v668_v38  ;;  %v700_v32 = vmul.f32 %v692_v53, %v669_v63 }
 0x262   :  { %v701_v6 = vmul.f32 %v692_v53, %v670_v3  ;;  %v702_v8 = vmul.f32 %v692_v53, %v671_v11  ;;  %v703_v42 = vmul.f32 %v692_v53, %v672_v17  ;;  %v704_v9 = vmul.f32 %v692_v53, %v673_v25  ;;  %v885_v17 = vld [vmem:[%s1620_s3] ss:$0 sm:$0xff] }
 0x263   :  { %v705_v13 = vmul.f32 %v692_v53, %v674_v31  ;;  %v706_v14 = vmul.f32 %v692_v53, %v675_v41  ;;  %v707_v16 = vmul.f32 %v692_v53, %v676_v50  ;;  %v708_v19 = vmul.f32 %v692_v53, %v677_v1 }
 0x264   :  { %v709_v22 = vmul.f32 %v692_v53, %v678_v7  ;;  %v710_v23 = vmul.f32 %v692_v53, %v679_v15  ;;  %v711_v24 = vmul.f32 %v692_v53, %v680_v21  ;;  %v712_v27 = vmul.f32 %v692_v53, %v681_v29 }
 0x265   :  { %v713_v39 = vmul.f32 %v692_v53, %v682_v35  ;;  %v714_v43 = vmul.f32 %v692_v53, %v683_v47  ;;  %v715_v46 = vmul.f32 %v692_v53, %v684_v54  ;;  %v716_v49 = vmul.f32 %v692_v53, %v685_v5 }
 0x266   :  { %v717_v62 = vmul.f32 %v692_v53, %v686_v10  ;;  %v725_v28 = vmul.f32 %v884_v20, %v693_v56  ;;  %v726_v52 = vmul.f32 %v884_v20, %v694_v18  ;;  %v727_v30 = vmul.f32 %v884_v20, %v695_v57 }
 0x267   :  { %v728_v33 = vmul.f32 %v884_v20, %v696_v59  ;;  %v729_v34 = vmul.f32 %v884_v20, %v697_v26  ;;  %v730_v55 = vmul.f32 %v884_v20, %v698_v60  ;;  %v731_v58 = vmul.f32 %v884_v20, %v699_v2 }
 0x268   :  { %v732_v40 = vmul.f32 %v884_v20, %v700_v32  ;;  %v733_v61 = vmul.f32 %v884_v20, %v701_v6  ;;  %v734_v36 = vmul.f32 %v884_v20, %v702_v8  ;;  %v735_v37 = vmul.f32 %v884_v20, %v703_v42 }
 0x269   :  { %v736_v38 = vmul.f32 %v884_v20, %v704_v9  ;;  %v737_v63 = vmul.f32 %v884_v20, %v705_v13  ;;  %v738_v3 = vmul.f32 %v884_v20, %v706_v14  ;;  %v739_v11 = vmul.f32 %v884_v20, %v707_v16 }
 0x26a   :  { %v740_v25 = vmul.f32 %v884_v20, %v708_v19  ;;  %v741_v31 = vmul.f32 %v884_v20, %v709_v22  ;;  %v742_v41 = vmul.f32 %v884_v20, %v710_v23  ;;  %v743_v50 = vmul.f32 %v884_v20, %v711_v24 }
 0x26b   :  { %v744_v1 = vmul.f32 %v884_v20, %v712_v27  ;;  %v745_v7 = vmul.f32 %v884_v20, %v713_v39  ;;  %v746_v15 = vmul.f32 %v884_v20, %v714_v43  ;;  %v747_v21 = vmul.f32 %v884_v20, %v715_v46 }
 0x26c   :  { %v748_v29 = vmul.f32 %v884_v20, %v716_v49  ;;  %v749_v35 = vmul.f32 %v884_v20, %v717_v62  ;;  %v757_v47 = vadd.f32 %v885_v17, %v725_v28  ;;  %v758_v54 = vadd.f32 %v885_v17, %v726_v52 }
 0x26d   :  { %v759_v5 = vadd.f32 %v885_v17, %v727_v30  ;;  %v760_v10 = vadd.f32 %v885_v17, %v728_v33  ;;  %v761_v44 = vadd.f32 %v885_v17, %v729_v34  ;;  %v762_v0 = vadd.f32 %v885_v17, %v730_v55 }
 0x26e   :  { %v763_v45 = vadd.f32 %v885_v17, %v731_v58  ;;  %v764_v48 = vadd.f32 %v885_v17, %v732_v40  ;;  %v765_v4 = vadd.f32 %v885_v17, %v733_v61  ;;  %v766_v51 = vadd.f32 %v885_v17, %v734_v36 }
 0x26f   :  { %v767_v12 = vadd.f32 %v885_v17, %v735_v37  ;;  %v768_v53 = vadd.f32 %v885_v17, %v736_v38  ;;  %v769_v56 = vadd.f32 %v885_v17, %v737_v63  ;;  %v770_v18 = vadd.f32 %v885_v17, %v738_v3 }
 0x270   :  { %v771_v57 = vadd.f32 %v885_v17, %v739_v11  ;;  %v772_v59 = vadd.f32 %v885_v17, %v740_v25  ;;  %v773_v26 = vadd.f32 %v885_v17, %v741_v31  ;;  %v774_v60 = vadd.f32 %v885_v17, %v742_v41 }
 0x271   :  { %v775_v2 = vadd.f32 %v885_v17, %v743_v50  ;;  %v776_v32 = vadd.f32 %v885_v17, %v744_v1  ;;  %v777_v6 = vadd.f32 %v885_v17, %v745_v7  ;;  %v778_v8 = vadd.f32 %v885_v17, %v746_v15 }
 0x272   :  { %v779_v42 = vadd.f32 %v885_v17, %v747_v21  ;;  %v780_v9 = vadd.f32 %v885_v17, %v748_v29  ;;  %v781_v13 = vadd.f32 %v885_v17, %v749_v35  ;;  %v782_v14 = vmax.f32 %v757_v47, 0.0 }
 0x273   :  { %v783_v16 = vmax.f32 %v758_v54, 0.0  ;;  %v784_v19 = vmax.f32 %v759_v5, 0.0  ;;  %v785_v20 = vmax.f32 %v760_v10, 0.0  ;;  %v786_v22 = vmax.f32 %v761_v44, 0.0 }
 0x274   :  { %v787_v23 = vmax.f32 %v762_v0, 0.0  ;;  %v788_v24 = vmax.f32 %v763_v45, 0.0  ;;  %v789_v27 = vmax.f32 %v764_v48, 0.0  ;;  %v790_v39 = vmax.f32 %v765_v4, 0.0  ;;  %807 = vst [vmem:[%s1621_s5] sm:$0xff] %v782_v14 }
 0x275   :  { %v791_v43 = vmax.f32 %v766_v51, 0.0  ;;  %v792_v46 = vmax.f32 %v767_v12, 0.0  ;;  %v793_v49 = vmax.f32 %v768_v53, 0.0  ;;  %v794_v62 = vmax.f32 %v769_v56, 0.0  ;;  %808 = vst [vmem:[%s1621_s5 + $0x8] sm:$0xff] %v783_v16  ;;  %809 = vst [vmem:[%s1621_s5 + $0x10] sm:$0xff] %v784_v19 }
 0x276   :  { %810 = vst [vmem:[%s1621_s5 + $0x18] sm:$0xff] %v785_v20  ;;  %811 = vst [vmem:[%s1621_s5 + $0x20] sm:$0xff] %v786_v22  ;;  %v795_v28 = vmax.f32 %v770_v18, 0.0  ;;  %v796_v52 = vmax.f32 %v771_v57, 0.0  ;;  %v797_v30 = vmax.f32 %v772_v59, 0.0  ;;  %v798_v33 = vmax.f32 %v773_v26, 0.0 }
 0x277   :  { %812 = vst [vmem:[%s1621_s5 + $0x28] sm:$0xff] %v787_v23  ;;  %813 = vst [vmem:[%s1621_s5 + $0x30] sm:$0xff] %v788_v24  ;;  %v799_v34 = vmax.f32 %v774_v60, 0.0  ;;  %v800_v55 = vmax.f32 %v775_v2, 0.0  ;;  %v801_v58 = vmax.f32 %v776_v32, 0.0  ;;  %v802_v40 = vmax.f32 %v777_v6, 0.0 }
 0x278   :  { %814 = vst [vmem:[%s1621_s5 + $0x38] sm:$0xff] %v789_v27  ;;  %815 = vst [vmem:[%s1621_s5 + $0x40] sm:$0xff] %v790_v39  ;;  %v803_v61 = vmax.f32 %v778_v8, 0.0  ;;  %v804_v36 = vmax.f32 %v779_v42, 0.0  ;;  %v805_v37 = vmax.f32 %v780_v9, 0.0  ;;  %v806_v38 = vmax.f32 %v781_v13, 0.0 }
 0x279   :  { %816 = vst [vmem:[%s1621_s5 + $0x48] sm:$0xff] %v791_v43  ;;  %817 = vst [vmem:[%s1621_s5 + $0x50] sm:$0xff] %v792_v46 }
 0x27a   :  { %818 = vst [vmem:[%s1621_s5 + $0x58] sm:$0xff] %v793_v49  ;;  %819 = vst [vmem:[%s1621_s5 + $0x60] sm:$0xff] %v794_v62 }
 0x27b   :  { %820 = vst [vmem:[%s1621_s5 + $0x68] sm:$0xff] %v795_v28  ;;  %821 = vst [vmem:[%s1621_s5 + $0x70] sm:$0xff] %v796_v52 }
 0x27c   :  { %822 = vst [vmem:[%s1621_s5 + $0x78] sm:$0xff] %v797_v30  ;;  %823 = vst [vmem:[%s1621_s5 + $0x80] sm:$0xff] %v798_v33 }
 0x27d   :  { %824 = vst [vmem:[%s1621_s5 + $0x88] sm:$0xff] %v799_v34  ;;  %825 = vst [vmem:[%s1621_s5 + $0x90] sm:$0xff] %v800_v55 }
 0x27e   :  { %826 = vst [vmem:[%s1621_s5 + $0x98] sm:$0xff] %v801_v58  ;;  %827 = vst [vmem:[%s1621_s5 + $0xa0] sm:$0xff] %v802_v40 }
 0x27f   :  { %828 = vst [vmem:[%s1621_s5 + $0xa8] sm:$0xff] %v803_v61  ;;  %829 = vst [vmem:[%s1621_s5 + $0xb0] sm:$0xff] %v804_v36 }
 0x280   :  { %830 = vst [vmem:[%s1621_s5 + $0xb8] sm:$0xff] %v805_v37  ;;  %831 = vst [vmem:[%s1621_s5 + $0xc0] sm:$0xf] %v806_v38 }

// kernel: decoder_forward.7
= control target key start
LH: loop header
LB: loop body
LE: loop exit
PB: predicated region body
PF: predicated region fallthrough
CT: control target
= control target key end

     0   :  { %s1798_s12 = smov 0   ;;  %s2549_s0 = inlined_call_operand.vmem [shape: bf16[800,72], index: 0, kind: input, shape index: {}]   ;;  %s2550_s1 = inlined_call_operand.vmem [shape: bf16[72,128], index: 1, kind: input, shape index: {}]   ;;  %s2551_s2 = inlined_call_operand.vmem [shape: f32[1,128], index: 2, kind: input, shape index: {}]   ;;  %s2552_s3 = inlined_call_operand.vmem [shape: f32[800,128], index: 3, kind: output, shape index: {}]  }
   0x1 LB: > { %s1312_s13 = sadd.s32 4294967295, %s1774_s12   ;;  %p1316_p0 = scmp.ge.s32.totalorder %s1774_s12, 1  ;;  %s1774_s12 = sphi %s1798_s12, %s13_s12  }
   0x2   : > { %p138_p1 = scmp.lt.s32.totalorder %s1774_s12, 3 }
   0x4   : > { %p139_p2 = pnand %p1316_p0, %p138_p1 }
   0x5   : > { %v1537_v0 = vld [vmem:[%s2550_s1] sm:$0xff] (!%p139_p2)   ;;  %v1776_v1 = vmov (!%p139_p2), 0.0   ;;  %v1538_v2 = vld [vmem:[%s2550_s1 + $0x8] sm:$0xff] (!%p139_p2)   ;;  %s162_s18 = smul.u32 (!%p139_p2), 50, %s1312_s13  ;;  %vm1777_vm0 = vmmov (!%p139_p2), 0   ;;  %v1539_v3 = vld [vmem:[%s2550_s1 + $0x10] sm:$0xff] (!%p139_p2)  }
   0x6   : > { %142 = sbr.rel (%p139_p2) target bundleno = 394 (0x18a), region = 32  ;;  %1407 = vmatprep.subr.bf16.mxu0 (!%p139_p2), %v1776_v1  ;;  %1517 = vmatprep.subr.bf16.mxu1 (!%p139_p2), %v1776_v1  ;;  %v1540_v4 = vld [vmem:[%s2550_s1 + $0x18] sm:$0xff] (!%p139_p2)   ;;  %v1541_v5 = vld [vmem:[%s2550_s1 + $0x20] ss:$0 sps:$4 sm:$0xff] (!%p139_p2)   ;;  %vm469_vm1 = vcmask (!%p139_p2), 1043456   ;;  %vm393_vm2 = vcmask (!%p139_p2), 588800  }
   0x7   : > { %1408 = vmatpush3.bf16.msra.mxu0 (!%p139_p2), %v1537_v0  ;;  %1522 = vmatpush3.bf16.msra.mxu1 (!%p139_p2), %v1537_v0  ;;  %p163_p3 = scmp.lt.s32.totalorder (!%p139_p2), %s162_s18, 99  ;;  %v471_v6 = vsel (!%p139_p2), %vm469_vm1, %v1541_v5, 0  ;;  %v1942_v32 = vld [vmem:[%s2551_s2] ss:$0 sm:$0xff] (!%p139_p2) }
   0x8   : > { %1409 = vmatprep.subr.bf16.mxu0 (!%p139_p2), %v1776_v1  ;;  %1518 = vmatprep.subr.bf16.mxu1 (!%p139_p2), %v1776_v1 }
   0x9   : > { %1417 = vmatprep.mubr.msk.bf16.mxu0 (!%p139_p2), %vm1777_vm0, %v1776_v1  ;;  %1469 = vmatprep.mubr.msk.bf16.mxu1 (!%p139_p2), %vm1777_vm0, %v1776_v1 }
   0xb   : > { %1410 = vmatpush3.bf16.msra.mxu0 (!%p139_p2), %v1538_v2  ;;  %1523 = vmatpush3.bf16.msra.mxu1 (!%p139_p2), %v1538_v2 }
   0xc   : > { %1411 = vmatprep.subr.bf16.mxu0 (!%p139_p2), %v1776_v1  ;;  %1519 = vmatprep.subr.bf16.mxu1 (!%p139_p2), %v1776_v1 }
   0xd   : > { %s2554_s18 = smov (!%p163_p3, %s162_s18), 99 }
   0xe   : > { %s1317_s21 = sshll.u32 %s2554_s18, 2  ;;  %s1318_s4 = sshll.u32 %s2554_s18, 3 }
   0xf   : > { %1412 = vmatpush3.bf16.msra.mxu0 %v1539_v3  ;;  %1524 = vmatpush3.bf16.msra.mxu1 %v1539_v3  ;;  %s1834_s26 = scalar_lea.vmem %s2549_s0, %s1317_s21  ;;  %s2039_s7 = scalar_lea.vmem %s2552_s3, %s1318_s4 }
  0x10   : > { %1413 = vmatprep.subr.bf16.mxu0 %v1776_v1  ;;  %1520 = vmatprep.subr.bf16.mxu1 %v1776_v1  ;;  %v1542_v7 = vld [vmem:[%s1834_s26] sm:$0xff]   ;;  %v1543_v8 = vld [vmem:[%s1834_s26 + $0x68] sm:$0xff]   ;;  %v1545_v10 = vld [vmem:[%s1834_s26 + $0x70] sm:$0xff]  }
  0x11   : > { %v1544_v9 = vld [vmem:[%s1834_s26 + $0x8] sm:$0xff]   ;;  %v1546_v11 = vld [vmem:[%s1834_s26 + $0x10] sm:$0xff]   ;;  %v1547_v12 = vld [vmem:[%s1834_s26 + $0x78] sm:$0xff]  }
  0x12   : > { %v1548_v13 = vld [vmem:[%s1834_s26 + $0x18] sm:$0xff]   ;;  %v1549_v14 = vld [vmem:[%s1834_s26 + $0x80] sm:$0xff]   ;;  %v1551_v16 = vld [vmem:[%s1834_s26 + $0x88] sm:$0xff]  }
  0x13   : > { %1414 = vmatpush3.bf16.msra.mxu0 %v1540_v4  ;;  %1525 = vmatpush3.bf16.msra.mxu1 %v1540_v4  ;;  %v1550_v15 = vld [vmem:[%s1834_s26 + $0x20] sm:$0xff]   ;;  %v1552_v17 = vld [vmem:[%s1834_s26 + $0x28] sm:$0xff]   ;;  %v1553_v18 = vld [vmem:[%s1834_s26 + $0x90] sm:$0xff]  }
  0x14   : > { %1415 = vmatprep.subr.bf16.mxu0 %v1776_v1  ;;  %1521 = vmatprep.subr.bf16.mxu1 %v1776_v1  ;;  %v1554_v19 = vld [vmem:[%s1834_s26 + $0x30] sm:$0xff]   ;;  %v1555_v20 = vld [vmem:[%s1834_s26 + $0x98] sm:$0xff]   ;;  %v1557_v22 = vld [vmem:[%s1834_s26 + $0xa0] sm:$0xff]  }
  0x15   : > { %v1556_v21 = vld [vmem:[%s1834_s26 + $0x38] sm:$0xff]   ;;  %v1558_v23 = vld [vmem:[%s1834_s26 + $0x40] sm:$0xff]   ;;  %v1559_v24 = vld [vmem:[%s1834_s26 + $0xa8] sm:$0xff]  }
  0x16   : > { %v1560_v25 = vld [vmem:[%s1834_s26 + $0x48] sm:$0xff]   ;;  %v1561_v26 = vld [vmem:[%s1834_s26 + $0xb0] sm:$0xff]   ;;  %v1563_v28 = vld [vmem:[%s1834_s26 + $0xb8] sm:$0xff]  }
  0x17   : > { %1416 = vmatpush3.bf16.msra.mxu0 %v471_v6  ;;  %1526 = vmatpush3.bf16.msra.mxu1 %v471_v6  ;;  %v1562_v27 = vld [vmem:[%s1834_s26 + $0x50] sm:$0xff]   ;;  %v1564_v29 = vld [vmem:[%s1834_s26 + $0x58] sm:$0xff]   ;;  %v1565_v30 = vld [vmem:[%s1834_s26 + $0xc0] sm:$0xff]  }
  0x18   : > { %v1566_v31 = vld [vmem:[%s1834_s26 + $0x60] sm:$0xff]  }
  0x1a   : > { %1418 = vmatmul.mubr.msk.bf16.vlgmr.msra.gmra.mrb[0].mxu0 %vm393_vm2, %v1542_v7  ;;  %1470 = vmatmul.mubr.msk.bf16.vlgmr.msra.gmra.mrb[0].mxu1 %vm393_vm2, %v1543_v8 }
  0x1b   : > { %1421 = vmatprep.mubr.msk.bf16.mxu0 %vm1777_vm0, %v1776_v1  ;;  %1473 = vmatprep.mubr.msk.bf16.mxu1 %vm1777_vm0, %v1776_v1 }
  0x22   : > { %1422 = vmatmul.mubr.msk.bf16.gmra.mrb[4].mxu0 %vm393_vm2, %v1544_v9  ;;  %1474 = vmatmul.mubr.msk.bf16.gmra.mrb[4].mxu1 %vm393_vm2, %v1545_v10 }
  0x23   : > { %1425 = vmatprep.mubr.msk.bf16.mxu0 %vm1777_vm0, %v1776_v1  ;;  %1477 = vmatprep.mubr.msk.bf16.mxu1 %vm1777_vm0, %v1776_v1 }
  0x2a   : > { %1426 = vmatmul.mubr.msk.bf16.gmra.mrb[8].mxu0 %vm393_vm2, %v1546_v11  ;;  %1478 = vmatmul.mubr.msk.bf16.gmra.mrb[8].mxu1 %vm393_vm2, %v1547_v12 }
  0x2b   : > { %1429 = vmatprep.mubr.msk.bf16.mxu0 %vm1777_vm0, %v1776_v1  ;;  %1481 = vmatprep.mubr.msk.bf16.mxu1 %vm1777_vm0, %v1776_v1 }
  0x32   : > { %1430 = vmatmul.mubr.msk.bf16.gmra.mrb[12].mxu0 %vm393_vm2, %v1548_v13  ;;  %1482 = vmatmul.mubr.msk.bf16.gmra.mrb[12].mxu1 %vm393_vm2, %v1549_v14 }
  0x33   : > { %1433 = vmatprep.mubr.msk.bf16.mxu0 %vm1777_vm0, %v1776_v1  ;;  %1485 = vmatprep.mubr.msk.bf16.mxu1 %vm1777_vm0, %v1776_v1 }
  0x3a   : > { %1434 = vmatmul.mubr.msk.bf16.gmra.mrb[16].mxu0 %vm393_vm2, %v1550_v15  ;;  %1486 = vmatmul.mubr.msk.bf16.gmra.mrb[16].mxu1 %vm393_vm2, %v1551_v16 }
  0x3b   : > { %1437 = vmatprep.mubr.msk.bf16.mxu0 %vm1777_vm0, %v1776_v1  ;;  %1489 = vmatprep.mubr.msk.bf16.mxu1 %vm1777_vm0, %v1776_v1 }
  0x42   : > { %1438 = vmatmul.mubr.msk.bf16.gmra.mrb[20].mxu0 %vm393_vm2, %v1552_v17  ;;  %1490 = vmatmul.mubr.msk.bf16.gmra.mrb[20].mxu1 %vm393_vm2, %v1553_v18 }
  0x43   : > { %1441 = vmatprep.mubr.msk.bf16.mxu0 %vm1777_vm0, %v1776_v1  ;;  %1493 = vmatprep.mubr.msk.bf16.mxu1 %vm1777_vm0, %v1776_v1 }
  0x4a   : > { %1442 = vmatmul.mubr.msk.bf16.gmra.mrb[24].mxu0 %vm393_vm2, %v1554_v19  ;;  %1494 = vmatmul.mubr.msk.bf16.gmra.mrb[24].mxu1 %vm393_vm2, %v1555_v20 }
  0x4b   : > { %1445 = vmatprep.mubr.msk.bf16.mxu0 %vm1777_vm0, %v1776_v1  ;;  %1497 = vmatprep.mubr.msk.bf16.mxu1 %vm1777_vm0, %v1776_v1 }
  0x52   : > { %1446 = vmatmul.mubr.msk.bf16.gmra.mrb[28].mxu0 %vm393_vm2, %v1556_v21  ;;  %1498 = vmatmul.mubr.msk.bf16.gmra.mrb[28].mxu1 %vm393_vm2, %v1557_v22 }
  0x53   : > { %1449 = vmatprep.mubr.msk.bf16.mxu0 %vm1777_vm0, %v1776_v1  ;;  %1501 = vmatprep.mubr.msk.bf16.mxu1 %vm1777_vm0, %v1776_v1 }
  0x5a   : > { %1450 = vmatmul.mubr.msk.bf16.gmra.mrb[32].mxu0 %vm393_vm2, %v1558_v23  ;;  %1502 = vmatmul.mubr.msk.bf16.gmra.mrb[32].mxu1 %vm393_vm2, %v1559_v24 }
  0x5b   : > { %1453 = vmatprep.mubr.msk.bf16.mxu0 %vm1777_vm0, %v1776_v1  ;;  %1505 = vmatprep.mubr.msk.bf16.mxu1 %vm1777_vm0, %v1776_v1 }
  0x62   : > { %1454 = vmatmul.mubr.msk.bf16.gmra.mrb[36].mxu0 %vm393_vm2, %v1560_v25  ;;  %1506 = vmatmul.mubr.msk.bf16.gmra.mrb[36].mxu1 %vm393_vm2, %v1561_v26 }
  0x63   : > { %1457 = vmatprep.mubr.msk.bf16.mxu0 %vm1777_vm0, %v1776_v1  ;;  %1509 = vmatprep.mubr.msk.bf16.mxu1 %vm1777_vm0, %v1776_v1 }
  0x6a   : > { %1458 = vmatmul.mubr.msk.bf16.gmra.mrb[40].mxu0 %vm393_vm2, %v1562_v27  ;;  %1510 = vmatmul.mubr.msk.bf16.gmra.mrb[40].mxu1 %vm393_vm2, %v1563_v28 }
  0x6b   : > { %1461 = vmatprep.mubr.msk.bf16.mxu0 %vm1777_vm0, %v1776_v1  ;;  %1513 = vmatprep.mubr.msk.bf16.mxu1 %vm1777_vm0, %v1776_v1 }
  0x72   : > { %1462 = vmatmul.mubr.msk.bf16.gmra.mrb[44].mxu0 %vm393_vm2, %v1564_v29  ;;  %1514 = vmatmul.mubr.msk.bf16.gmra.mrb[44].mxu1 %vm393_vm2, %v1565_v30 }
  0x73   : > { %1465 = vmatprep.mubr.msk.bf16.mxu0 %vm1777_vm0, %v1776_v1 }
  0x7a   : > { %1466 = vmatmul.mubr.msk.bf16.gmra.mrb[48].mxu0 %vm393_vm2, %v1566_v31 }
  0xed   : > { %v507_v33 = vpop.f32.mrb[0].mxu0  ;;  %v611_v34 = vpop.f32.mrb[0].mxu1 }
  0xee   : > { %v1945_v35 = vadd.f32 %v1942_v32, %v507_v33  ;;  %v1948_v36 = vadd.f32 %v1942_v32, %v611_v34  ;;  %v1419_v37 = vpop.f32.mrb[1].mxu0  ;;  %v1471_v38 = vpop.f32.mrb[1].mxu1 }
  0xef   : > { %v510_v39 = vpop.f32.mrb[2].mxu0  ;;  %v614_v40 = vpop.f32.mrb[2].mxu1 }
  0xf0   : > { %v706_v41 = vand.u32 2147483647, %v1945_v35  ;;  %v732_v42 = vand.u32 2147483647, %v1948_v36  ;;  %v1953_v43 = vadd.f32 %v1942_v32, %v510_v39  ;;  %v1956_v44 = vadd.f32 %v1942_v32, %v614_v40  ;;  %v1420_v45 = vpop.f32.mrb[3].mxu0  ;;  %v1472_v46 = vpop.f32.mrb[3].mxu1 }
  0xf1   : > { %vm906_vm3 = vcmp.ge.f32.partialorder %v1945_v35, 0.0  ;;  %vm932_vm4 = vcmp.ge.f32.partialorder %v1948_v36, 0.0 }
  0xf2   : > { %v756_v47 = vsub.f32 0.0, %v706_v41  ;;  %v782_v48 = vsub.f32 0.0, %v732_v42  ;;  %v707_v49 = vand.u32 2147483647, %v1953_v43  ;;  %v733_v50 = vand.u32 2147483647, %v1956_v44 }
  0xf3   : > { %vm907_vm5 = vcmp.ge.f32.partialorder %v1953_v43, 0.0  ;;  %vm933_vm6 = vcmp.ge.f32.partialorder %v1956_v44, 0.0 }
  0xf4   : > { %v806_v51 = vmul.f32 1.442695, %v756_v47  ;;  %v858_v52 = vmul.f32 1.442695, %v782_v48  ;;  %v757_v53 = vsub.f32 0.0, %v707_v49  ;;  %v783_v54 = vsub.f32 0.0, %v733_v50 }
  0xf5   : > { %v515_v55 = vpop.f32.mrb[4].mxu0  ;;  %v619_v56 = vpop.f32.mrb[4].mxu1 }
  0xf6   : > { %1567 = vpow2.f32 %v806_v51  ;;  %v1961_v57 = vadd.f32 %v1942_v32, %v515_v55  ;;  %v1964_v58 = vadd.f32 %v1942_v32, %v619_v56  ;;  %v1423_v59 = vpop.f32.mrb[5].mxu0  ;;  %v1475_v60 = vpop.f32.mrb[5].mxu1  ;;  %v808_v61 = vmul.f32 1.442695, %v757_v53 }
  0xf7   : > { %1569 = vpow2.f32 %v858_v52  ;;  %v860_v62 = vmul.f32 1.442695, %v783_v54  ;;  %v518_v63 = vpop.f32.mrb[6].mxu0  ;;  %v622_v0 = vpop.f32.mrb[6].mxu1 }
  0xf8   : > { %v708_v1 = vand.u32 2147483647, %v1961_v57  ;;  %v734_v2 = vand.u32 2147483647, %v1964_v58  ;;  %1571 = vpow2.f32 %v808_v61  ;;  %v1969_v3 = vadd.f32 %v1942_v32, %v518_v63  ;;  %v1424_v5 = vpop.f32.mrb[7].mxu0  ;;  %v1476_v6 = vpop.f32.mrb[7].mxu1 }
  0xf9   : > { %v1972_v4 = vadd.f32 %v1942_v32, %v622_v0  ;;  %1573 = vpow2.f32 %v860_v62  ;;  %vm908_vm7 = vcmp.ge.f32.partialorder %v1961_v57, 0.0  ;;  %vm934_vm8 = vcmp.ge.f32.partialorder %v1964_v58, 0.0 }
  0xfa   : > { %v758_v7 = vsub.f32 0.0, %v708_v1  ;;  %v784_v8 = vsub.f32 0.0, %v734_v2  ;;  %v709_v9 = vand.u32 2147483647, %v1969_v3  ;;  %vm909_vm9 = vcmp.ge.f32.partialorder %v1969_v3, 0.0 }
  0xfb   : > { %v735_v10 = vand.u32 2147483647, %v1972_v4  ;;  %vm935_vm10 = vcmp.ge.f32.partialorder %v1972_v4, 0.0 }
  0xfc   : > { %v810_v11 = vmul.f32 1.442695, %v758_v7  ;;  %v862_v12 = vmul.f32 1.442695, %v784_v8  ;;  %v759_v13 = vsub.f32 0.0, %v709_v9 }
  0xfd   : > { %v785_v14 = vsub.f32 0.0, %v735_v10  ;;  %v523_v15 = vpop.f32.mrb[8].mxu0  ;;  %v627_v16 = vpop.f32.mrb[8].mxu1 }
  0xfe   : > { %1575 = vpow2.f32 %v810_v11  ;;  %v1977_v17 = vadd.f32 %v1942_v32, %v523_v15  ;;  %v1980_v18 = vadd.f32 %v1942_v32, %v627_v16  ;;  %v1427_v19 = vpop.f32.mrb[9].mxu0  ;;  %v1479_v20 = vpop.f32.mrb[9].mxu1  ;;  %v812_v21 = vmul.f32 1.442695, %v759_v13 }
  0xff   : > { %1577 = vpow2.f32 %v862_v12  ;;  %v864_v22 = vmul.f32 1.442695, %v785_v14  ;;  %v526_v23 = vpop.f32.mrb[10].mxu0  ;;  %v630_v24 = vpop.f32.mrb[10].mxu1 }
 0x100   : > { %v1982_v25 = vpop.eup %1567  ;;  %v710_v26 = vand.u32 2147483647, %v1977_v17  ;;  %v736_v27 = vand.u32 2147483647, %v1980_v18  ;;  %1579 = vpow2.f32 %v812_v21  ;;  %v1990_v30 = vadd.f32 %v1942_v32, %v526_v23  ;;  %v1428_v33 = vpop.f32.mrb[11].mxu0 }
 0x101   : > { %v1986_v28 = vpop.eup %1569  ;;  %v956_v29 = vadd.f32 1.0, %v1982_v25  ;;  %v1993_v31 = vadd.f32 %v1942_v32, %v630_v24  ;;  %v1480_v34 = vpop.f32.mrb[11].mxu1  ;;  %1581 = vpow2.f32 %v864_v22  ;;  %vm910_vm11 = vcmp.ge.f32.partialorder %v1977_v17, 0.0 }
 0x102   : > { %v982_v37 = vadd.f32 1.0, %v1986_v28  ;;  %v760_v38 = vsub.f32 0.0, %v710_v26  ;;  %v786_v39 = vsub.f32 0.0, %v736_v27  ;;  %v1996_v40 = vpop.eup %1571  ;;  %v711_v41 = vand.u32 2147483647, %v1990_v30 }
 0x103   : > { %1583 = vrcp.f32 %v956_v29  ;;  %v737_v42 = vand.u32 2147483647, %v1993_v31  ;;  %v2000_v45 = vpop.eup %1573  ;;  %v957_v46 = vadd.f32 1.0, %v1996_v40  ;;  %vm936_vm12 = vcmp.ge.f32.partialorder %v1980_v18, 0.0 }
 0x104   : > { %1585 = vrcp.f32 %v982_v37  ;;  %v814_v47 = vmul.f32 1.442695, %v760_v38  ;;  %v866_v48 = vmul.f32 1.442695, %v786_v39  ;;  %v983_v49 = vadd.f32 1.0, %v2000_v45 }
 0x105   : > { %v761_v50 = vsub.f32 0.0, %v711_v41  ;;  %v787_v51 = vsub.f32 0.0, %v737_v42  ;;  %v531_v52 = vpop.f32.mrb[12].mxu0  ;;  %v635_v53 = vpop.f32.mrb[12].mxu1  ;;  %1587 = vrcp.f32 %v957_v46  ;;  %vm911_vm13 = vcmp.ge.f32.partialorder %v1990_v30, 0.0 }
 0x106   : > { %v2005_v54 = vadd.f32 %v1942_v32, %v531_v52  ;;  %v2008_v55 = vadd.f32 %v1942_v32, %v635_v53  ;;  %v1431_v56 = vpop.f32.mrb[13].mxu0  ;;  %v1483_v59 = vpop.f32.mrb[13].mxu1  ;;  %1589 = vrcp.f32 %v983_v49  ;;  %vm937_vm14 = vcmp.ge.f32.partialorder %v1993_v31, 0.0 }
 0x107   : > { %v816_v60 = vmul.f32 1.442695, %v761_v50  ;;  %v534_v61 = vpop.f32.mrb[14].mxu0  ;;  %v638_v62 = vpop.f32.mrb[14].mxu1  ;;  %1591 = vpow2.f32 %v814_v47  ;;  %v868_v7 = vmul.f32 1.442695, %v787_v51 }
 0x108   : > { %v2011_v63 = vpop.eup %1575  ;;  %v712_v0 = vand.u32 2147483647, %v2005_v54  ;;  %v738_v1 = vand.u32 2147483647, %v2008_v55  ;;  %v1432_v2 = vpop.f32.mrb[15].mxu0  ;;  %1593 = vpow2.f32 %v866_v48  ;;  %v2020_v8 = vadd.f32 %v1942_v32, %v534_v61 }
 0x109   : > { %v2016_v5 = vpop.eup %1577  ;;  %v958_v6 = vadd.f32 1.0, %v2011_v63  ;;  %v1484_v9 = vpop.f32.mrb[15].mxu1  ;;  %1595 = vpow2.f32 %v816_v60  ;;  %v2029_v15 = vadd.f32 %v1942_v32, %v638_v62  ;;  %vm912_vm15 = vcmp.ge.f32.partialorder %v2005_v54, 0.0 }
 0x10a   : > { %v984_v10 = vadd.f32 1.0, %v2016_v5  ;;  %v762_v11 = vsub.f32 0.0, %v712_v0  ;;  %v788_v12 = vsub.f32 0.0, %v738_v1  ;;  %v2023_v13 = vpop.eup %1579  ;;  %v713_v14 = vand.u32 2147483647, %v2020_v8 }
 0x10b   : > { %1597 = vrcp.f32 %v958_v6  ;;  %v2031_v16 = vpop.eup %1581  ;;  %v959_v19 = vadd.f32 1.0, %v2023_v13  ;;  %v739_v26 = vand.u32 2147483647, %v2029_v15  ;;  %vm938_vm0 = vcmp.ge.f32.partialorder %v2008_v55, 0.0 }
 0x10c   : > { %1599 = vrcp.f32 %v984_v10  ;;  %v818_v20 = vmul.f32 1.442695, %v762_v11  ;;  %v870_v21 = vmul.f32 1.442695, %v788_v12  ;;  %v985_v23 = vadd.f32 1.0, %v2031_v16 }
 0x10d   : > { %v1584_v22 = vpop.eup %1583  ;;  %1601 = vpow2.f32 %v868_v7  ;;  %v763_v24 = vsub.f32 0.0, %v713_v14  ;;  %v539_v27 = vpop.f32.mrb[16].mxu0  ;;  %v789_v46 = vsub.f32 0.0, %v739_v26  ;;  %vm913_vm1 = vcmp.ge.f32.partialorder %v2020_v8, 0.0 }
 0x10e   : > { %v643_v29 = vpop.f32.mrb[16].mxu1  ;;  %v1586_v33 = vpop.eup %1585  ;;  %v1106_v34 = vmul.f32 %v1584_v22, %v1982_v25  ;;  %1603 = vrcp.f32 %v959_v19  ;;  %v2044_v37 = vadd.f32 %v1942_v32, %v539_v27  ;;  %vm939_vm2 = vcmp.ge.f32.partialorder %v2029_v15, 0.0 }
 0x10f   : > { %v1435_v38 = vpop.f32.mrb[17].mxu0  ;;  %v1487_v39 = vpop.f32.mrb[17].mxu1  ;;  %v1132_v41 = vmul.f32 %v1586_v33, %v1986_v28  ;;  %1605 = vrcp.f32 %v985_v23  ;;  %v820_v42 = vmul.f32 1.442695, %v763_v24  ;;  %v872_v59 = vmul.f32 1.442695, %v789_v46 }
 0x110   : > { %v542_v47 = vpop.f32.mrb[18].mxu0  ;;  %v646_v48 = vpop.f32.mrb[18].mxu1  ;;  %v1156_v49 = vsel %vm906_vm3, %v1584_v22, %v1106_v34  ;;  %1607 = vpow2.f32 %v818_v20  ;;  %v714_v50 = vand.u32 2147483647, %v2044_v37  ;;  %v2061_v62 = vadd.f32 %v1942_v32, %v643_v29 }
 0x111   : > { %v1588_v25 = vpop.eup %1587  ;;  %v1436_v51 = vpop.f32.mrb[19].mxu0  ;;  %1206 = vst [vmem:[%s2039_s7] sm:$0xff] %v1156_v49  ;;  %v1182_v53 = vsel %vm932_vm4, %v1586_v33, %v1132_v41  ;;  %1609 = vpow2.f32 %v870_v21  ;;  %v2069_v1 = vadd.f32 %v1942_v32, %v542_v47  ;;  %v2088_v27 = vadd.f32 %v1942_v32, %v646_v48 }
 0x112   : > { %v1488_v52 = vpop.f32.mrb[19].mxu1  ;;  %v1590_v28 = vpop.eup %1589  ;;  %v1107_v56 = vmul.f32 %v1588_v25, %v1996_v40  ;;  %1232 = vst [vmem:[%s2039_s7 + $0xd0] sm:$0xff] %v1182_v53  ;;  %1611 = vpow2.f32 %v820_v42  ;;  %v764_v61 = vsub.f32 0.0, %v714_v50  ;;  %v740_v9 = vand.u32 2147483647, %v2061_v62 }
 0x113   : > { %v2056_v60 = vpop.eup %1591  ;;  %v1133_v35 = vmul.f32 %v1590_v28, %v2000_v45  ;;  %1613 = vpow2.f32 %v872_v59  ;;  %v715_v11 = vand.u32 2147483647, %v2069_v1  ;;  %v741_v57 = vand.u32 2147483647, %v2088_v27 }
 0x114   : > { %v2063_v0 = vpop.eup %1593  ;;  %v1157_v36 = vsel %vm907_vm5, %v1588_v25, %v1107_v56  ;;  %v960_v40 = vadd.f32 1.0, %v2056_v60  ;;  %v822_v7 = vmul.f32 1.442695, %v764_v61  ;;  %v790_v20 = vsub.f32 0.0, %v740_v9 }
 0x115   : > { %v2071_v2 = vpop.eup %1595  ;;  %1207 = vst [vmem:[%s2039_s7 + $0x8] sm:$0xff] %v1157_v36  ;;  %v1183_v45 = vsel %vm933_vm6, %v1590_v28, %v1133_v35  ;;  %v986_v6 = vadd.f32 1.0, %v2063_v0  ;;  %v547_v12 = vpop.f32.mrb[20].mxu0  ;;  %v765_v26 = vsub.f32 0.0, %v715_v11  ;;  %v791_v52 = vsub.f32 0.0, %v741_v57 }
 0x116   : > { %v1598_v10 = vpop.eup %1597  ;;  %1233 = vst [vmem:[%s2039_s7 + $0xd8] sm:$0xff] %v1183_v45  ;;  %1615 = vrcp.f32 %v960_v40  ;;  %v961_v43 = vadd.f32 1.0, %v2071_v2  ;;  %v651_v14 = vpop.f32.mrb[20].mxu1  ;;  %v874_v39 = vmul.f32 1.442695, %v790_v20  ;;  %v2105_v58 = vadd.f32 %v1942_v32, %v547_v12 }
 0x117   : > { %v1600_v19 = vpop.eup %1599  ;;  %v1108_v44 = vmul.f32 %v1598_v10, %v2011_v63  ;;  %1617 = vrcp.f32 %v986_v6  ;;  %v1439_v21 = vpop.f32.mrb[21].mxu0  ;;  %v824_v48 = vmul.f32 1.442695, %v765_v26  ;;  %v876_v35 = vmul.f32 1.442695, %v791_v52 }
 0x118   : > { %v1491_v22 = vpop.f32.mrb[21].mxu1  ;;  %v2084_v23 = vpop.eup %1601  ;;  %v1134_v24 = vmul.f32 %v1600_v19, %v2016_v5  ;;  %1619 = vrcp.f32 %v961_v43  ;;  %v716_v56 = vand.u32 2147483647, %v2105_v58  ;;  %v2128_v45 = vadd.f32 %v1942_v32, %v651_v14 }
 0x119   : > { %v550_v29 = vpop.f32.mrb[22].mxu0  ;;  %v654_v33 = vpop.f32.mrb[22].mxu1  ;;  %v1158_v34 = vsel %vm908_vm7, %v1598_v10, %v1108_v44  ;;  %v987_v38 = vadd.f32 1.0, %v2084_v23  ;;  %1621 = vpow2.f32 %v822_v7  ;;  %vm914_vm3 = vcmp.ge.f32.partialorder %v2044_v37, 0.0 }
 0x11a   : > { %v1604_v63 = vpop.eup %1603  ;;  %v1440_v41 = vpop.f32.mrb[23].mxu0  ;;  %1208 = vst [vmem:[%s2039_s7 + $0x10] sm:$0xff] %v1158_v34  ;;  %v1184_v5 = vsel %vm934_vm8, %v1600_v19, %v1134_v24  ;;  %v766_v40 = vsub.f32 0.0, %v716_v56  ;;  %v2132_v10 = vadd.f32 %v1942_v32, %v550_v29  ;;  %v2135_v43 = vadd.f32 %v1942_v32, %v654_v33 }
 0x11b   : > { %v1492_v42 = vpop.f32.mrb[23].mxu1  ;;  %v1606_v46 = vpop.eup %1605  ;;  %v1109_v47 = vmul.f32 %v1604_v63, %v2023_v13  ;;  %1234 = vst [vmem:[%s2039_s7 + $0xe0] sm:$0xff] %v1184_v5  ;;  %1623 = vrcp.f32 %v987_v38  ;;  %v742_v20 = vand.u32 2147483647, %v2128_v45  ;;  %vm940_vm4 = vcmp.ge.f32.partialorder %v2061_v62, 0.0 }
 0x11c   : > { %v2099_v25 = vpop.eup %1607  ;;  %v1135_v49 = vmul.f32 %v1606_v46, %v2031_v16  ;;  %1625 = vpow2.f32 %v874_v39  ;;  %v826_v44 = vmul.f32 1.442695, %v766_v40  ;;  %v717_v29 = vand.u32 2147483647, %v2132_v10 }
 0x11d   : > { %v2107_v50 = vpop.eup %1609  ;;  %v1159_v13 = vsel %vm909_vm9, %v1604_v63, %v1109_v47  ;;  %v962_v51 = vadd.f32 1.0, %v2099_v25  ;;  %1627 = vpow2.f32 %v824_v48  ;;  %v555_v61 = vpop.f32.mrb[24].mxu0  ;;  %v792_v38 = vsub.f32 0.0, %v742_v20 }
 0x11e   : > { %v2112_v28 = vpop.eup %1611  ;;  %1209 = vst [vmem:[%s2039_s7 + $0x18] sm:$0xff] %v1159_v13  ;;  %v1185_v16 = vsel %vm935_vm10, %v1606_v46, %v1135_v49  ;;  %v988_v53 = vadd.f32 1.0, %v2107_v50  ;;  %v2124_v36 = vpop.f32.mrb[24].mxu1  ;;  %v2146_v33 = vadd.f32 %v1942_v32, %v555_v61  ;;  %v767_v41 = vsub.f32 0.0, %v717_v29 }
 0x11f   : > { %v2119_v59 = vpop.eup %1613  ;;  %1235 = vst [vmem:[%s2039_s7 + $0xe8] sm:$0xff] %v1185_v16  ;;  %1629 = vrcp.f32 %v962_v51  ;;  %v963_v3 = vadd.f32 1.0, %v2112_v28  ;;  %v1443_v6 = vpop.f32.mrb[25].mxu0  ;;  %v878_v46 = vmul.f32 1.442695, %v792_v38  ;;  %vm915_vm5 = vcmp.ge.f32.partialorder %v2069_v1, 0.0 }
 0x120   : > { %1631 = vrcp.f32 %v988_v53  ;;  %v989_v4 = vadd.f32 1.0, %v2119_v59  ;;  %v1495_v7 = vpop.f32.mrb[25].mxu1  ;;  %v1616_v9 = vpop.eup %1615  ;;  %v828_v47 = vmul.f32 1.442695, %v767_v41  ;;  %v718_v48 = vand.u32 2147483647, %v2146_v33 }
 0x121   : > { %1633 = vrcp.f32 %v963_v3  ;;  %v2137_v11 = vpop.f32.mrb[26].mxu0  ;;  %v2139_v12 = vpop.f32.mrb[26].mxu1  ;;  %v1110_v14 = vmul.f32 %v1616_v9, %v2056_v60  ;;  %v2183_v7 = vadd.f32 %v1942_v32, %v2124_v36  ;;  %vm941_vm6 = vcmp.ge.f32.partialorder %v2088_v27, 0.0 }
 0x122   : > { %v1618_v19 = vpop.eup %1617  ;;  %1635 = vrcp.f32 %v989_v4  ;;  %v1444_v21 = vpop.f32.mrb[27].mxu0  ;;  %v768_v3 = vsub.f32 0.0, %v718_v48  ;;  %v2188_v20 = vadd.f32 %v1942_v32, %v2137_v11  ;;  %v2212_v15 = vadd.f32 %v1942_v32, %v2139_v12 }
 0x123   : > { %v1496_v22 = vpop.f32.mrb[27].mxu1  ;;  %v1620_v24 = vpop.eup %1619  ;;  %v1136_v26 = vmul.f32 %v1618_v19, %v2063_v0  ;;  %1637 = vpow2.f32 %v876_v35  ;;  %v1160_v60 = vsel %vm910_vm11, %v1616_v9, %v1110_v14  ;;  %vm916_vm7 = vcmp.ge.f32.partialorder %v2105_v58, 0.0 }
 0x124   : > { %v2148_v63 = vpop.eup %1621  ;;  %v1111_v34 = vmul.f32 %v1620_v24, %v2071_v2  ;;  %1639 = vpow2.f32 %v826_v44  ;;  %1210 = vst [vmem:[%s2039_s7 + $0x20] sm:$0xff] %v1160_v60  ;;  %v743_v2 = vand.u32 2147483647, %v2135_v43  ;;  %v830_v44 = vmul.f32 1.442695, %v768_v3 }
 0x125   : > { %v1186_v0 = vsel %vm936_vm12, %v1618_v19, %v1136_v26  ;;  %v964_v39 = vadd.f32 1.0, %v2148_v63  ;;  %v1624_v42 = vpop.eup %1623  ;;  %v563_v57 = vpop.f32.mrb[28].mxu0  ;;  %v744_v22 = vand.u32 2147483647, %v2183_v7  ;;  %v719_v60 = vand.u32 2147483647, %v2188_v20 }
 0x126   : > { %1236 = vst [vmem:[%s2039_s7 + $0xf0] sm:$0xff] %v1186_v0  ;;  %v1161_v17 = vsel %vm911_vm13, %v1620_v24, %v1111_v34  ;;  %v2163_v5 = vpop.eup %1625  ;;  %v1137_v18 = vmul.f32 %v1624_v42, %v2084_v23  ;;  %v667_v49 = vpop.f32.mrb[28].mxu1  ;;  %v793_v51 = vsub.f32 0.0, %v743_v2  ;;  %vm942_vm8 = vcmp.ge.f32.partialorder %v2128_v45, 0.0 }
 0x127   : > { %1211 = vst [vmem:[%s2039_s7 + $0x28] sm:$0xff] %v1161_v17  ;;  %1641 = vrcp.f32 %v964_v39  ;;  %v2168_v13 = vpop.eup %1627  ;;  %v990_v30 = vadd.f32 1.0, %v2163_v5  ;;  %v1447_v52 = vpop.f32.mrb[29].mxu0  ;;  %v794_v29 = vsub.f32 0.0, %v744_v22  ;;  %v769_v8 = vsub.f32 0.0, %v719_v60 }
 0x128   : > { %1643 = vpow2.f32 %v878_v46  ;;  %v1499_v16 = vpop.f32.mrb[29].mxu1  ;;  %v1187_v23 = vsel %vm937_vm14, %v1624_v42, %v1137_v18  ;;  %v965_v56 = vadd.f32 1.0, %v2168_v13  ;;  %v2175_v35 = vpop.f32.mrb[30].mxu0  ;;  %v880_v6 = vmul.f32 1.442695, %v793_v51 }
 0x129   : > { %v1630_v53 = vpop.eup %1629  ;;  %1645 = vpow2.f32 %v828_v47  ;;  %v2177_v61 = vpop.f32.mrb[30].mxu1  ;;  %1237 = vst [vmem:[%s2039_s7 + $0xf8] sm:$0xff] %v1187_v23  ;;  %v882_v0 = vmul.f32 1.442695, %v794_v29  ;;  %v2216_v39 = vadd.f32 %v1942_v32, %v563_v57  ;;  %v745_v46 = vand.u32 2147483647, %v2212_v15 }
 0x12a   : > { %v1632_v4 = vpop.eup %1631  ;;  %v1112_v40 = vmul.f32 %v1630_v53, %v2099_v25  ;;  %1647 = vrcp.f32 %v990_v30  ;;  %v1448_v31 = vpop.f32.mrb[31].mxu0  ;;  %v2221_v12 = vadd.f32 %v1942_v32, %v667_v49  ;;  %v832_v57 = vmul.f32 1.442695, %v769_v8 }
 0x12b   : > { %v1500_v9 = vpop.f32.mrb[31].mxu1  ;;  %v1634_v19 = vpop.eup %1633  ;;  %v1138_v14 = vmul.f32 %v1632_v4, %v2107_v50  ;;  %1649 = vrcp.f32 %v965_v56  ;;  %v720_v30 = vand.u32 2147483647, %v2216_v39  ;;  %vm917_vm9 = vcmp.ge.f32.partialorder %v2132_v10, 0.0 }
 0x12c   : > { %v1636_v25 = vpop.eup %1635  ;;  %v1162_v21 = vsel %vm912_vm15, %v1630_v53, %v1112_v40  ;;  %v1113_v36 = vmul.f32 %v1634_v19, %v2112_v28  ;;  %1651 = vpow2.f32 %v880_v6  ;;  %v795_v53 = vsub.f32 0.0, %v745_v46 }
 0x12d   : > { %v2194_v24 = vpop.eup %1637  ;;  %1212 = vst [vmem:[%s2039_s7 + $0x30] sm:$0xff] %v1162_v21  ;;  %v1188_v50 = vsel %vm938_vm0, %v1632_v4, %v1138_v14  ;;  %v1139_v11 = vmul.f32 %v1636_v25, %v2119_v59  ;;  %1653 = vpow2.f32 %v830_v44  ;;  %v571_v59 = vpop.f32.mrb[32].mxu0  ;;  %v746_v23 = vand.u32 2147483647, %v2221_v12 }
 0x12e   : > { %v2201_v54 = vpop.eup %1639  ;;  %1238 = vst [vmem:[%s2039_s7 + $0x100] sm:$0xff] %v1188_v50  ;;  %v1163_v28 = vsel %vm913_vm1, %v1634_v19, %v1113_v36  ;;  %v991_v26 = vadd.f32 1.0, %v2194_v24  ;;  %v675_v38 = vpop.f32.mrb[32].mxu1  ;;  %v770_v4 = vsub.f32 0.0, %v720_v30  ;;  %v884_v31 = vmul.f32 1.442695, %v795_v53 }
 0x12f   : > { %1213 = vst [vmem:[%s2039_s7 + $0x38] sm:$0xff] %v1163_v28  ;;  %v1189_v55 = vsel %vm939_vm2, %v1636_v25, %v1139_v11  ;;  %v966_v34 = vadd.f32 1.0, %v2201_v54  ;;  %v1451_v41 = vpop.f32.mrb[33].mxu0  ;;  %v1503_v42 = vpop.f32.mrb[33].mxu1  ;;  %v796_v9 = vsub.f32 0.0, %v746_v23  ;;  %v2258_v50 = vadd.f32 %v1942_v32, %v2175_v35 }
 0x130   : > { %1239 = vst [vmem:[%s2039_s7 + $0x108] sm:$0xff] %v1189_v55  ;;  %1655 = vrcp.f32 %v991_v26  ;;  %v2223_v2 = vpop.f32.mrb[34].mxu0  ;;  %v2225_v18 = vpop.f32.mrb[34].mxu1  ;;  %v834_v37 = vmul.f32 1.442695, %v770_v4  ;;  %v2263_v28 = vadd.f32 %v1942_v32, %v2177_v61  ;;  %v2266_v26 = vadd.f32 %v1942_v32, %v571_v59 }
 0x131   : > { %v1642_v17 = vpop.eup %1641  ;;  %1657 = vrcp.f32 %v966_v34  ;;  %v1452_v51 = vpop.f32.mrb[35].mxu0  ;;  %v886_v21 = vmul.f32 1.442695, %v796_v9  ;;  %v2269_v29 = vadd.f32 %v1942_v32, %v675_v38  ;;  %v721_v34 = vand.u32 2147483647, %v2258_v50 }
 0x132   : > { %v2227_v47 = vpop.eup %1643  ;;  %v1114_v48 = vmul.f32 %v1642_v17, %v2148_v63  ;;  %1659 = vpow2.f32 %v882_v0  ;;  %v1504_v52 = vpop.f32.mrb[35].mxu1  ;;  %v747_v38 = vand.u32 2147483647, %v2263_v28  ;;  %v722_v46 = vand.u32 2147483647, %v2266_v26 }
 0x133   : > { %v2231_v16 = vpop.eup %1645  ;;  %v992_v49 = vadd.f32 1.0, %v2227_v47  ;;  %1661 = vpow2.f32 %v832_v57  ;;  %v748_v51 = vand.u32 2147483647, %v2269_v29  ;;  %vm943_vm10 = vcmp.ge.f32.partialorder %v2135_v43, 0.0 }
 0x134   : > { %v1648_v56 = vpop.eup %1647  ;;  %v1164_v63 = vsel %vm914_vm3, %v1642_v17, %v1114_v48  ;;  %v967_v3 = vadd.f32 1.0, %v2231_v16  ;;  %v771_v17 = vsub.f32 0.0, %v721_v34  ;;  %v2287_v48 = vadd.f32 %v1942_v32, %v2223_v2 }
 0x135   : > { %v1650_v40 = vpop.eup %1649  ;;  %1214 = vst [vmem:[%s2039_s7 + $0x40] sm:$0xff] %v1164_v63  ;;  %v1140_v6 = vmul.f32 %v1648_v56, %v2163_v5  ;;  %1663 = vrcp.f32 %v992_v49  ;;  %v2250_v36 = vpop.f32.mrb[36].mxu0  ;;  %v797_v30 = vsub.f32 0.0, %v747_v38  ;;  %v772_v53 = vsub.f32 0.0, %v722_v46 }
 0x136   : > { %v2241_v19 = vpop.eup %1651  ;;  %v1115_v14 = vmul.f32 %v1650_v40, %v2168_v13  ;;  %1665 = vrcp.f32 %v967_v3  ;;  %v2252_v22 = vpop.f32.mrb[36].mxu1  ;;  %v836_v49 = vmul.f32 1.442695, %v771_v17  ;;  %v2332_v38 = vadd.f32 %v1942_v32, %v2250_v36 }
 0x137   : > { %v2245_v44 = vpop.eup %1653  ;;  %v1190_v25 = vsel %vm940_vm4, %v1648_v56, %v1140_v6  ;;  %v993_v5 = vadd.f32 1.0, %v2241_v19  ;;  %1667 = vpow2.f32 %v884_v31  ;;  %v1455_v11 = vpop.f32.mrb[37].mxu0  ;;  %v888_v23 = vmul.f32 1.442695, %v797_v30 }
 0x138   : > { %1240 = vst [vmem:[%s2039_s7 + $0x110] sm:$0xff] %v1190_v25  ;;  %v1165_v1 = vsel %vm915_vm5, %v1650_v40, %v1115_v14  ;;  %v968_v13 = vadd.f32 1.0, %v2245_v44  ;;  %1669 = vpow2.f32 %v834_v37  ;;  %v1507_v62 = vpop.f32.mrb[37].mxu1  ;;  %v2271_v60 = vpop.f32.mrb[38].mxu0  ;;  %v798_v56 = vsub.f32 0.0, %v748_v51 }
 0x139   : > { %1215 = vst [vmem:[%s2039_s7 + $0x48] sm:$0xff] %v1165_v1  ;;  %1671 = vrcp.f32 %v993_v5  ;;  %v2273_v55 = vpop.f32.mrb[38].mxu1  ;;  %v1456_v61 = vpop.f32.mrb[39].mxu0  ;;  %v838_v58 = vmul.f32 1.442695, %v772_v53  ;;  %vm918_vm11 = vcmp.ge.f32.partialorder %v2146_v33, 0.0  ;;  %v2352_v43 = vadd.f32 %v1942_v32, %v2252_v22 }
 0x13a   : > { %v1656_v35 = vpop.eup %1655  ;;  %1673 = vrcp.f32 %v968_v13  ;;  %v1508_v0 = vpop.f32.mrb[39].mxu1  ;;  %v723_v6 = vand.u32 2147483647, %v2287_v48  ;;  %v890_v25 = vmul.f32 1.442695, %v798_v56  ;;  %vm944_vm12 = vcmp.ge.f32.partialorder %v2183_v7, 0.0 }
 0x13b   : > { %v1658_v59 = vpop.eup %1657  ;;  %v1141_v8 = vmul.f32 %v1656_v35, %v2194_v24  ;;  %1675 = vpow2.f32 %v886_v21  ;;  %v2326_v0 = vadd.f32 %v1942_v32, %v2225_v18  ;;  %v724_v46 = vand.u32 2147483647, %v2332_v38 }
 0x13c   : > { %v2281_v41 = vpop.eup %1659  ;;  %v1116_v42 = vmul.f32 %v1658_v59, %v2201_v54  ;;  %v773_v11 = vsub.f32 0.0, %v723_v6  ;;  %v2356_v30 = vadd.f32 %v1942_v32, %v2271_v60  ;;  %vm919_vm13 = vcmp.ge.f32.partialorder %v2188_v20, 0.0 }
 0x13d   : > { %v1191_v24 = vsel %vm941_vm6, %v1656_v35, %v1141_v8  ;;  %v994_v57 = vadd.f32 1.0, %v2281_v41  ;;  %v2293_v52 = vpop.eup %1661  ;;  %v2301_v63 = vpop.f32.mrb[40].mxu0  ;;  %v749_v18 = vand.u32 2147483647, %v2326_v0  ;;  %vm945_vm14 = vcmp.ge.f32.partialorder %v2212_v15, 0.0 }
 0x13e   : > { %1241 = vst [vmem:[%s2039_s7 + $0x118] sm:$0xff] %v1191_v24  ;;  %v1166_v54 = vsel %vm916_vm7, %v1658_v59, %v1116_v42  ;;  %v969_v27 = vadd.f32 1.0, %v2293_v52  ;;  %v2303_v3 = vpop.f32.mrb[40].mxu1  ;;  %v1459_v31 = vpop.f32.mrb[41].mxu0  ;;  %v840_v8 = vmul.f32 1.442695, %v773_v11 }
 0x13f   : > { %v1664_v2 = vpop.eup %1663  ;;  %1216 = vst [vmem:[%s2039_s7 + $0x50] sm:$0xff] %v1166_v54  ;;  %1677 = vrcp.f32 %v994_v57  ;;  %v1511_v9 = vpop.f32.mrb[41].mxu1  ;;  %v799_v24 = vsub.f32 0.0, %v749_v18  ;;  %v774_v57 = vsub.f32 0.0, %v724_v46  ;;  %vm920_vm15 = vcmp.ge.f32.partialorder %v2216_v39, 0.0 }
 0x140   : > { %v1666_v4 = vpop.eup %1665  ;;  %v1142_v40 = vmul.f32 %v1664_v2, %v2227_v47  ;;  %1679 = vpow2.f32 %v836_v49  ;;  %v2311_v5 = vpop.f32.mrb[42].mxu0  ;;  %v2377_v31 = vadd.f32 %v1942_v32, %v2301_v63  ;;  %vm946_vm0 = vcmp.ge.f32.partialorder %v2221_v12, 0.0 }
 0x141   : > { %v2307_v14 = vpop.eup %1667  ;;  %v1117_v37 = vmul.f32 %v1666_v4, %v2231_v16  ;;  %1681 = vrcp.f32 %v969_v27  ;;  %v2313_v21 = vpop.f32.mrb[42].mxu1  ;;  %v892_v53 = vmul.f32 1.442695, %v799_v24  ;;  %v842_v56 = vmul.f32 1.442695, %v774_v57 }
 0x142   : > { %v2315_v47 = vpop.eup %1669  ;;  %v1192_v1 = vsel %vm942_vm8, %v1664_v2, %v1142_v40  ;;  %v995_v13 = vadd.f32 1.0, %v2307_v14  ;;  %1683 = vpow2.f32 %v888_v23  ;;  %v1460_v62 = vpop.f32.mrb[43].mxu0  ;;  %v2362_v2 = vadd.f32 %v1942_v32, %v2273_v55 }
 0x143   : > { %v1512_v16 = vpop.f32.mrb[43].mxu1  ;;  %v1672_v35 = vpop.eup %1671  ;;  %1242 = vst [vmem:[%s2039_s7 + $0x120] sm:$0xff] %v1192_v1  ;;  %v1167_v34 = vsel %vm917_vm9, %v1666_v4, %v1117_v37  ;;  %v970_v61 = vadd.f32 1.0, %v2315_v47  ;;  %1685 = vpow2.f32 %v838_v58  ;;  %v750_v4 = vand.u32 2147483647, %v2352_v43 }
 0x144   : > { %v1674_v45 = vpop.eup %1673  ;;  %1217 = vst [vmem:[%s2039_s7 + $0x58] sm:$0xff] %v1167_v34  ;;  %v1143_v59 = vmul.f32 %v1672_v35, %v2241_v19  ;;  %1687 = vrcp.f32 %v995_v13  ;;  %v725_v55 = vand.u32 2147483647, %v2356_v30  ;;  %v751_v32 = vand.u32 2147483647, %v2362_v2 }
 0x145   : > { %v2334_v10 = vpop.eup %1675  ;;  %v1118_v42 = vmul.f32 %v1674_v45, %v2245_v44  ;;  %1689 = vrcp.f32 %v970_v61  ;;  %v2345_v33 = vpop.f32.mrb[44].mxu0  ;;  %v800_v1 = vsub.f32 0.0, %v750_v4  ;;  %vm921_vm1 = vcmp.ge.f32.partialorder %v2258_v50, 0.0 }
 0x146   : > { %v1193_v17 = vsel %vm943_vm10, %v1672_v35, %v1143_v59  ;;  %v996_v19 = vadd.f32 1.0, %v2334_v10  ;;  %1691 = vpow2.f32 %v890_v25  ;;  %v2347_v44 = vpop.f32.mrb[44].mxu1  ;;  %v1463_v51 = vpop.f32.mrb[45].mxu0  ;;  %v775_v62 = vsub.f32 0.0, %v725_v55 }
 0x147   : > { %1243 = vst [vmem:[%s2039_s7 + $0x128] sm:$0xff] %v1193_v17  ;;  %v1168_v36 = vsel %vm918_vm11, %v1674_v45, %v1118_v42  ;;  %1693 = vpow2.f32 %v840_v8  ;;  %v1515_v54 = vpop.f32.mrb[45].mxu1  ;;  %v2364_v27 = vpop.f32.mrb[46].mxu0  ;;  %v894_v35 = vmul.f32 1.442695, %v800_v1  ;;  %v801_v20 = vsub.f32 0.0, %v751_v32 }
 0x148   : > { %1218 = vst [vmem:[%s2039_s7 + $0x60] sm:$0xff] %v1168_v36  ;;  %1695 = vrcp.f32 %v996_v19  ;;  %v2366_v22 = vpop.f32.mrb[46].mxu1  ;;  %v1464_v40 = vpop.f32.mrb[47].mxu0  ;;  %v844_v59 = vmul.f32 1.442695, %v775_v62  ;;  %vm947_vm2 = vcmp.ge.f32.partialorder %v2263_v28, 0.0 }
 0x149   : > { %v1678_v49 = vpop.eup %1677  ;;  %1697 = vpow2.f32 %v892_v53  ;;  %v1516_v9 = vpop.f32.mrb[47].mxu1  ;;  %v896_v36 = vmul.f32 1.442695, %v801_v20  ;;  %vm922_vm3 = vcmp.ge.f32.partialorder %v2266_v26, 0.0  ;;  %vm948_vm4 = vcmp.ge.f32.partialorder %v2269_v29, 0.0 }
 0x14a   : > { %v2368_v23 = vpop.eup %1679  ;;  %v1144_v60 = vmul.f32 %v1678_v49, %v2281_v41  ;;  %1699 = vpow2.f32 %v842_v56  ;;  %vm923_vm5 = vcmp.ge.f32.partialorder %v2287_v48, 0.0  ;;  %vm949_vm6 = vcmp.ge.f32.partialorder %v2326_v0, 0.0 }
 0x14b   : > { %v1682_v58 = vpop.eup %1681  ;;  %v971_v6 = vadd.f32 1.0, %v2368_v23  ;;  %vm924_vm7 = vcmp.ge.f32.partialorder %v2332_v38, 0.0  ;;  %vm950_vm8 = vcmp.ge.f32.partialorder %v2352_v43, 0.0  ;;  %vm925_vm9 = vcmp.ge.f32.partialorder %v2356_v30, 0.0 }
 0x14c   : > { %v2379_v37 = vpop.eup %1683  ;;  %v1194_v41 = vsel %vm944_vm12, %v1678_v49, %v1144_v60  ;;  %v1119_v25 = vmul.f32 %v1682_v58, %v2293_v52  ;;  %v2395_v52 = vld [vmem:[%s2551_s2] ss:$0 sm:$0xff]  ;;  %vm951_vm10 = vcmp.ge.f32.partialorder %v2362_v2, 0.0  ;;  %vm926_vm11 = vcmp.ge.f32.partialorder %v2377_v31, 0.0 }
 0x14d   : > { %v2384_v13 = vpop.eup %1685  ;;  %1244 = vst [vmem:[%s2039_s7 + $0x130] sm:$0xff] %v1194_v41  ;;  %1701 = vrcp.f32 %v971_v6  ;;  %v997_v11 = vadd.f32 1.0, %v2379_v37  ;;  %v2399_v34 = vadd.f32 %v2395_v52, %v2303_v3  ;;  %v2403_v8 = vpop.f32.mrb[48].mxu0  ;;  %v726_v3 = vand.u32 2147483647, %v2377_v31 }
 0x14e   : > { %v1688_v63 = vpop.eup %1687  ;;  %v1169_v16 = vsel %vm919_vm13, %v1682_v58, %v1119_v25  ;;  %v972_v7 = vadd.f32 1.0, %v2384_v13  ;;  %v1467_v17 = vpop.f32.mrb[49].mxu0  ;;  %v2427_v39 = vadd.f32 %v2395_v52, %v2311_v5  ;;  %v2431_v56 = vadd.f32 %v2395_v52, %v2313_v21 }
 0x14f   : > { %v1690_v61 = vpop.eup %1689  ;;  %1219 = vst [vmem:[%s2039_s7 + $0x68] sm:$0xff] %v1169_v16  ;;  %v1145_v45 = vmul.f32 %v1688_v63, %v2307_v14  ;;  %1703 = vrcp.f32 %v997_v11  ;;  %v2415_v24 = vpop.f32.mrb[50].mxu0  ;;  %v776_v54 = vsub.f32 0.0, %v726_v3  ;;  %v752_v53 = vand.u32 2147483647, %v2399_v34 }
 0x150   : > { %v2405_v42 = vpop.eup %1691  ;;  %v1120_v18 = vmul.f32 %v1690_v61, %v2315_v47  ;;  %1705 = vrcp.f32 %v972_v7  ;;  %v1468_v49 = vpop.f32.mrb[51].mxu0  ;;  %v2439_v58 = vadd.f32 %v2395_v52, %v2345_v33  ;;  %v727_v21 = vand.u32 2147483647, %v2427_v39 }
 0x151   : > { %v2410_v19 = vpop.eup %1693  ;;  %v1195_v14 = vsel %vm945_vm14, %v1688_v63, %v1145_v45  ;;  %v998_v46 = vadd.f32 1.0, %v2405_v42  ;;  %1707 = vpow2.f32 %v894_v35  ;;  %v846_v60 = vmul.f32 1.442695, %v776_v54 }
 0x152   : > { %v1696_v57 = vpop.eup %1695  ;;  %1245 = vst [vmem:[%s2039_s7 + $0x138] sm:$0xff] %v1195_v14  ;;  %v1170_v47 = vsel %vm920_vm15, %v1690_v61, %v1120_v18  ;;  %v973_v51 = vadd.f32 1.0, %v2410_v19  ;;  %1709 = vpow2.f32 %v844_v59  ;;  %v802_v40 = vsub.f32 0.0, %v752_v53 }
 0x153   : > { %1220 = vst [vmem:[%s2039_s7 + $0x70] sm:$0xff] %v1170_v47  ;;  %v1146_v15 = vmul.f32 %v1696_v57, %v2334_v10  ;;  %1711 = vrcp.f32 %v998_v46  ;;  %v2433_v4 = vpop.eup %1697  ;;  %v753_v41 = vand.u32 2147483647, %v2431_v56  ;;  %v777_v25 = vsub.f32 0.0, %v727_v21 }
 0x154   : > { %1713 = vrcp.f32 %v973_v51  ;;  %v2441_v6 = vpop.eup %1699  ;;  %v999_v5 = vadd.f32 1.0, %v2433_v4  ;;  %v898_v9 = vmul.f32 1.442695, %v802_v40  ;;  %v728_v1 = vand.u32 2147483647, %v2439_v58 }
 0x155   : > { %v1196_v10 = vsel %vm946_vm0, %v1696_v57, %v1146_v15  ;;  %1715 = vpow2.f32 %v896_v36  ;;  %v974_v12 = vadd.f32 1.0, %v2441_v6  ;;  %v803_v62 = vsub.f32 0.0, %v753_v41 }
 0x156   : > { %1246 = vst [vmem:[%s2039_s7 + $0x140] sm:$0xff] %v1196_v10  ;;  %1717 = vpow2.f32 %v846_v60  ;;  %v2455_v32 = vadd.f32 %v2395_v52, %v2347_v44  ;;  %v848_v7 = vmul.f32 1.442695, %v777_v25  ;;  %v778_v59 = vsub.f32 0.0, %v728_v1 }
 0x157   : > { %v1702_v55 = vpop.eup %1701  ;;  %1719 = vrcp.f32 %v999_v5  ;;  %v900_v45 = vmul.f32 1.442695, %v803_v62  ;;  %v2479_v36 = vadd.f32 %v2395_v52, %v2364_v27  ;;  %v2486_v47 = vadd.f32 %v2395_v52, %v2366_v22 }
 0x158   : > { %v1121_v33 = vmul.f32 %v1702_v55, %v2368_v23  ;;  %1721 = vrcp.f32 %v974_v12  ;;  %v754_v44 = vand.u32 2147483647, %v2455_v32  ;;  %v850_v17 = vmul.f32 1.442695, %v778_v59 }
 0x159   : > { %v1704_v11 = vpop.eup %1703  ;;  %1723 = vpow2.f32 %v898_v9  ;;  %v2490_v51 = vadd.f32 %v2395_v52, %v2403_v8  ;;  %v729_v15 = vand.u32 2147483647, %v2479_v36  ;;  %v755_v29 = vand.u32 2147483647, %v2486_v47 }
 0x15a   : > { %v1706_v63 = vpop.eup %1705  ;;  %v1171_v16 = vsel %vm921_vm1, %v1702_v55, %v1121_v33  ;;  %v1147_v23 = vmul.f32 %v1704_v11, %v2379_v37  ;;  %1725 = vpow2.f32 %v848_v7  ;;  %v804_v46 = vsub.f32 0.0, %v754_v44 }
 0x15b   : > { %v2460_v35 = vpop.eup %1707  ;;  %1221 = vst [vmem:[%s2039_s7 + $0x78] sm:$0xff] %v1171_v16  ;;  %v1122_v61 = vmul.f32 %v1706_v63, %v2384_v13  ;;  %1727 = vpow2.f32 %v900_v45  ;;  %v730_v8 = vand.u32 2147483647, %v2490_v51  ;;  %v779_v48 = vsub.f32 0.0, %v729_v15 }
 0x15c   : > { %v2465_v20 = vpop.eup %1709  ;;  %v1197_v50 = vsel %vm947_vm2, %v1704_v11, %v1147_v23  ;;  %v1000_v37 = vadd.f32 1.0, %v2460_v35  ;;  %v902_v49 = vmul.f32 1.442695, %v804_v46  ;;  %v805_v21 = vsub.f32 0.0, %v755_v29 }
 0x15d   : > { %v1712_v18 = vpop.eup %1711  ;;  %1247 = vst [vmem:[%s2039_s7 + $0x148] sm:$0xff] %v1197_v50  ;;  %v1172_v13 = vsel %vm922_vm3, %v1706_v63, %v1122_v61  ;;  %v975_v3 = vadd.f32 1.0, %v2465_v20  ;;  %v780_v0 = vsub.f32 0.0, %v730_v8  ;;  %v852_v9 = vmul.f32 1.442695, %v779_v48 }
 0x15e   : > { %v1714_v14 = vpop.eup %1713  ;;  %1222 = vst [vmem:[%s2039_s7 + $0x80] sm:$0xff] %v1172_v13  ;;  %v1148_v28 = vmul.f32 %v1712_v18, %v2405_v42  ;;  %1729 = vrcp.f32 %v1000_v37  ;;  %v2511_v41 = vadd.f32 %v2395_v52, %v2415_v24  ;;  %v904_v1 = vmul.f32 1.442695, %v805_v21 }
 0x15f   : > { %v2481_v57 = vpop.eup %1715  ;;  %v1123_v26 = vmul.f32 %v1714_v14, %v2410_v19  ;;  %1731 = vrcp.f32 %v975_v3  ;;  %v854_v63 = vmul.f32 1.442695, %v780_v0  ;;  %vm952_vm12 = vcmp.ge.f32.partialorder %v2399_v34, 0.0 }
 0x160   : > { %v2492_v42 = vpop.eup %1717  ;;  %v1198_v27 = vsel %vm948_vm4, %v1712_v18, %v1148_v28  ;;  %v1001_v54 = vadd.f32 1.0, %v2481_v57  ;;  %1733 = vpow2.f32 %v850_v17  ;;  %vm927_vm13 = vcmp.ge.f32.partialorder %v2427_v39, 0.0 }
 0x161   : > { %1248 = vst [vmem:[%s2039_s7 + $0x150] sm:$0xff] %v1198_v27  ;;  %v1173_v19 = vsel %vm923_vm5, %v1714_v14, %v1123_v26  ;;  %v976_v22 = vadd.f32 1.0, %v2492_v42  ;;  %v1720_v53 = vpop.eup %1719  ;;  %vm953_vm14 = vcmp.ge.f32.partialorder %v2431_v56, 0.0  ;;  %vm928_vm15 = vcmp.ge.f32.partialorder %v2439_v58, 0.0 }
 0x162   : > { %1223 = vst [vmem:[%s2039_s7 + $0x88] sm:$0xff] %v1173_v19  ;;  %1735 = vrcp.f32 %v1001_v54  ;;  %v1722_v60 = vpop.eup %1721  ;;  %v1149_v10 = vmul.f32 %v1720_v53, %v2433_v4  ;;  %vm954_vm0 = vcmp.ge.f32.partialorder %v2455_v32, 0.0  ;;  %vm929_vm1 = vcmp.ge.f32.partialorder %v2479_v36, 0.0 }
 0x163   : > { %1737 = vrcp.f32 %v976_v22  ;;  %v1724_v40 = vpop.eup %1723  ;;  %v1124_v5 = vmul.f32 %v1722_v60, %v2441_v6  ;;  %v731_v6 = vand.u32 2147483647, %v2511_v41  ;;  %vm955_vm2 = vcmp.ge.f32.partialorder %v2486_v47, 0.0 }
 0x164   : > { %1739 = vpow2.f32 %v902_v49  ;;  %v1199_v55 = vsel %vm949_vm6, %v1720_v53, %v1149_v10  ;;  %v1002_v12 = vadd.f32 1.0, %v1724_v40  ;;  %v1726_v33 = vpop.eup %1725  ;;  %vm930_vm3 = vcmp.ge.f32.partialorder %v2490_v51, 0.0 }
 0x165   : > { %1249 = vst [vmem:[%s2039_s7 + $0x158] sm:$0xff] %v1199_v55  ;;  %v1174_v4 = vsel %vm924_vm7, %v1722_v60, %v1124_v5  ;;  %v1728_v38 = vpop.eup %1727  ;;  %v977_v25 = vadd.f32 1.0, %v1726_v33  ;;  %v781_v52 = vsub.f32 0.0, %v731_v6  ;;  %vm931_vm4 = vcmp.ge.f32.partialorder %v2511_v41, 0.0 }
 0x166   : > { %1224 = vst [vmem:[%s2039_s7 + $0x90] sm:$0xff] %v1174_v4  ;;  %1741 = vrcp.f32 %v1002_v12  ;;  %v1003_v62 = vadd.f32 1.0, %v1728_v38 }
 0x167   : > { %1743 = vpow2.f32 %v852_v9  ;;  %v856_v59 = vmul.f32 1.442695, %v781_v52 }
 0x168   : > { %v1730_v11 = vpop.eup %1729  ;;  %1745 = vrcp.f32 %v977_v25 }
 0x169   : > { %v1732_v16 = vpop.eup %1731  ;;  %v1150_v23 = vmul.f32 %v1730_v11, %v2460_v35  ;;  %1747 = vrcp.f32 %v1003_v62 }
 0x16a   : > { %v1734_v24 = vpop.eup %1733  ;;  %v1125_v7 = vmul.f32 %v1732_v16, %v2465_v20  ;;  %1749 = vpow2.f32 %v904_v1 }
 0x16b   : > { %v1200_v61 = vsel %vm950_vm8, %v1730_v11, %v1150_v23  ;;  %v978_v45 = vadd.f32 1.0, %v1734_v24  ;;  %1751 = vpow2.f32 %v854_v63 }
 0x16c   : > { %v1736_v44 = vpop.eup %1735  ;;  %1250 = vst [vmem:[%s2039_s7 + $0x160] sm:$0xff] %v1200_v61  ;;  %v1175_v50 = vsel %vm925_vm9, %v1732_v16, %v1125_v7 }
 0x16d   : > { %v1738_v35 = vpop.eup %1737  ;;  %1225 = vst [vmem:[%s2039_s7 + $0x98] sm:$0xff] %v1175_v50  ;;  %v1151_v37 = vmul.f32 %v1736_v44, %v2481_v57  ;;  %1753 = vrcp.f32 %v978_v45 }
 0x16e   : > { %v1740_v43 = vpop.eup %1739  ;;  %v1126_v30 = vmul.f32 %v1738_v35, %v2492_v42  ;;  %1755 = vpow2.f32 %v856_v59 }
 0x16f   : > { %v1201_v20 = vsel %vm951_vm10, %v1736_v44, %v1151_v37  ;;  %v1004_v18 = vadd.f32 1.0, %v1740_v43 }
 0x170   : > { %1251 = vst [vmem:[%s2039_s7 + $0x168] sm:$0xff] %v1201_v20  ;;  %v1176_v13 = vsel %vm926_vm11, %v1738_v35, %v1126_v30  ;;  %v1742_v3 = vpop.eup %1741 }
 0x171   : > { %1226 = vst [vmem:[%s2039_s7 + $0xa0] sm:$0xff] %v1176_v13  ;;  %1757 = vrcp.f32 %v1004_v18  ;;  %v1744_v17 = vpop.eup %1743  ;;  %v1152_v14 = vmul.f32 %v1742_v3, %v1724_v40 }
 0x172   : > { %v1746_v28 = vpop.eup %1745  ;;  %v979_v2 = vadd.f32 1.0, %v1744_v17 }
 0x173   : > { %v1748_v46 = vpop.eup %1747  ;;  %v1202_v57 = vsel %vm952_vm12, %v1742_v3, %v1152_v14  ;;  %v1127_v26 = vmul.f32 %v1746_v28, %v1726_v33 }
 0x174   : > { %v1750_v42 = vpop.eup %1749  ;;  %1252 = vst [vmem:[%s2039_s7 + $0x170] sm:$0xff] %v1202_v57  ;;  %v1153_v31 = vmul.f32 %v1748_v46, %v1728_v38  ;;  %1759 = vrcp.f32 %v979_v2 }
 0x175   : > { %v1752_v27 = vpop.eup %1751  ;;  %v1177_v54 = vsel %vm927_vm13, %v1746_v28, %v1127_v26  ;;  %v1005_v49 = vadd.f32 1.0, %v1750_v42 }
 0x176   : > { %1227 = vst [vmem:[%s2039_s7 + $0xa8] sm:$0xff] %v1177_v54  ;;  %v1203_v34 = vsel %vm953_vm14, %v1748_v46, %v1153_v31  ;;  %v980_v22 = vadd.f32 1.0, %v1752_v27 }
 0x177   : > { %v1754_v19 = vpop.eup %1753  ;;  %1253 = vst [vmem:[%s2039_s7 + $0x178] sm:$0xff] %v1203_v34  ;;  %1761 = vrcp.f32 %v1005_v49 }
 0x178   : > { %v1756_v15 = vpop.eup %1755  ;;  %v1128_v53 = vmul.f32 %v1754_v19, %v1734_v24  ;;  %1763 = vrcp.f32 %v980_v22 }
 0x179   : > { %v981_v39 = vadd.f32 1.0, %v1756_v15 }
 0x17a   : > { %v1178_v29 = vsel %vm928_vm15, %v1754_v19, %v1128_v53 }
 0x17b   : > { %v1758_v8 = vpop.eup %1757  ;;  %1228 = vst [vmem:[%s2039_s7 + $0xb0] sm:$0xff] %v1178_v29  ;;  %1765 = vrcp.f32 %v981_v39 }
 0x17c   : > { %v1154_v56 = vmul.f32 %v1758_v8, %v1740_v43 }
 0x17e   : > { %v1204_v60 = vsel %vm954_vm0, %v1758_v8, %v1154_v56  ;;  %v1760_v10 = vpop.eup %1759 }
 0x17f   : > { %1254 = vst [vmem:[%s2039_s7 + $0x180] sm:$0xff] %v1204_v60  ;;  %v1129_v48 = vmul.f32 %v1760_v10, %v1744_v17 }
 0x181   : > { %v1762_v40 = vpop.eup %1761  ;;  %v1179_v58 = vsel %vm929_vm1, %v1760_v10, %v1129_v48 }
 0x182   : > { %v1764_v5 = vpop.eup %1763  ;;  %1229 = vst [vmem:[%s2039_s7 + $0xb8] sm:$0xff] %v1179_v58  ;;  %v1155_v21 = vmul.f32 %v1762_v40, %v1750_v42 }
 0x183   : > { %v1130_v0 = vmul.f32 %v1764_v5, %v1752_v27 }
 0x184   : > { %v1205_v12 = vsel %vm955_vm2, %v1762_v40, %v1155_v21 }
 0x185   : > { %v1766_v55 = vpop.eup %1765  ;;  %1255 = vst [vmem:[%s2039_s7 + $0x188] sm:$0xff] %v1205_v12  ;;  %v1180_v32 = vsel %vm930_vm3, %v1764_v5, %v1130_v0 }
 0x186   : > { %v1131_v9 = vmul.f32 %v1766_v55, %v1756_v15  ;;  %1230 = vst [vmem:[%s2039_s7 + $0xc0] sm:$0xff] %v1180_v32 }
 0x188   : > { %v1181_v36 = vsel %vm931_vm4, %v1766_v55, %v1131_v9 }
 0x189   : > { %1231 = vst [vmem:[%s2039_s7 + $0xc8] sm:$0xff] %v1181_v36 }
 0x18a PF: > { %s13_s12 = sadd.s32 1, %s1774_s12  }
 0x18b   : > { %p10_p4 = scmp.ge.s32.totalorder %s13_s12, 4  }
 0x18d   :  { %12 = sbr.rel (!%p10_p4) target bundleno = 1 (0x1), region = 62 }

</bundles_post_ra>
